<compile_context>
chip_gen: v7x
topology: tpu7x:2x2x1
jax: 0.10.0
libtpu: 0.0.40
codegen_flags: <defaults>
</compile_context>

<pallas_src>
from functools import partial

import numpy as np
import jax
import jax.numpy as jnp
from jax.experimental import pallas as pl
from jax.experimental.pallas import tpu as pltpu


# bf16 MXU operands + bf16 inter-layer activations; accumulation is always f32.
COMPUTE_DTYPE = jnp.bfloat16
ACT_DTYPE = jnp.bfloat16

# Tile targets (lane dims 128-aligned, sublane dims 8-aligned when tiled).
_TM, _TN, _TK = 512, 1024, 1024
_LOSS_ROWS = 512
_ATTN_BATCH_BLK = 8           # batch elements folded into one attention grid step


# ----------------------------------------------------------------------------
# Per-generation VMEM budget (v7x: 64 MiB physical -> ~48 MiB scoped;
# v5e/v6e: 128 MiB -> ~96 MiB scoped). Guarded fallback keeps v7x safe.
# ----------------------------------------------------------------------------
_VMEM_LIMIT_CACHE = [None]


def _vmem_limit_bytes():
    if _VMEM_LIMIT_CACHE[0] is None:
        try:
            cap = int(pltpu.get_tpu_info().vmem_capacity_bytes)
            _VMEM_LIMIT_CACHE[0] = int(min((cap * 3) // 4, 100 * 1024 * 1024))
        except Exception:
            _VMEM_LIMIT_CACHE[0] = 48 * 1024 * 1024
    return _VMEM_LIMIT_CACHE[0]


def _cparams(dims):
    return pltpu.CompilerParams(dimension_semantics=dims,
                                vmem_limit_bytes=_vmem_limit_bytes())


# ----------------------------------------------------------------------------
# Tiling helpers: near-equal tiles + minimal wrapper-side zero padding.
# ----------------------------------------------------------------------------
def _round_up(x, m):
    return ((x + m - 1) // m) * m


def _tiling(dim, target, align):
    """Return (tile, padded_dim). dim<=target -> full dim, no padding (legal
    block since it equals the full array dim). Otherwise near-equal aligned
    tiles so padding waste stays below one `align` row per tile."""
    if dim <= target:
        return dim, dim
    nt = -(-dim // target)
    t = _round_up(-(-dim // nt), align)
    return t, _round_up(dim, t)


def _pad_to(a, shape):
    if tuple(a.shape) == tuple(shape):
        return a
    return jnp.pad(a, [(0, t - s) for s, t in zip(a.shape, shape)])


# ----------------------------------------------------------------------------
# sin-cos positional embedding (identical to the PyTorch/numpy reference)
# ----------------------------------------------------------------------------
def get_1d_sincos_pos_embed_from_grid(embed_dim, pos):
    assert embed_dim % 2 == 0
    omega = np.arange(embed_dim // 2, dtype=np.float64)
    omega /= embed_dim / 2.0
    omega = 1.0 / 10000 ** omega
    pos = pos.reshape(-1)
    out = np.einsum('m,d->md', pos, omega)
    emb_sin = np.sin(out)
    emb_cos = np.cos(out)
    return np.concatenate([emb_sin, emb_cos], axis=1)


def get_2d_sincos_pos_embed_from_grid(embed_dim, grid):
    assert embed_dim % 2 == 0
    emb_h = get_1d_sincos_pos_embed_from_grid(embed_dim // 2, grid[0])
    emb_w = get_1d_sincos_pos_embed_from_grid(embed_dim // 2, grid[1])
    return np.concatenate([emb_h, emb_w], axis=1)


def get_2d_sincos_pos_embed(embed_dim, grid_size, cls_token=False):
    grid_h = np.arange(grid_size, dtype=np.float32)
    grid_w = np.arange(grid_size, dtype=np.float32)
    grid = np.meshgrid(grid_w, grid_h)
    grid = np.stack(grid, axis=0)
    grid = grid.reshape([2, 1, grid_size, grid_size])
    pos_embed = get_2d_sincos_pos_embed_from_grid(embed_dim, grid)
    if cls_token:
        pos_embed = np.concatenate([np.zeros([1, embed_dim]), pos_embed], axis=0)
    return pos_embed


# ----------------------------------------------------------------------------
# In-kernel exact-form GELU (erf via Abramowitz & Stegun 7.1.26, abs err ~1.5e-7).
# ----------------------------------------------------------------------------
_SQRT_HALF = 0.7071067811865476


def _erf_poly(x):
    p = 0.3275911
    a1, a2, a3, a4, a5 = (0.254829592, -0.284496736, 1.421413741,
                          -1.453152027, 1.061405429)
    ax = jnp.abs(x)
    t = 1.0 / (1.0 + p * ax)
    poly = ((((a5 * t + a4) * t + a3) * t + a2) * t + a1) * t
    y = 1.0 - poly * jnp.exp(-ax * ax)
    return jnp.where(x >= 0, y, -y)


def _gelu_exact(x):
    return 0.5 * x * (1.0 + _erf_poly(x * _SQRT_HALF))


# ----------------------------------------------------------------------------
# Fused tiled linear: out = act( LN(x) @ w + b ) [+ residual]
#   - pre-LN applied to the x tile in the (single-step) K prologue
#   - bias / GELU / residual in the last-K epilogue
#   - f32 VMEM accumulator, bf16 MXU operands
# ----------------------------------------------------------------------------
def _linear_kernel(*refs, has_ln, has_bias, has_res, activation, ln_eps):
    it = iter(refs)
    x_ref = next(it)
    w_ref = next(it)
    g_ref = bln_ref = None
    if has_ln:
        g_ref = next(it)
        bln_ref = next(it)
    b_ref = next(it) if has_bias else None
    res_ref = next(it) if has_res else None
    o_ref = next(it)
    acc_ref = next(it)

    @pl.when(pl.program_id(2) == 0)
    def _():
        acc_ref[...] = jnp.zeros_like(acc_ref)

    x = x_ref[...]
    if has_ln:
        xf = x.astype(jnp.float32)
        mean = jnp.mean(xf, axis=-1, keepdims=True)
        xc = xf - mean
        var = jnp.mean(xc * xc, axis=-1, keepdims=True)
        x = (xc * jax.lax.rsqrt(var + ln_eps) * g_ref[...].astype(jnp.float32)
             + bln_ref[...].astype(jnp.float32))
    x = x.astype(COMPUTE_DTYPE)
    w = w_ref[...].astype(COMPUTE_DTYPE)
    acc_ref[...] += jnp.dot(x, w, preferred_element_type=jnp.float32)

    @pl.when(pl.program_id(2) == pl.num_programs(2) - 1)
    def _():
        out = acc_ref[...]
        if has_bias:
            out = out + b_ref[...].astype(jnp.float32)
        if activation == "gelu":
            out = _gelu_exact(out)
        if has_res:
            out = out + res_ref[...].astype(jnp.float32)
        o_ref[...] = out.astype(o_ref.dtype)


def linear(x2d, w, b=None, residual=None, activation=None, prenorm=None,
           out_dtype=None, ln_eps=1e-5):
    """x2d: (M, K); w: (K, N); b: (N,)|None; residual: (M, N)|None;
    prenorm: (gamma, beta) applied to x before the matmul; returns (M, N)."""
    M, K = x2d.shape
    Kw, N = w.shape
    assert Kw == K
    out_dtype = ACT_DTYPE if out_dtype is None else out_dtype

    tm, Mp = _tiling(M, _TM, 8)
    tk, Kp = _tiling(K, _TK, 128)
    tn, Np = _tiling(N, _TN, 128)
    if prenorm is not None:
        # TODO(synk): fused pre-LN needs the whole reduction row in one K tile;
        # all LN'd dims in this model are <= _TK so this never triggers.
        assert tk == Kp == K, "fused pre-LN requires K <= _TK"

    xp = _pad_to(x2d, (Mp, Kp))
    wp = _pad_to(w, (Kp, Np))
    grid = (Mp // tm, Np // tn, Kp // tk)

    in_specs = [pl.BlockSpec((tm, tk), lambda i, j, k: (i, k)),
                pl.BlockSpec((tk, tn), lambda i, j, k: (k, j))]
    args = [xp, wp]
    if prenorm is not None:
        g, bt = prenorm
        in_specs += [pl.BlockSpec((1, tk), lambda i, j, k: (0, k)),
                     pl.BlockSpec((1, tk), lambda i, j, k: (0, k))]
        args += [jnp.reshape(g, (1, K)), jnp.reshape(bt, (1, K))]
    if b is not None:
        in_specs.append(pl.BlockSpec((1, tn), lambda i, j, k: (0, j)))
        args.append(_pad_to(jnp.reshape(b, (1, N)), (1, Np)))
    if residual is not None:
        in_specs.append(pl.BlockSpec((tm, tn), lambda i, j, k: (i, j)))
        args.append(_pad_to(residual, (Mp, Np)))

    out = pl.pallas_call(
        partial(_linear_kernel, has_ln=prenorm is not None,
                has_bias=b is not None, has_res=residual is not None,
                activation=activation, ln_eps=ln_eps),
        grid=grid,
        in_specs=in_specs,
        out_specs=pl.BlockSpec((tm, tn), lambda i, j, k: (i, j)),
        out_shape=jax.ShapeDtypeStruct((Mp, Np), out_dtype),
        scratch_shapes=[pltpu.VMEM((tm, tn), jnp.float32)],
        compiler_params=_cparams(("parallel", "parallel", "arbitrary")),
    )(*args)
    if (Mp, Np) != (M, N):
        out = out[:M, :N]
    return out


# ----------------------------------------------------------------------------
# Multi-head attention. The wrapper re-lays q/k/v out head-major (B*H, S, d)
# so the kernel only takes leading-dim views; each grid step processes
# G = Bblk * num_heads head-slices as one batched einsum over the MXU.
# ----------------------------------------------------------------------------
def _attn_kernel(q_ref, k_ref, v_ref, o_ref, *, scale):
    q = q_ref[...]
    k = k_ref[...]
    v = v_ref[...]
    s = jnp.einsum('gqd,gkd->gqk', q, k,
                   preferred_element_type=jnp.float32) * scale
    s = s - jnp.max(s, axis=-1, keepdims=True)
    e = jnp.exp(s)
    p = e * pl.reciprocal(jnp.sum(e, axis=-1, keepdims=True), approx=True)
    o = jnp.einsum('gqk,gkd->gqd', p.astype(v.dtype), v,
                   preferred_element_type=jnp.float32)
    o_ref[...] = o.astype(o_ref.dtype)


def attention(qkv2d, B, S, num_heads):
    """qkv2d: (B*S, 3*D) in timm [3, H, d] column order -> (B*S, D)."""
    threeD = qkv2d.shape[1]
    D = threeD // 3
    d = D // num_heads
    scale = float(d) ** -0.5

    # head-major layout in the wrapper (cheap XLA transpose = layout plumbing)
    qkv = qkv2d.reshape(B, S, 3, num_heads, d).transpose(2, 0, 3, 1, 4)  # (3,B,H,S,d)
    q, k, v = qkv[0], qkv[1], qkv[2]
    BH = B * num_heads
    q = q.reshape(BH, S, d)
    k = k.reshape(BH, S, d)
    v = v.reshape(BH, S, d)

    G = min(B, _ATTN_BATCH_BLK) * num_heads
    BHp = _round_up(BH, G)
    q = _pad_to(q, (BHp, S, d))
    k = _pad_to(k, (BHp, S, d))
    v = _pad_to(v, (BHp, S, d))

    out = pl.pallas_call(
        partial(_attn_kernel, scale=scale),
        grid=(BHp // G,),
        in_specs=[pl.BlockSpec((G, S, d), lambda i: (i, 0, 0)),
                  pl.BlockSpec((G, S, d), lambda i: (i, 0, 0)),
                  pl.BlockSpec((G, S, d), lambda i: (i, 0, 0))],
        out_specs=pl.BlockSpec((G, S, d), lambda i: (i, 0, 0)),
        out_shape=jax.ShapeDtypeStruct((BHp, S, d), ACT_DTYPE),
        compiler_params=_cparams(("parallel",)),
    )(q, k, v)

    out = out[:BH].reshape(B, num_heads, S, d).transpose(0, 2, 1, 3)
    return out.reshape(B * S, D)


# ----------------------------------------------------------------------------
# Row-tiled masked MSE loss with resident (1,1) accumulators
# ----------------------------------------------------------------------------
def _loss_kernel(pred_ref, tgt_ref, mask_ref, o_ref, num_ref, den_ref):
    i = pl.program_id(0)

    @pl.when(i == 0)
    def _():
        num_ref[...] = jnp.zeros_like(num_ref)
        den_ref[...] = jnp.zeros_like(den_ref)

    d = pred_ref[...].astype(jnp.float32) - tgt_ref[...].astype(jnp.float32)
    per_patch = jnp.mean(d * d, axis=-1, keepdims=True)          # (tm, 1)
    m = mask_ref[...]                                            # (tm, 1)
    num_ref[...] += jnp.sum(per_patch * m, axis=0, keepdims=True)
    den_ref[...] += jnp.sum(m, axis=0, keepdims=True)

    @pl.when(i == pl.num_programs(0) - 1)
    def _():
        o_ref[...] = num_ref[...] / den_ref[...]


def masked_mse_loss(pred, target, mask):
    """pred/target: (N, L, P), mask: (N, L) -> scalar."""
    N, L, P = pred.shape
    M = N * L
    tm, Mp = _tiling(M, _LOSS_ROWS, 8)
    pred2 = _pad_to(pred.reshape(M, P).astype(jnp.float32), (Mp, P))
    tgt2 = _pad_to(target.reshape(M, P).astype(jnp.float32), (Mp, P))
    mask2 = _pad_to(mask.reshape(M, 1).astype(jnp.float32), (Mp, 1))

    row_spec = pl.BlockSpec((tm, P), lambda i: (i, 0))
    out = pl.pallas_call(
        _loss_kernel,
        grid=(Mp // tm,),
        in_specs=[row_spec, row_spec, pl.BlockSpec((tm, 1), lambda i: (i, 0))],
        out_specs=pl.BlockSpec((1, 1), lambda i: (0, 0)),
        out_shape=jax.ShapeDtypeStruct((1, 1), jnp.float32),
        scratch_shapes=[pltpu.VMEM((1, 1), jnp.float32),
                        pltpu.VMEM((1, 1), jnp.float32)],
        compiler_params=_cparams(("arbitrary",)),
    )(pred2, tgt2, mask2)
    return out[0, 0]


# ----------------------------------------------------------------------------
# Transformer block (timm ViT Block with qkv_bias=False; pre-LN fused into the
# qkv / fc1 linears, residual adds fused into the proj / fc2 epilogues)
# ----------------------------------------------------------------------------
def block_forward(x, bp, num_heads):
    B, S, D = x.shape
    x2 = x.reshape(B * S, D)

    qkv = linear(x2, bp["qkv_w"], prenorm=(bp["n1_g"], bp["n1_b"]))   # LN1 fused
    a = attention(qkv, B, S, num_heads)                               # (B*S, D)
    x2 = linear(a, bp["proj_w"], bp["proj_b"], residual=x2)

    h = linear(x2, bp["fc1_w"], bp["fc1_b"], activation="gelu",
               prenorm=(bp["n2_g"], bp["n2_b"]))                      # LN2 + GELU fused
    x2 = linear(h, bp["fc2_w"], bp["fc2_b"], residual=x2)
    return x2.reshape(B, S, D)


# ----------------------------------------------------------------------------
# Parameter init (deterministic, shapes match the PyTorch module; matmul
# weights stored bf16, biases / LN params / pos-embeds f32)
# ----------------------------------------------------------------------------
def _xavier(key, shape):
    fan_in, fan_out = shape
    limit = float(np.sqrt(6.0 / (fan_in + fan_out)))
    w = jax.random.uniform(key, shape, jnp.float32, -limit, limit)
    return w.astype(COMPUTE_DTYPE)


def _init_block(key, dim, mlp_ratio):
    hidden = int(dim * mlp_ratio)
    k1, k2, k3, k4 = jax.random.split(key, 4)
    return {
        "n1_g": jnp.ones((1, dim), jnp.float32),
        "n1_b": jnp.zeros((1, dim), jnp.float32),
        "qkv_w": _xavier(k1, (dim, 3 * dim)),          # qkv_bias=False
        "proj_w": _xavier(k2, (dim, dim)),
        "proj_b": jnp.zeros((dim,), jnp.float32),
        "n2_g": jnp.ones((1, dim), jnp.float32),
        "n2_b": jnp.zeros((1, dim), jnp.float32),
        "fc1_w": _xavier(k3, (dim, hidden)),
        "fc1_b": jnp.zeros((hidden,), jnp.float32),
        "fc2_w": _xavier(k4, (hidden, dim)),
        "fc2_b": jnp.zeros((dim,), jnp.float32),
    }


def init_params(key, cfg):
    p = cfg["patch_size"]
    C = cfg["in_chans"]
    D = cfg["embed_dim"]
    Dd = cfg["decoder_embed_dim"]
    grid_size = cfg["img_size"] // p
    L = grid_size * grid_size

    keys = jax.random.split(key, 6 + cfg["depth"] + cfg["decoder_depth"])
    ki = iter(keys)

    params = {
        # patch embed = Conv2d(k=p, stride=p) ≡ per-patch Linear on (C*p*p) vectors
        "patch_w": _xavier(next(ki), (C * p * p, D)),
        "patch_b": jnp.zeros((D,), jnp.float32),
        "cls_token": 0.02 * jax.random.normal(next(ki), (1, 1, D), jnp.float32),
        "mask_token": 0.02 * jax.random.normal(next(ki), (1, 1, Dd), jnp.float32),
        "pos_embed": jnp.asarray(
            get_2d_sincos_pos_embed(D, grid_size, cls_token=True), jnp.float32)[None],
        "decoder_pos_embed": jnp.asarray(
            get_2d_sincos_pos_embed(Dd, grid_size, cls_token=True), jnp.float32)[None],
        "blocks": [_init_block(next(ki), D, cfg["mlp_ratio"])
                   for _ in range(cfg["depth"])],
        "norm_g": jnp.ones((1, D), jnp.float32),
        "norm_b": jnp.zeros((1, D), jnp.float32),
        "dec_embed_w": _xavier(next(ki), (D, Dd)),
        "dec_embed_b": jnp.zeros((Dd,), jnp.float32),
        "dec_blocks": [_init_block(next(ki), Dd, cfg["mlp_ratio"])
                       for _ in range(cfg["decoder_depth"])],
        "dec_norm_g": jnp.ones((1, Dd), jnp.float32),
        "dec_norm_b": jnp.zeros((1, Dd), jnp.float32),
        "dec_pred_w": _xavier(next(ki), (Dd, p * p * C)),
        "dec_pred_b": jnp.zeros((p * p * C,), jnp.float32),
    }
    assert params["pos_embed"].shape == (1, L + 1, D)
    return params


# ----------------------------------------------------------------------------
# Forward pass (encoder -> masking -> decoder -> loss), mirrors the PyTorch code
# ----------------------------------------------------------------------------
def mae_forward(params, imgs, mask_ratio, mask_rng, cfg):
    p = cfg["patch_size"]
    C = cfg["in_chans"]
    D = cfg["embed_dim"]
    Dd = cfg["decoder_embed_dim"]
    N, Cc, H, W = imgs.shape
    assert Cc == C and H == W and H % p == 0
    hgrid = H // p
    L = hgrid * hgrid

    # ---- encoder ----
    # patch extraction in Conv2d ordering (c, ph, pw), patches row-major over (h, w)
    patches_conv = (imgs.reshape(N, C, hgrid, p, hgrid, p)
                        .transpose(0, 2, 4, 1, 3, 5)
                        .reshape(N * L, C * p * p))
    x = linear(patches_conv, params["patch_w"], params["patch_b"]).reshape(N, L, D)
    x = (x.astype(jnp.float32) + params["pos_embed"][:, 1:, :]).astype(ACT_DTYPE)

    # TODO(synk): argsort-based random masking + gathers are data-dependent permutations
    # with no clean Pallas equivalent; kept in plain JAX (XLA sort/gather).
    len_keep = int(L * (1 - mask_ratio))
    noise = jax.random.uniform(mask_rng, (N, L), jnp.float32)
    ids_shuffle = jnp.argsort(noise, axis=1)
    ids_restore = jnp.argsort(ids_shuffle, axis=1)
    ids_keep = ids_shuffle[:, :len_keep]
    x_masked = jnp.take_along_axis(
        x, jnp.broadcast_to(ids_keep[:, :, None], (N, len_keep, D)), axis=1)
    mask = jnp.ones((N, L), jnp.float32).at[:, :len_keep].set(0.0)
    mask = jnp.take_along_axis(mask, ids_restore, axis=1)

    cls_tok = (params["cls_token"] + params["pos_embed"][:, :1, :]).astype(ACT_DTYPE)
    x = jnp.concatenate([jnp.broadcast_to(cls_tok, (N, 1, D)), x_masked], axis=1)
    for bp in params["blocks"]:
        x = block_forward(x, bp, cfg["num_heads"])
    S = x.shape[1]

    # ---- decoder ----
    # encoder-final LayerNorm fused into the decoder-embed linear's prologue
    xd = linear(x.reshape(N * S, D), params["dec_embed_w"], params["dec_embed_b"],
                prenorm=(params["norm_g"], params["norm_b"])).reshape(N, S, Dd)
    n_mask_tok = L + 1 - S
    mask_tokens = jnp.broadcast_to(params["mask_token"].astype(ACT_DTYPE),
                                   (N, n_mask_tok, Dd))
    x_ = jnp.concatenate([xd[:, 1:, :], mask_tokens], axis=1)          # (N, L, Dd)
    x_ = jnp.take_along_axis(
        x_, jnp.broadcast_to(ids_restore[:, :, None], (N, L, Dd)), axis=1)
    xd = jnp.concatenate([xd[:, :1, :], x_], axis=1)                   # (N, L+1, Dd)
    xd = (xd.astype(jnp.float32) + params["decoder_pos_embed"]).astype(ACT_DTYPE)
    for bp in params["dec_blocks"]:
        xd = block_forward(xd, bp, cfg["decoder_num_heads"])
    Sd = xd.shape[1]
    # decoder-final LayerNorm fused into decoder-pred; pred kept f32 for the loss
    pred = linear(xd.reshape(N * Sd, Dd), params["dec_pred_w"], params["dec_pred_b"],
                  prenorm=(params["dec_norm_g"], params["dec_norm_b"]),
                  out_dtype=jnp.float32).reshape(N, Sd, p * p * C)
    pred = pred[:, 1:, :]                                              # (N, L, p*p*C)

    # ---- loss ----
    # patchify ordering from the module: (ph, pw, c)
    target = (imgs.reshape(N, C, hgrid, p, hgrid, p)
                  .transpose(0, 2, 4, 3, 5, 1)
                  .reshape(N, L, p * p * C))
    # norm_pix_loss=False (default)
    loss = masked_mse_loss(pred, target, mask)
    return loss, pred, mask


# ----------------------------------------------------------------------------
if __name__ == "__main__":
    cfg = dict(img_size=16, patch_size=4, in_chans=4, embed_dim=32, depth=2,
               num_heads=4, decoder_embed_dim=32, decoder_depth=2,
               decoder_num_heads=4, mlp_ratio=4.0)

    root = jax.random.PRNGKey(0)
    k_param, k_img, k_mask = jax.random.split(root, 3)

    params = init_params(k_param, cfg)
    imgs = jax.random.normal(k_img, (2, cfg["in_chans"], cfg["img_size"],
                                     cfg["img_size"]), jnp.float32)   # NCHW

    fwd = jax.jit(lambda prm, im, rng: mae_forward(prm, im, 0.75, rng, cfg))
    loss, pred, mask = fwd(params, imgs, k_mask)
    jax.block_until_ready((loss, pred, mask))

    L = (cfg["img_size"] // cfg["patch_size"]) ** 2
    P = cfg["patch_size"] ** 2 * cfg["in_chans"]
    assert pred.shape == (2, L, P)
    assert mask.shape == (2, L)
    assert loss.shape == ()
    assert bool(jnp.isfinite(loss))
    print("KERNEL_OK")
</pallas_src>

<mosaic_0001>
module attributes {stable_mosaic.version = 11 : i64} {
  func.func @_linear_kernel(%arg0: i32, %arg1: i32, %arg2: i32, %arg3: memref<32x64xf32, #tpu.memory_space<vmem>>, %arg4: memref<64x32xbf16, #tpu.memory_space<vmem>>, %arg5: memref<1x32xf32, #tpu.memory_space<vmem>>, %arg6: memref<32x32xbf16, #tpu.memory_space<vmem>>, %arg7: memref<32x32xf32, #tpu.memory_space<vmem>>) attributes {dimension_semantics = [#tpu.dimension_semantics<parallel>, #tpu.dimension_semantics<parallel>, #tpu.dimension_semantics<arbitrary>], iteration_bounds = array<i64: 1, 1, 1>, scalar_prefetch = 0 : i64, scratch_operands = 1 : i64, tpu.core_type = #tpu.core_type<tc>, window_params = [{transform_indices = @transform_0, window_bounds = array<i64: 32, 64>}, {transform_indices = @transform_1, window_bounds = array<i64: 64, 32>}, {transform_indices = @transform_2, window_bounds = array<i64: 1, 32>}, {transform_indices = @transform_3, window_bounds = array<i64: 32, 32>}]} {
    %c0_i32 = arith.constant 0 : i32
    %0 = arith.cmpi eq, %arg2, %c0_i32 : i32
    %1 = arith.extui %0 : i1 to i32
    %c0_i32_0 = arith.constant 0 : i32
    %2 = arith.cmpi ne, %1, %c0_i32_0 : i32
    scf.if %2 {
      %cst_10 = arith.constant 0.000000e+00 : f32
      %13 = vector.broadcast %cst_10 : f32 to vector<32x32xf32>
      %c0_11 = arith.constant 0 : index
      %c0_12 = arith.constant 0 : index
      %14 = vector.load %arg7[%c0_11, %c0_12] : memref<32x32xf32, #tpu.memory_space<vmem>>, vector<32x32xf32>
      tpu.vector_store %arg7[%c0_11, %c0_12], %13 {strides = array<i32>} : memref<32x32xf32, #tpu.memory_space<vmem>>, vector<32x32xf32>,
    } else {
    }
    %c0 = arith.constant 0 : index
    %c0_1 = arith.constant 0 : index
    %3 = vector.load %arg3[%c0, %c0_1] : memref<32x64xf32, #tpu.memory_space<vmem>>, vector<32x64xf32>
    %4 = arith.truncf %3 : vector<32x64xf32> to vector<32x64xbf16>
    %c0_2 = arith.constant 0 : index
    %c0_3 = arith.constant 0 : index
    %5 = vector.load %arg4[%c0_2, %c0_3] : memref<64x32xbf16, #tpu.memory_space<vmem>>, vector<64x32xbf16>
    %c0_4 = arith.constant 0 : index
    %c0_5 = arith.constant 0 : index
    %6 = vector.load %arg7[%c0_4, %c0_5] : memref<32x32xf32, #tpu.memory_space<vmem>>, vector<32x32xf32>
    %cst = arith.constant dense<0.000000e+00> : vector<32x32xf32>
    %7 = tpu.matmul %4, %5, %cst {dimension_numbers = #tpu.dot_dimension_numbers<[1], [0], [0], [1], [0, 0, 1, 1], [], []>} : vector<32x64xbf16>, vector<64x32xbf16>, vector<32x32xf32> -> vector<32x32xf32>
    %8 = arith.addf %6, %7 : vector<32x32xf32>
    %c0_6 = arith.constant 0 : index
    %c0_7 = arith.constant 0 : index
    %9 = vector.load %arg7[%c0_6, %c0_7] : memref<32x32xf32, #tpu.memory_space<vmem>>, vector<32x32xf32>
    tpu.vector_store %arg7[%c0_6, %c0_7], %8 {strides = array<i32>} : memref<32x32xf32, #tpu.memory_space<vmem>>, vector<32x32xf32>,
    %c0_i32_8 = arith.constant 0 : i32
    %10 = arith.cmpi eq, %arg2, %c0_i32_8 : i32
    %11 = arith.extui %10 : i1 to i32
    %c0_i32_9 = arith.constant 0 : i32
    %12 = arith.cmpi ne, %11, %c0_i32_9 : i32
    scf.if %12 {
      %c0_10 = arith.constant 0 : index
      %c0_11 = arith.constant 0 : index
      %13 = vector.load %arg7[%c0_10, %c0_11] : memref<32x32xf32, #tpu.memory_space<vmem>>, vector<32x32xf32>
      %c0_12 = arith.constant 0 : index
      %c0_13 = arith.constant 0 : index
      %14 = vector.load %arg5[%c0_12, %c0_13] : memref<1x32xf32, #tpu.memory_space<vmem>>, vector<1x32xf32>
      %15 = vector.broadcast %14 : vector<1x32xf32> to vector<32x32xf32>
      %16 = arith.addf %13, %15 : vector<32x32xf32>
      %17 = arith.truncf %16 : vector<32x32xf32> to vector<32x32xbf16>
      %c0_14 = arith.constant 0 : index
      %c0_15 = arith.constant 0 : index
      %18 = vector.load %arg6[%c0_14, %c0_15] : memref<32x32xbf16, #tpu.memory_space<vmem>>, vector<32x32xbf16>
      tpu.vector_store %arg6[%c0_14, %c0_15], %17 {strides = array<i32>} : memref<32x32xbf16, #tpu.memory_space<vmem>>, vector<32x32xbf16>,
    } else {
    }
    return
  }
  func.func @transform_0(%arg0: i32, %arg1: i32, %arg2: i32) -> (i32, i32) {
    %c0_i32 = arith.constant 0 : i32
    return %arg0, %arg2 : i32, i32
  }
  func.func @transform_1(%arg0: i32, %arg1: i32, %arg2: i32) -> (i32, i32) {
    %c0_i32 = arith.constant 0 : i32
    return %arg2, %arg1 : i32, i32
  }
  func.func @transform_2(%arg0: i32, %arg1: i32, %arg2: i32) -> (i32, i32) {
    %c0_i32 = arith.constant 0 : i32
    %c0_i32_0 = arith.constant 0 : i32
    return %c0_i32, %arg1 : i32, i32
  }
  func.func @transform_3(%arg0: i32, %arg1: i32, %arg2: i32) -> (i32, i32) {
    %c0_i32 = arith.constant 0 : i32
    return %arg0, %arg1 : i32, i32
  }
}

module attributes {stable_mosaic.version = 11 : i64} {
  func.func @_linear_kernel(%arg0: i32, %arg1: i32, %arg2: i32, %arg3: memref<10x32xbf16, #tpu.memory_space<vmem>>, %arg4: memref<32x96xbf16, #tpu.memory_space<vmem>>, %arg5: memref<1x32xf32, #tpu.memory_space<vmem>>, %arg6: memref<1x32xf32, #tpu.memory_space<vmem>>, %arg7: memref<10x96xbf16, #tpu.memory_space<vmem>>, %arg8: memref<10x96xf32, #tpu.memory_space<vmem>>) attributes {dimension_semantics = [#tpu.dimension_semantics<parallel>, #tpu.dimension_semantics<parallel>, #tpu.dimension_semantics<arbitrary>], iteration_bounds = array<i64: 1, 1, 1>, scalar_prefetch = 0 : i64, scratch_operands = 1 : i64, tpu.core_type = #tpu.core_type<tc>, window_params = [{transform_indices = @transform_0, window_bounds = array<i64: 10, 32>}, {transform_indices = @transform_1, window_bounds = array<i64: 32, 96>}, {transform_indices = @transform_2, window_bounds = array<i64: 1, 32>}, {transform_indices = @transform_3, window_bounds = array<i64: 1, 32>}, {transform_indices = @transform_4, window_bounds = array<i64: 10, 96>}]} {
    %c0_i32 = arith.constant 0 : i32
    %0 = arith.cmpi eq, %arg2, %c0_i32 : i32
    %1 = arith.extui %0 : i1 to i32
    %c0_i32_0 = arith.constant 0 : i32
    %2 = arith.cmpi ne, %1, %c0_i32_0 : i32
    scf.if %2 {
      %cst_19 = arith.constant 0.000000e+00 : f32
      %36 = vector.broadcast %cst_19 : f32 to vector<10x96xf32>
      %c0_20 = arith.constant 0 : index
      %c0_21 = arith.constant 0 : index
      %37 = vector.load %arg8[%c0_20, %c0_21] : memref<10x96xf32, #tpu.memory_space<vmem>>, vector<10x96xf32>
      tpu.vector_store %arg8[%c0_20, %c0_21], %36 {strides = array<i32>} : memref<10x96xf32, #tpu.memory_space<vmem>>, vector<10x96xf32>,
    } else {
    }
    %c0 = arith.constant 0 : index
    %c0_1 = arith.constant 0 : index
    %3 = vector.load %arg3[%c0, %c0_1] : memref<10x32xbf16, #tpu.memory_space<vmem>>, vector<10x32xbf16>
    %4 = arith.extf %3 : vector<10x32xbf16> to vector<10x32xf32>
    %cst = arith.constant dense<0.000000e+00> : vector<10xf32>
    %5 = vector.multi_reduction <add>, %4, %cst [1] : vector<10x32xf32> to vector<10xf32>
    %6 = vector.shape_cast %5 : vector<10xf32> to vector<10x1xf32>
    %cst_2 = arith.constant 3.200000e+01 : f32
    %7 = vector.broadcast %cst_2 : f32 to vector<10x1xf32>
    %8 = arith.divf %6, %7 : vector<10x1xf32>
    %9 = vector.broadcast %8 : vector<10x1xf32> to vector<10x32xf32>
    %10 = arith.subf %4, %9 : vector<10x32xf32>
    %11 = arith.mulf %10, %10 : vector<10x32xf32>
    %cst_3 = arith.constant dense<0.000000e+00> : vector<10xf32>
    %12 = vector.multi_reduction <add>, %11, %cst_3 [1] : vector<10x32xf32> to vector<10xf32>
    %13 = vector.shape_cast %12 : vector<10xf32> to vector<10x1xf32>
    %cst_4 = arith.constant 3.200000e+01 : f32
    %14 = vector.broadcast %cst_4 : f32 to vector<10x1xf32>
    %15 = arith.divf %13, %14 : vector<10x1xf32>
    %cst_5 = arith.constant 9.99999974E-6 : f32
    %16 = vector.broadcast %cst_5 : f32 to vector<10x1xf32>
    %17 = arith.addf %15, %16 : vector<10x1xf32>
    %18 = math.rsqrt %17 : vector<10x1xf32>
    %19 = vector.broadcast %18 : vector<10x1xf32> to vector<10x32xf32>
    %20 = arith.mulf %10, %19 : vector<10x32xf32>
    %c0_6 = arith.constant 0 : index
    %c0_7 = arith.constant 0 : index
    %21 = vector.load %arg5[%c0_6, %c0_7] : memref<1x32xf32, #tpu.memory_space<vmem>>, vector<1x32xf32>
    %22 = vector.broadcast %21 : vector<1x32xf32> to vector<10x32xf32>
    %23 = arith.mulf %20, %22 : vector<10x32xf32>
    %c0_8 = arith.constant 0 : index
    %c0_9 = arith.constant 0 : index
    %24 = vector.load %arg6[%c0_8, %c0_9] : memref<1x32xf32, #tpu.memory_space<vmem>>, vector<1x32xf32>
    %25 = vector.broadcast %24 : vector<1x32xf32> to vector<10x32xf32>
    %26 = arith.addf %23, %25 : vector<10x32xf32>
    %27 = arith.truncf %26 : vector<10x32xf32> to vector<10x32xbf16>
    %c0_10 = arith.constant 0 : index
    %c0_11 = arith.constant 0 : index
    %28 = vector.load %arg4[%c0_10, %c0_11] : memref<32x96xbf16, #tpu.memory_space<vmem>>, vector<32x96xbf16>
    %c0_12 = arith.constant 0 : index
    %c0_13 = arith.constant 0 : index
    %29 = vector.load %arg8[%c0_12, %c0_13] : memref<10x96xf32, #tpu.memory_space<vmem>>, vector<10x96xf32>
    %cst_14 = arith.constant dense<0.000000e+00> : vector<10x96xf32>
    %30 = tpu.matmul %27, %28, %cst_14 {dimension_numbers = #tpu.dot_dimension_numbers<[1], [0], [0], [1], [0, 0, 1, 1], [], []>} : vector<10x32xbf16>, vector<32x96xbf16>, vector<10x96xf32> -> vector<10x96xf32>
    %31 = arith.addf %29, %30 : vector<10x96xf32>
    %c0_15 = arith.constant 0 : index
    %c0_16 = arith.constant 0 : index
    %32 = vector.load %arg8[%c0_15, %c0_16] : memref<10x96xf32, #tpu.memory_space<vmem>>, vector<10x96xf32>
    tpu.vector_store %arg8[%c0_15, %c0_16], %31 {strides = array<i32>} : memref<10x96xf32, #tpu.memory_space<vmem>>, vector<10x96xf32>,
    %c0_i32_17 = arith.constant 0 : i32
    %33 = arith.cmpi eq, %arg2, %c0_i32_17 : i32
    %34 = arith.extui %33 : i1 to i32
    %c0_i32_18 = arith.constant 0 : i32
    %35 = arith.cmpi ne, %34, %c0_i32_18 : i32
    scf.if %35 {
      %c0_19 = arith.constant 0 : index
      %c0_20 = arith.constant 0 : index
      %36 = vector.load %arg8[%c0_19, %c0_20] : memref<10x96xf32, #tpu.memory_space<vmem>>, vector<10x96xf32>
      %37 = arith.truncf %36 : vector<10x96xf32> to vector<10x96xbf16>
      %c0_21 = arith.constant 0 : index
      %c0_22 = arith.constant 0 : index
      %38 = vector.load %arg7[%c0_21, %c0_22] : memref<10x96xbf16, #tpu.memory_space<vmem>>, vector<10x96xbf16>
      tpu.vector_store %arg7[%c0_21, %c0_22], %37 {strides = array<i32>} : memref<10x96xbf16, #tpu.memory_space<vmem>>, vector<10x96xbf16>,
    } else {
    }
    return
  }
  func.func @transform_0(%arg0: i32, %arg1: i32, %arg2: i32) -> (i32, i32) {
    %c0_i32 = arith.constant 0 : i32
    return %arg0, %arg2 : i32, i32
  }
  func.func @transform_1(%arg0: i32, %arg1: i32, %arg2: i32) -> (i32, i32) {
    %c0_i32 = arith.constant 0 : i32
    return %arg2, %arg1 : i32, i32
  }
  func.func @transform_2(%arg0: i32, %arg1: i32, %arg2: i32) -> (i32, i32) {
    %c0_i32 = arith.constant 0 : i32
    %c0_i32_0 = arith.constant 0 : i32
    return %c0_i32, %arg2 : i32, i32
  }
  func.func @transform_3(%arg0: i32, %arg1: i32, %arg2: i32) -> (i32, i32) {
    %c0_i32 = arith.constant 0 : i32
    %c0_i32_0 = arith.constant 0 : i32
    return %c0_i32, %arg2 : i32, i32
  }
  func.func @transform_4(%arg0: i32, %arg1: i32, %arg2: i32) -> (i32, i32) {
    %c0_i32 = arith.constant 0 : i32
    return %arg0, %arg1 : i32, i32
  }
}

module attributes {stable_mosaic.version = 11 : i64} {
  func.func @_attn_kernel(%arg0: i32, %arg1: memref<8x5x8xbf16, #tpu.memory_space<vmem>>, %arg2: memref<8x5x8xbf16, #tpu.memory_space<vmem>>, %arg3: memref<8x5x8xbf16, #tpu.memory_space<vmem>>, %arg4: memref<8x5x8xbf16, #tpu.memory_space<vmem>>) attributes {dimension_semantics = [#tpu.dimension_semantics<parallel>], iteration_bounds = array<i64: 1>, scalar_prefetch = 0 : i64, scratch_operands = 0 : i64, tpu.core_type = #tpu.core_type<tc>, window_params = [{transform_indices = @transform_0, window_bounds = array<i64: 8, 5, 8>}, {transform_indices = @transform_1, window_bounds = array<i64: 8, 5, 8>}, {transform_indices = @transform_2, window_bounds = array<i64: 8, 5, 8>}, {transform_indices = @transform_3, window_bounds = array<i64: 8, 5, 8>}]} {
    %c0 = arith.constant 0 : index
    %c0_0 = arith.constant 0 : index
    %c0_1 = arith.constant 0 : index
    %0 = vector.load %arg1[%c0, %c0_0, %c0_1] : memref<8x5x8xbf16, #tpu.memory_space<vmem>>, vector<8x5x8xbf16>
    %c0_2 = arith.constant 0 : index
    %c0_3 = arith.constant 0 : index
    %c0_4 = arith.constant 0 : index
    %1 = vector.load %arg2[%c0_2, %c0_3, %c0_4] : memref<8x5x8xbf16, #tpu.memory_space<vmem>>, vector<8x5x8xbf16>
    %c0_5 = arith.constant 0 : index
    %c0_6 = arith.constant 0 : index
    %c0_7 = arith.constant 0 : index
    %2 = vector.load %arg3[%c0_5, %c0_6, %c0_7] : memref<8x5x8xbf16, #tpu.memory_space<vmem>>, vector<8x5x8xbf16>
    "tpu.trace_start"() <{level = 10 : i32, message = "gqd,gkd->gqk"}> : () -> ()
    %cst = arith.constant dense<0.000000e+00> : vector<8x5x5xf32>
    %3 = tpu.matmul %0, %1, %cst {dimension_numbers = #tpu.dot_dimension_numbers<[2], [2], [1], [1], [0, 0, 0, 1, 1, 1], [0], [0]>} : vector<8x5x8xbf16>, vector<8x5x8xbf16>, vector<8x5x5xf32> -> vector<8x5x5xf32>
    "tpu.trace_stop"() : () -> ()
    %cst_8 = arith.constant 0.353553385 : f32
    %4 = vector.broadcast %cst_8 : f32 to vector<8x5x5xf32>
    %5 = arith.mulf %3, %4 : vector<8x5x5xf32>
    %cst_9 = arith.constant dense<0xFF800000> : vector<8x5xf32>
    %6 = vector.multi_reduction <maximumf>, %5, %cst_9 [2] : vector<8x5x5xf32> to vector<8x5xf32>
    %7 = vector.shape_cast %6 : vector<8x5xf32> to vector<8x5x1xf32>
    %8 = vector.broadcast %7 : vector<8x5x1xf32> to vector<8x5x5xf32>
    %9 = arith.subf %5, %8 : vector<8x5x5xf32>
    %10 = math.exp %9 : vector<8x5x5xf32>
    %cst_10 = arith.constant dense<0.000000e+00> : vector<8x5xf32>
    %11 = vector.multi_reduction <add>, %10, %cst_10 [2] : vector<8x5x5xf32> to vector<8x5xf32>
    %12 = vector.shape_cast %11 : vector<8x5xf32> to vector<8x5x1xf32>
    %13 = tpu.reciprocal %12 {approx = true} : vector<8x5x1xf32> -> vector<8x5x1xf32>
    %14 = vector.broadcast %13 : vector<8x5x1xf32> to vector<8x5x5xf32>
    %15 = arith.mulf %10, %14 : vector<8x5x5xf32>
    %16 = arith.truncf %15 : vector<8x5x5xf32> to vector<8x5x5xbf16>
    "tpu.trace_start"() <{level = 10 : i32, message = "gqk,gkd->gqd"}> : () -> ()
    %cst_11 = arith.constant dense<0.000000e+00> : vector<8x5x8xf32>
    %17 = tpu.matmul %16, %2, %cst_11 {dimension_numbers = #tpu.dot_dimension_numbers<[2], [1], [1], [2], [0, 0, 0, 1, 1, 2], [0], [0]>} : vector<8x5x5xbf16>, vector<8x5x8xbf16>, vector<8x5x8xf32> -> vector<8x5x8xf32>
    "tpu.trace_stop"() : () -> ()
    %18 = arith.truncf %17 : vector<8x5x8xf32> to vector<8x5x8xbf16>
    %c0_12 = arith.constant 0 : index
    %c0_13 = arith.constant 0 : index
    %c0_14 = arith.constant 0 : index
    %19 = vector.load %arg4[%c0_12, %c0_13, %c0_14] : memref<8x5x8xbf16, #tpu.memory_space<vmem>>, vector<8x5x8xbf16>
    tpu.vector_store %arg4[%c0_12, %c0_13, %c0_14], %18 {strides = array<i32>} : memref<8x5x8xbf16, #tpu.memory_space<vmem>>, vector<8x5x8xbf16>,
    return
  }
  func.func @transform_0(%arg0: i32) -> (i32, i32, i32) {
    %c0_i32 = arith.constant 0 : i32
    %c0_i32_0 = arith.constant 0 : i32
    %c0_i32_1 = arith.constant 0 : i32
    return %arg0, %c0_i32, %c0_i32_0 : i32, i32, i32
  }
  func.func @transform_1(%arg0: i32) -> (i32, i32, i32) {
    %c0_i32 = arith.constant 0 : i32
    %c0_i32_0 = arith.constant 0 : i32
    %c0_i32_1 = arith.constant 0 : i32
    return %arg0, %c0_i32, %c0_i32_0 : i32, i32, i32
  }
  func.func @transform_2(%arg0: i32) -> (i32, i32, i32) {
    %c0_i32 = arith.constant 0 : i32
    %c0_i32_0 = arith.constant 0 : i32
    %c0_i32_1 = arith.constant 0 : i32
    return %arg0, %c0_i32, %c0_i32_0 : i32, i32, i32
  }
  func.func @transform_3(%arg0: i32) -> (i32, i32, i32) {
    %c0_i32 = arith.constant 0 : i32
    %c0_i32_0 = arith.constant 0 : i32
    %c0_i32_1 = arith.constant 0 : i32
    return %arg0, %c0_i32, %c0_i32_0 : i32, i32, i32
  }
}

module attributes {stable_mosaic.version = 11 : i64} {
  func.func @_linear_kernel(%arg0: i32, %arg1: i32, %arg2: i32, %arg3: memref<10x32xbf16, #tpu.memory_space<vmem>>, %arg4: memref<32x128xbf16, #tpu.memory_space<vmem>>, %arg5: memref<1x32xf32, #tpu.memory_space<vmem>>, %arg6: memref<1x32xf32, #tpu.memory_space<vmem>>, %arg7: memref<1x128xf32, #tpu.memory_space<vmem>>, %arg8: memref<10x128xbf16, #tpu.memory_space<vmem>>, %arg9: memref<10x128xf32, #tpu.memory_space<vmem>>) attributes {dimension_semantics = [#tpu.dimension_semantics<parallel>, #tpu.dimension_semantics<parallel>, #tpu.dimension_semantics<arbitrary>], iteration_bounds = array<i64: 1, 1, 1>, scalar_prefetch = 0 : i64, scratch_operands = 1 : i64, tpu.core_type = #tpu.core_type<tc>, window_params = [{transform_indices = @transform_0, window_bounds = array<i64: 10, 32>}, {transform_indices = @transform_1, window_bounds = array<i64: 32, 128>}, {transform_indices = @transform_2, window_bounds = array<i64: 1, 32>}, {transform_indices = @transform_3, window_bounds = array<i64: 1, 32>}, {transform_indices = @transform_4, window_bounds = array<i64: 1, 128>}, {transform_indices = @transform_5, window_bounds = array<i64: 10, 128>}]} {
    %c0_i32 = arith.constant 0 : i32
    %0 = arith.cmpi eq, %arg2, %c0_i32 : i32
    %1 = arith.extui %0 : i1 to i32
    %c0_i32_0 = arith.constant 0 : i32
    %2 = arith.cmpi ne, %1, %c0_i32_0 : i32
    scf.if %2 {
      %cst_19 = arith.constant 0.000000e+00 : f32
      %36 = vector.broadcast %cst_19 : f32 to vector<10x128xf32>
      %c0_20 = arith.constant 0 : index
      %c0_21 = arith.constant 0 : index
      %37 = vector.load %arg9[%c0_20, %c0_21] : memref<10x128xf32, #tpu.memory_space<vmem>>, vector<10x128xf32>
      tpu.vector_store %arg9[%c0_20, %c0_21], %36 {strides = array<i32>} : memref<10x128xf32, #tpu.memory_space<vmem>>, vector<10x128xf32>,
    } else {
    }
    %c0 = arith.constant 0 : index
    %c0_1 = arith.constant 0 : index
    %3 = vector.load %arg3[%c0, %c0_1] : memref<10x32xbf16, #tpu.memory_space<vmem>>, vector<10x32xbf16>
    %4 = arith.extf %3 : vector<10x32xbf16> to vector<10x32xf32>
    %cst = arith.constant dense<0.000000e+00> : vector<10xf32>
    %5 = vector.multi_reduction <add>, %4, %cst [1] : vector<10x32xf32> to vector<10xf32>
    %6 = vector.shape_cast %5 : vector<10xf32> to vector<10x1xf32>
    %cst_2 = arith.constant 3.200000e+01 : f32
    %7 = vector.broadcast %cst_2 : f32 to vector<10x1xf32>
    %8 = arith.divf %6, %7 : vector<10x1xf32>
    %9 = vector.broadcast %8 : vector<10x1xf32> to vector<10x32xf32>
    %10 = arith.subf %4, %9 : vector<10x32xf32>
    %11 = arith.mulf %10, %10 : vector<10x32xf32>
    %cst_3 = arith.constant dense<0.000000e+00> : vector<10xf32>
    %12 = vector.multi_reduction <add>, %11, %cst_3 [1] : vector<10x32xf32> to vector<10xf32>
    %13 = vector.shape_cast %12 : vector<10xf32> to vector<10x1xf32>
    %cst_4 = arith.constant 3.200000e+01 : f32
    %14 = vector.broadcast %cst_4 : f32 to vector<10x1xf32>
    %15 = arith.divf %13, %14 : vector<10x1xf32>
    %cst_5 = arith.constant 9.99999974E-6 : f32
    %16 = vector.broadcast %cst_5 : f32 to vector<10x1xf32>
    %17 = arith.addf %15, %16 : vector<10x1xf32>
    %18 = math.rsqrt %17 : vector<10x1xf32>
    %19 = vector.broadcast %18 : vector<10x1xf32> to vector<10x32xf32>
    %20 = arith.mulf %10, %19 : vector<10x32xf32>
    %c0_6 = arith.constant 0 : index
    %c0_7 = arith.constant 0 : index
    %21 = vector.load %arg5[%c0_6, %c0_7] : memref<1x32xf32, #tpu.memory_space<vmem>>, vector<1x32xf32>
    %22 = vector.broadcast %21 : vector<1x32xf32> to vector<10x32xf32>
    %23 = arith.mulf %20, %22 : vector<10x32xf32>
    %c0_8 = arith.constant 0 : index
    %c0_9 = arith.constant 0 : index
    %24 = vector.load %arg6[%c0_8, %c0_9] : memref<1x32xf32, #tpu.memory_space<vmem>>, vector<1x32xf32>
    %25 = vector.broadcast %24 : vector<1x32xf32> to vector<10x32xf32>
    %26 = arith.addf %23, %25 : vector<10x32xf32>
    %27 = arith.truncf %26 : vector<10x32xf32> to vector<10x32xbf16>
    %c0_10 = arith.constant 0 : index
    %c0_11 = arith.constant 0 : index
    %28 = vector.load %arg4[%c0_10, %c0_11] : memref<32x128xbf16, #tpu.memory_space<vmem>>, vector<32x128xbf16>
    %c0_12 = arith.constant 0 : index
    %c0_13 = arith.constant 0 : index
    %29 = vector.load %arg9[%c0_12, %c0_13] : memref<10x128xf32, #tpu.memory_space<vmem>>, vector<10x128xf32>
    %cst_14 = arith.constant dense<0.000000e+00> : vector<10x128xf32>
    %30 = tpu.matmul %27, %28, %cst_14 {dimension_numbers = #tpu.dot_dimension_numbers<[1], [0], [0], [1], [0, 0, 1, 1], [], []>} : vector<10x32xbf16>, vector<32x128xbf16>, vector<10x128xf32> -> vector<10x128xf32>
    %31 = arith.addf %29, %30 : vector<10x128xf32>
    %c0_15 = arith.constant 0 : index
    %c0_16 = arith.constant 0 : index
    %32 = vector.load %arg9[%c0_15, %c0_16] : memref<10x128xf32, #tpu.memory_space<vmem>>, vector<10x128xf32>
    tpu.vector_store %arg9[%c0_15, %c0_16], %31 {strides = array<i32>} : memref<10x128xf32, #tpu.memory_space<vmem>>, vector<10x128xf32>,
    %c0_i32_17 = arith.constant 0 : i32
    %33 = arith.cmpi eq, %arg2, %c0_i32_17 : i32
    %34 = arith.extui %33 : i1 to i32
    %c0_i32_18 = arith.constant 0 : i32
    %35 = arith.cmpi ne, %34, %c0_i32_18 : i32
    scf.if %35 {
      %c0_19 = arith.constant 0 : index
      %c0_20 = arith.constant 0 : index
      %36 = vector.load %arg9[%c0_19, %c0_20] : memref<10x128xf32, #tpu.memory_space<vmem>>, vector<10x128xf32>
      %c0_21 = arith.constant 0 : index
      %c0_22 = arith.constant 0 : index
      %37 = vector.load %arg7[%c0_21, %c0_22] : memref<1x128xf32, #tpu.memory_space<vmem>>, vector<1x128xf32>
      %38 = vector.broadcast %37 : vector<1x128xf32> to vector<10x128xf32>
      %39 = arith.addf %36, %38 : vector<10x128xf32>
      %cst_23 = arith.constant 5.000000e-01 : f32
      %40 = vector.broadcast %cst_23 : f32 to vector<10x128xf32>
      %41 = arith.mulf %40, %39 : vector<10x128xf32>
      %cst_24 = arith.constant 0.707106769 : f32
      %42 = vector.broadcast %cst_24 : f32 to vector<10x128xf32>
      %43 = arith.mulf %39, %42 : vector<10x128xf32>
      %44 = math.absf %43 : vector<10x128xf32>
      %cst_25 = arith.constant 0.327591091 : f32
      %45 = vector.broadcast %cst_25 : f32 to vector<10x128xf32>
      %46 = arith.mulf %45, %44 : vector<10x128xf32>
      %cst_26 = arith.constant 1.000000e+00 : f32
      %47 = vector.broadcast %cst_26 : f32 to vector<10x128xf32>
      %48 = arith.addf %47, %46 : vector<10x128xf32>
      %cst_27 = arith.constant 1.000000e+00 : f32
      %49 = vector.broadcast %cst_27 : f32 to vector<10x128xf32>
      %50 = arith.divf %49, %48 : vector<10x128xf32>
      %cst_28 = arith.constant 1.06140542 : f32
      %51 = vector.broadcast %cst_28 : f32 to vector<10x128xf32>
      %52 = arith.mulf %51, %50 : vector<10x128xf32>
      %cst_29 = arith.constant -1.45315206 : f32
      %53 = vector.broadcast %cst_29 : f32 to vector<10x128xf32>
      %54 = arith.addf %52, %53 : vector<10x128xf32>
      %55 = arith.mulf %54, %50 : vector<10x128xf32>
      %cst_30 = arith.constant 1.42141378 : f32
      %56 = vector.broadcast %cst_30 : f32 to vector<10x128xf32>
      %57 = arith.addf %55, %56 : vector<10x128xf32>
      %58 = arith.mulf %57, %50 : vector<10x128xf32>
      %cst_31 = arith.constant -0.284496725 : f32
      %59 = vector.broadcast %cst_31 : f32 to vector<10x128xf32>
      %60 = arith.addf %58, %59 : vector<10x128xf32>
      %61 = arith.mulf %60, %50 : vector<10x128xf32>
      %cst_32 = arith.constant 0.254829586 : f32
      %62 = vector.broadcast %cst_32 : f32 to vector<10x128xf32>
      %63 = arith.addf %61, %62 : vector<10x128xf32>
      %64 = arith.mulf %63, %50 : vector<10x128xf32>
      %cst_33 = arith.constant 0.000000e+00 : f32
      %65 = vector.broadcast %cst_33 : f32 to vector<10x128xf32>
      %66 = arith.subf %65, %44 : vector<10x128xf32>
      %67 = arith.mulf %66, %44 : vector<10x128xf32>
      %68 = math.exp %67 : vector<10x128xf32>
      %69 = arith.mulf %64, %68 : vector<10x128xf32>
      %cst_34 = arith.constant 1.000000e+00 : f32
      %70 = vector.broadcast %cst_34 : f32 to vector<10x128xf32>
      %71 = arith.subf %70, %69 : vector<10x128xf32>
      %cst_35 = arith.constant 0.000000e+00 : f32
      %72 = vector.broadcast %cst_35 : f32 to vector<10x128xf32>
      %73 = arith.cmpf oge, %43, %72 : vector<10x128xf32>
      %cst_36 = arith.constant 0.000000e+00 : f32
      %74 = vector.broadcast %cst_36 : f32 to vector<10x128xf32>
      %75 = arith.subf %74, %71 : vector<10x128xf32>
      %76 = arith.select %73, %71, %75 : vector<10x128xi1>, vector<10x128xf32>
      %cst_37 = arith.constant 1.000000e+00 : f32
      %77 = vector.broadcast %cst_37 : f32 to vector<10x128xf32>
      %78 = arith.addf %77, %76 : vector<10x128xf32>
      %79 = arith.mulf %41, %78 : vector<10x128xf32>
      %80 = arith.truncf %79 : vector<10x128xf32> to vector<10x128xbf16>
      %c0_38 = arith.constant 0 : index
      %c0_39 = arith.constant 0 : index
      %81 = vector.load %arg8[%c0_38, %c0_39] : memref<10x128xbf16, #tpu.memory_space<vmem>>, vector<10x128xbf16>
      tpu.vector_store %arg8[%c0_38, %c0_39], %80 {strides = array<i32>} : memref<10x128xbf16, #tpu.memory_space<vmem>>, vector<10x128xbf16>,
    } else {
    }
    return
  }
  func.func @transform_0(%arg0: i32, %arg1: i32, %arg2: i32) -> (i32, i32) {
    %c0_i32 = arith.constant 0 : i32
    return %arg0, %arg2 : i32, i32
  }
  func.func @transform_1(%arg0: i32, %arg1: i32, %arg2: i32) -> (i32, i32) {
    %c0_i32 = arith.constant 0 : i32
    return %arg2, %arg1 : i32, i32
  }
  func.func @transform_2(%arg0: i32, %arg1: i32, %arg2: i32) -> (i32, i32) {
    %c0_i32 = arith.constant 0 : i32
    %c0_i32_0 = arith.constant 0 : i32
    return %c0_i32, %arg2 : i32, i32
  }
  func.func @transform_3(%arg0: i32, %arg1: i32, %arg2: i32) -> (i32, i32) {
    %c0_i32 = arith.constant 0 : i32
    %c0_i32_0 = arith.constant 0 : i32
    return %c0_i32, %arg2 : i32, i32
  }
  func.func @transform_4(%arg0: i32, %arg1: i32, %arg2: i32) -> (i32, i32) {
    %c0_i32 = arith.constant 0 : i32
    %c0_i32_0 = arith.constant 0 : i32
    return %c0_i32, %arg1 : i32, i32
  }
  func.func @transform_5(%arg0: i32, %arg1: i32, %arg2: i32) -> (i32, i32) {
    %c0_i32 = arith.constant 0 : i32
    return %arg0, %arg1 : i32, i32
  }
}

module attributes {stable_mosaic.version = 11 : i64} {
  func.func @_linear_kernel(%arg0: i32, %arg1: i32, %arg2: i32, %arg3: memref<10x32xbf16, #tpu.memory_space<vmem>>, %arg4: memref<32x32xbf16, #tpu.memory_space<vmem>>, %arg5: memref<1x32xf32, #tpu.memory_space<vmem>>, %arg6: memref<10x32xbf16, #tpu.memory_space<vmem>>, %arg7: memref<10x32xbf16, #tpu.memory_space<vmem>>, %arg8: memref<10x32xf32, #tpu.memory_space<vmem>>) attributes {dimension_semantics = [#tpu.dimension_semantics<parallel>, #tpu.dimension_semantics<parallel>, #tpu.dimension_semantics<arbitrary>], iteration_bounds = array<i64: 1, 1, 1>, scalar_prefetch = 0 : i64, scratch_operands = 1 : i64, tpu.core_type = #tpu.core_type<tc>, window_params = [{transform_indices = @transform_0, window_bounds = array<i64: 10, 32>}, {transform_indices = @transform_1, window_bounds = array<i64: 32, 32>}, {transform_indices = @transform_2, window_bounds = array<i64: 1, 32>}, {transform_indices = @transform_3, window_bounds = array<i64: 10, 32>}, {transform_indices = @transform_4, window_bounds = array<i64: 10, 32>}]} {
    %c0_i32 = arith.constant 0 : i32
    %0 = arith.cmpi eq, %arg2, %c0_i32 : i32
    %1 = arith.extui %0 : i1 to i32
    %c0_i32_0 = arith.constant 0 : i32
    %2 = arith.cmpi ne, %1, %c0_i32_0 : i32
    scf.if %2 {
      %cst_10 = arith.constant 0.000000e+00 : f32
      %12 = vector.broadcast %cst_10 : f32 to vector<10x32xf32>
      %c0_11 = arith.constant 0 : index
      %c0_12 = arith.constant 0 : index
      %13 = vector.load %arg8[%c0_11, %c0_12] : memref<10x32xf32, #tpu.memory_space<vmem>>, vector<10x32xf32>
      tpu.vector_store %arg8[%c0_11, %c0_12], %12 {strides = array<i32>} : memref<10x32xf32, #tpu.memory_space<vmem>>, vector<10x32xf32>,
    } else {
    }
    %c0 = arith.constant 0 : index
    %c0_1 = arith.constant 0 : index
    %3 = vector.load %arg3[%c0, %c0_1] : memref<10x32xbf16, #tpu.memory_space<vmem>>, vector<10x32xbf16>
    %c0_2 = arith.constant 0 : index
    %c0_3 = arith.constant 0 : index
    %4 = vector.load %arg4[%c0_2, %c0_3] : memref<32x32xbf16, #tpu.memory_space<vmem>>, vector<32x32xbf16>
    %c0_4 = arith.constant 0 : index
    %c0_5 = arith.constant 0 : index
    %5 = vector.load %arg8[%c0_4, %c0_5] : memref<10x32xf32, #tpu.memory_space<vmem>>, vector<10x32xf32>
    %cst = arith.constant dense<0.000000e+00> : vector<10x32xf32>
    %6 = tpu.matmul %3, %4, %cst {dimension_numbers = #tpu.dot_dimension_numbers<[1], [0], [0], [1], [0, 0, 1, 1], [], []>} : vector<10x32xbf16>, vector<32x32xbf16>, vector<10x32xf32> -> vector<10x32xf32>
    %7 = arith.addf %5, %6 : vector<10x32xf32>
    %c0_6 = arith.constant 0 : index
    %c0_7 = arith.constant 0 : index
    %8 = vector.load %arg8[%c0_6, %c0_7] : memref<10x32xf32, #tpu.memory_space<vmem>>, vector<10x32xf32>
    tpu.vector_store %arg8[%c0_6, %c0_7], %7 {strides = array<i32>} : memref<10x32xf32, #tpu.memory_space<vmem>>, vector<10x32xf32>,
    %c0_i32_8 = arith.constant 0 : i32
    %9 = arith.cmpi eq, %arg2, %c0_i32_8 : i32
    %10 = arith.extui %9 : i1 to i32
    %c0_i32_9 = arith.constant 0 : i32
    %11 = arith.cmpi ne, %10, %c0_i32_9 : i32
    scf.if %11 {
      %c0_10 = arith.constant 0 : index
      %c0_11 = arith.constant 0 : index
      %12 = vector.load %arg8[%c0_10, %c0_11] : memref<10x32xf32, #tpu.memory_space<vmem>>, vector<10x32xf32>
      %c0_12 = arith.constant 0 : index
      %c0_13 = arith.constant 0 : index
      %13 = vector.load %arg5[%c0_12, %c0_13] : memref<1x32xf32, #tpu.memory_space<vmem>>, vector<1x32xf32>
      %14 = vector.broadcast %13 : vector<1x32xf32> to vector<10x32xf32>
      %15 = arith.addf %12, %14 : vector<10x32xf32>
      %c0_14 = arith.constant 0 : index
      %c0_15 = arith.constant 0 : index
      %16 = vector.load %arg6[%c0_14, %c0_15] : memref<10x32xbf16, #tpu.memory_space<vmem>>, vector<10x32xbf16>
      %17 = arith.extf %16 : vector<10x32xbf16> to vector<10x32xf32>
      %18 = arith.addf %15, %17 : vector<10x32xf32>
      %19 = arith.truncf %18 : vector<10x32xf32> to vector<10x32xbf16>
      %c0_16 = arith.constant 0 : index
      %c0_17 = arith.constant 0 : index
      %20 = vector.load %arg7[%c0_16, %c0_17] : memref<10x32xbf16, #tpu.memory_space<vmem>>, vector<10x32xbf16>
      tpu.vector_store %arg7[%c0_16, %c0_17], %19 {strides = array<i32>} : memref<10x32xbf16, #tpu.memory_space<vmem>>, vector<10x32xbf16>,
    } else {
    }
    return
  }
  func.func @transform_0(%arg0: i32, %arg1: i32, %arg2: i32) -> (i32, i32) {
    %c0_i32 = arith.constant 0 : i32
    return %arg0, %arg2 : i32, i32
  }
  func.func @transform_1(%arg0: i32, %arg1: i32, %arg2: i32) -> (i32, i32) {
    %c0_i32 = arith.constant 0 : i32
    return %arg2, %arg1 : i32, i32
  }
  func.func @transform_2(%arg0: i32, %arg1: i32, %arg2: i32) -> (i32, i32) {
    %c0_i32 = arith.constant 0 : i32
    %c0_i32_0 = arith.constant 0 : i32
    return %c0_i32, %arg1 : i32, i32
  }
  func.func @transform_3(%arg0: i32, %arg1: i32, %arg2: i32) -> (i32, i32) {
    %c0_i32 = arith.constant 0 : i32
    return %arg0, %arg1 : i32, i32
  }
  func.func @transform_4(%arg0: i32, %arg1: i32, %arg2: i32) -> (i32, i32) {
    %c0_i32 = arith.constant 0 : i32
    return %arg0, %arg1 : i32, i32
  }
}

module attributes {stable_mosaic.version = 11 : i64} {
  func.func @_linear_kernel(%arg0: i32, %arg1: i32, %arg2: i32, %arg3: memref<10x128xbf16, #tpu.memory_space<vmem>>, %arg4: memref<128x32xbf16, #tpu.memory_space<vmem>>, %arg5: memref<1x32xf32, #tpu.memory_space<vmem>>, %arg6: memref<10x32xbf16, #tpu.memory_space<vmem>>, %arg7: memref<10x32xbf16, #tpu.memory_space<vmem>>, %arg8: memref<10x32xf32, #tpu.memory_space<vmem>>) attributes {dimension_semantics = [#tpu.dimension_semantics<parallel>, #tpu.dimension_semantics<parallel>, #tpu.dimension_semantics<arbitrary>], iteration_bounds = array<i64: 1, 1, 1>, scalar_prefetch = 0 : i64, scratch_operands = 1 : i64, tpu.core_type = #tpu.core_type<tc>, window_params = [{transform_indices = @transform_0, window_bounds = array<i64: 10, 128>}, {transform_indices = @transform_1, window_bounds = array<i64: 128, 32>}, {transform_indices = @transform_2, window_bounds = array<i64: 1, 32>}, {transform_indices = @transform_3, window_bounds = array<i64: 10, 32>}, {transform_indices = @transform_4, window_bounds = array<i64: 10, 32>}]} {
    %c0_i32 = arith.constant 0 : i32
    %0 = arith.cmpi eq, %arg2, %c0_i32 : i32
    %1 = arith.extui %0 : i1 to i32
    %c0_i32_0 = arith.constant 0 : i32
    %2 = arith.cmpi ne, %1, %c0_i32_0 : i32
    scf.if %2 {
      %cst_10 = arith.constant 0.000000e+00 : f32
      %12 = vector.broadcast %cst_10 : f32 to vector<10x32xf32>
      %c0_11 = arith.constant 0 : index
      %c0_12 = arith.constant 0 : index
      %13 = vector.load %arg8[%c0_11, %c0_12] : memref<10x32xf32, #tpu.memory_space<vmem>>, vector<10x32xf32>
      tpu.vector_store %arg8[%c0_11, %c0_12], %12 {strides = array<i32>} : memref<10x32xf32, #tpu.memory_space<vmem>>, vector<10x32xf32>,
    } else {
    }
    %c0 = arith.constant 0 : index
    %c0_1 = arith.constant 0 : index
    %3 = vector.load %arg3[%c0, %c0_1] : memref<10x128xbf16, #tpu.memory_space<vmem>>, vector<10x128xbf16>
    %c0_2 = arith.constant 0 : index
    %c0_3 = arith.constant 0 : index
    %4 = vector.load %arg4[%c0_2, %c0_3] : memref<128x32xbf16, #tpu.memory_space<vmem>>, vector<128x32xbf16>
    %c0_4 = arith.constant 0 : index
    %c0_5 = arith.constant 0 : index
    %5 = vector.load %arg8[%c0_4, %c0_5] : memref<10x32xf32, #tpu.memory_space<vmem>>, vector<10x32xf32>
    %cst = arith.constant dense<0.000000e+00> : vector<10x32xf32>
    %6 = tpu.matmul %3, %4, %cst {dimension_numbers = #tpu.dot_dimension_numbers<[1], [0], [0], [1], [0, 0, 1, 1], [], []>} : vector<10x128xbf16>, vector<128x32xbf16>, vector<10x32xf32> -> vector<10x32xf32>
    %7 = arith.addf %5, %6 : vector<10x32xf32>
    %c0_6 = arith.constant 0 : index
    %c0_7 = arith.constant 0 : index
    %8 = vector.load %arg8[%c0_6, %c0_7] : memref<10x32xf32, #tpu.memory_space<vmem>>, vector<10x32xf32>
    tpu.vector_store %arg8[%c0_6, %c0_7], %7 {strides = array<i32>} : memref<10x32xf32, #tpu.memory_space<vmem>>, vector<10x32xf32>,
    %c0_i32_8 = arith.constant 0 : i32
    %9 = arith.cmpi eq, %arg2, %c0_i32_8 : i32
    %10 = arith.extui %9 : i1 to i32
    %c0_i32_9 = arith.constant 0 : i32
    %11 = arith.cmpi ne, %10, %c0_i32_9 : i32
    scf.if %11 {
      %c0_10 = arith.constant 0 : index
      %c0_11 = arith.constant 0 : index
      %12 = vector.load %arg8[%c0_10, %c0_11] : memref<10x32xf32, #tpu.memory_space<vmem>>, vector<10x32xf32>
      %c0_12 = arith.constant 0 : index
      %c0_13 = arith.constant 0 : index
      %13 = vector.load %arg5[%c0_12, %c0_13] : memref<1x32xf32, #tpu.memory_space<vmem>>, vector<1x32xf32>
      %14 = vector.broadcast %13 : vector<1x32xf32> to vector<10x32xf32>
      %15 = arith.addf %12, %14 : vector<10x32xf32>
      %c0_14 = arith.constant 0 : index
      %c0_15 = arith.constant 0 : index
      %16 = vector.load %arg6[%c0_14, %c0_15] : memref<10x32xbf16, #tpu.memory_space<vmem>>, vector<10x32xbf16>
      %17 = arith.extf %16 : vector<10x32xbf16> to vector<10x32xf32>
      %18 = arith.addf %15, %17 : vector<10x32xf32>
      %19 = arith.truncf %18 : vector<10x32xf32> to vector<10x32xbf16>
      %c0_16 = arith.constant 0 : index
      %c0_17 = arith.constant 0 : index
      %20 = vector.load %arg7[%c0_16, %c0_17] : memref<10x32xbf16, #tpu.memory_space<vmem>>, vector<10x32xbf16>
      tpu.vector_store %arg7[%c0_16, %c0_17], %19 {strides = array<i32>} : memref<10x32xbf16, #tpu.memory_space<vmem>>, vector<10x32xbf16>,
    } else {
    }
    return
  }
  func.func @transform_0(%arg0: i32, %arg1: i32, %arg2: i32) -> (i32, i32) {
    %c0_i32 = arith.constant 0 : i32
    return %arg0, %arg2 : i32, i32
  }
  func.func @transform_1(%arg0: i32, %arg1: i32, %arg2: i32) -> (i32, i32) {
    %c0_i32 = arith.constant 0 : i32
    return %arg2, %arg1 : i32, i32
  }
  func.func @transform_2(%arg0: i32, %arg1: i32, %arg2: i32) -> (i32, i32) {
    %c0_i32 = arith.constant 0 : i32
    %c0_i32_0 = arith.constant 0 : i32
    return %c0_i32, %arg1 : i32, i32
  }
  func.func @transform_3(%arg0: i32, %arg1: i32, %arg2: i32) -> (i32, i32) {
    %c0_i32 = arith.constant 0 : i32
    return %arg0, %arg1 : i32, i32
  }
  func.func @transform_4(%arg0: i32, %arg1: i32, %arg2: i32) -> (i32, i32) {
    %c0_i32 = arith.constant 0 : i32
    return %arg0, %arg1 : i32, i32
  }
}

module attributes {stable_mosaic.version = 11 : i64} {
  func.func @_linear_kernel(%arg0: i32, %arg1: i32, %arg2: i32, %arg3: memref<10x32xbf16, #tpu.memory_space<vmem>>, %arg4: memref<32x32xbf16, #tpu.memory_space<vmem>>, %arg5: memref<1x32xf32, #tpu.memory_space<vmem>>, %arg6: memref<1x32xf32, #tpu.memory_space<vmem>>, %arg7: memref<1x32xf32, #tpu.memory_space<vmem>>, %arg8: memref<10x32xbf16, #tpu.memory_space<vmem>>, %arg9: memref<10x32xf32, #tpu.memory_space<vmem>>) attributes {dimension_semantics = [#tpu.dimension_semantics<parallel>, #tpu.dimension_semantics<parallel>, #tpu.dimension_semantics<arbitrary>], iteration_bounds = array<i64: 1, 1, 1>, scalar_prefetch = 0 : i64, scratch_operands = 1 : i64, tpu.core_type = #tpu.core_type<tc>, window_params = [{transform_indices = @transform_0, window_bounds = array<i64: 10, 32>}, {transform_indices = @transform_1, window_bounds = array<i64: 32, 32>}, {transform_indices = @transform_2, window_bounds = array<i64: 1, 32>}, {transform_indices = @transform_3, window_bounds = array<i64: 1, 32>}, {transform_indices = @transform_4, window_bounds = array<i64: 1, 32>}, {transform_indices = @transform_5, window_bounds = array<i64: 10, 32>}]} {
    %c0_i32 = arith.constant 0 : i32
    %0 = arith.cmpi eq, %arg2, %c0_i32 : i32
    %1 = arith.extui %0 : i1 to i32
    %c0_i32_0 = arith.constant 0 : i32
    %2 = arith.cmpi ne, %1, %c0_i32_0 : i32
    scf.if %2 {
      %cst_19 = arith.constant 0.000000e+00 : f32
      %36 = vector.broadcast %cst_19 : f32 to vector<10x32xf32>
      %c0_20 = arith.constant 0 : index
      %c0_21 = arith.constant 0 : index
      %37 = vector.load %arg9[%c0_20, %c0_21] : memref<10x32xf32, #tpu.memory_space<vmem>>, vector<10x32xf32>
      tpu.vector_store %arg9[%c0_20, %c0_21], %36 {strides = array<i32>} : memref<10x32xf32, #tpu.memory_space<vmem>>, vector<10x32xf32>,
    } else {
    }
    %c0 = arith.constant 0 : index
    %c0_1 = arith.constant 0 : index
    %3 = vector.load %arg3[%c0, %c0_1] : memref<10x32xbf16, #tpu.memory_space<vmem>>, vector<10x32xbf16>
    %4 = arith.extf %3 : vector<10x32xbf16> to vector<10x32xf32>
    %cst = arith.constant dense<0.000000e+00> : vector<10xf32>
    %5 = vector.multi_reduction <add>, %4, %cst [1] : vector<10x32xf32> to vector<10xf32>
    %6 = vector.shape_cast %5 : vector<10xf32> to vector<10x1xf32>
    %cst_2 = arith.constant 3.200000e+01 : f32
    %7 = vector.broadcast %cst_2 : f32 to vector<10x1xf32>
    %8 = arith.divf %6, %7 : vector<10x1xf32>
    %9 = vector.broadcast %8 : vector<10x1xf32> to vector<10x32xf32>
    %10 = arith.subf %4, %9 : vector<10x32xf32>
    %11 = arith.mulf %10, %10 : vector<10x32xf32>
    %cst_3 = arith.constant dense<0.000000e+00> : vector<10xf32>
    %12 = vector.multi_reduction <add>, %11, %cst_3 [1] : vector<10x32xf32> to vector<10xf32>
    %13 = vector.shape_cast %12 : vector<10xf32> to vector<10x1xf32>
    %cst_4 = arith.constant 3.200000e+01 : f32
    %14 = vector.broadcast %cst_4 : f32 to vector<10x1xf32>
    %15 = arith.divf %13, %14 : vector<10x1xf32>
    %cst_5 = arith.constant 9.99999974E-6 : f32
    %16 = vector.broadcast %cst_5 : f32 to vector<10x1xf32>
    %17 = arith.addf %15, %16 : vector<10x1xf32>
    %18 = math.rsqrt %17 : vector<10x1xf32>
    %19 = vector.broadcast %18 : vector<10x1xf32> to vector<10x32xf32>
    %20 = arith.mulf %10, %19 : vector<10x32xf32>
    %c0_6 = arith.constant 0 : index
    %c0_7 = arith.constant 0 : index
    %21 = vector.load %arg5[%c0_6, %c0_7] : memref<1x32xf32, #tpu.memory_space<vmem>>, vector<1x32xf32>
    %22 = vector.broadcast %21 : vector<1x32xf32> to vector<10x32xf32>
    %23 = arith.mulf %20, %22 : vector<10x32xf32>
    %c0_8 = arith.constant 0 : index
    %c0_9 = arith.constant 0 : index
    %24 = vector.load %arg6[%c0_8, %c0_9] : memref<1x32xf32, #tpu.memory_space<vmem>>, vector<1x32xf32>
    %25 = vector.broadcast %24 : vector<1x32xf32> to vector<10x32xf32>
    %26 = arith.addf %23, %25 : vector<10x32xf32>
    %27 = arith.truncf %26 : vector<10x32xf32> to vector<10x32xbf16>
    %c0_10 = arith.constant 0 : index
    %c0_11 = arith.constant 0 : index
    %28 = vector.load %arg4[%c0_10, %c0_11] : memref<32x32xbf16, #tpu.memory_space<vmem>>, vector<32x32xbf16>
    %c0_12 = arith.constant 0 : index
    %c0_13 = arith.constant 0 : index
    %29 = vector.load %arg9[%c0_12, %c0_13] : memref<10x32xf32, #tpu.memory_space<vmem>>, vector<10x32xf32>
    %cst_14 = arith.constant dense<0.000000e+00> : vector<10x32xf32>
    %30 = tpu.matmul %27, %28, %cst_14 {dimension_numbers = #tpu.dot_dimension_numbers<[1], [0], [0], [1], [0, 0, 1, 1], [], []>} : vector<10x32xbf16>, vector<32x32xbf16>, vector<10x32xf32> -> vector<10x32xf32>
    %31 = arith.addf %29, %30 : vector<10x32xf32>
    %c0_15 = arith.constant 0 : index
    %c0_16 = arith.constant 0 : index
    %32 = vector.load %arg9[%c0_15, %c0_16] : memref<10x32xf32, #tpu.memory_space<vmem>>, vector<10x32xf32>
    tpu.vector_store %arg9[%c0_15, %c0_16], %31 {strides = array<i32>} : memref<10x32xf32, #tpu.memory_space<vmem>>, vector<10x32xf32>,
    %c0_i32_17 = arith.constant 0 : i32
    %33 = arith.cmpi eq, %arg2, %c0_i32_17 : i32
    %34 = arith.extui %33 : i1 to i32
    %c0_i32_18 = arith.constant 0 : i32
    %35 = arith.cmpi ne, %34, %c0_i32_18 : i32
    scf.if %35 {
      %c0_19 = arith.constant 0 : index
      %c0_20 = arith.constant 0 : index
      %36 = vector.load %arg9[%c0_19, %c0_20] : memref<10x32xf32, #tpu.memory_space<vmem>>, vector<10x32xf32>
      %c0_21 = arith.constant 0 : index
      %c0_22 = arith.constant 0 : index
      %37 = vector.load %arg7[%c0_21, %c0_22] : memref<1x32xf32, #tpu.memory_space<vmem>>, vector<1x32xf32>
      %38 = vector.broadcast %37 : vector<1x32xf32> to vector<10x32xf32>
      %39 = arith.addf %36, %38 : vector<10x32xf32>
      %40 = arith.truncf %39 : vector<10x32xf32> to vector<10x32xbf16>
      %c0_23 = arith.constant 0 : index
      %c0_24 = arith.constant 0 : index
      %41 = vector.load %arg8[%c0_23, %c0_24] : memref<10x32xbf16, #tpu.memory_space<vmem>>, vector<10x32xbf16>
      tpu.vector_store %arg8[%c0_23, %c0_24], %40 {strides = array<i32>} : memref<10x32xbf16, #tpu.memory_space<vmem>>, vector<10x32xbf16>,
    } else {
    }
    return
  }
  func.func @transform_0(%arg0: i32, %arg1: i32, %arg2: i32) -> (i32, i32) {
    %c0_i32 = arith.constant 0 : i32
    return %arg0, %arg2 : i32, i32
  }
  func.func @transform_1(%arg0: i32, %arg1: i32, %arg2: i32) -> (i32, i32) {
    %c0_i32 = arith.constant 0 : i32
    return %arg2, %arg1 : i32, i32
  }
  func.func @transform_2(%arg0: i32, %arg1: i32, %arg2: i32) -> (i32, i32) {
    %c0_i32 = arith.constant 0 : i32
    %c0_i32_0 = arith.constant 0 : i32
    return %c0_i32, %arg2 : i32, i32
  }
  func.func @transform_3(%arg0: i32, %arg1: i32, %arg2: i32) -> (i32, i32) {
    %c0_i32 = arith.constant 0 : i32
    %c0_i32_0 = arith.constant 0 : i32
    return %c0_i32, %arg2 : i32, i32
  }
  func.func @transform_4(%arg0: i32, %arg1: i32, %arg2: i32) -> (i32, i32) {
    %c0_i32 = arith.constant 0 : i32
    %c0_i32_0 = arith.constant 0 : i32
    return %c0_i32, %arg1 : i32, i32
  }
  func.func @transform_5(%arg0: i32, %arg1: i32, %arg2: i32) -> (i32, i32) {
    %c0_i32 = arith.constant 0 : i32
    return %arg0, %arg1 : i32, i32
  }
}

module attributes {stable_mosaic.version = 11 : i64} {
  func.func @_linear_kernel(%arg0: i32, %arg1: i32, %arg2: i32, %arg3: memref<34x32xbf16, #tpu.memory_space<vmem>>, %arg4: memref<32x96xbf16, #tpu.memory_space<vmem>>, %arg5: memref<1x32xf32, #tpu.memory_space<vmem>>, %arg6: memref<1x32xf32, #tpu.memory_space<vmem>>, %arg7: memref<34x96xbf16, #tpu.memory_space<vmem>>, %arg8: memref<34x96xf32, #tpu.memory_space<vmem>>) attributes {dimension_semantics = [#tpu.dimension_semantics<parallel>, #tpu.dimension_semantics<parallel>, #tpu.dimension_semantics<arbitrary>], iteration_bounds = array<i64: 1, 1, 1>, scalar_prefetch = 0 : i64, scratch_operands = 1 : i64, tpu.core_type = #tpu.core_type<tc>, window_params = [{transform_indices = @transform_0, window_bounds = array<i64: 34, 32>}, {transform_indices = @transform_1, window_bounds = array<i64: 32, 96>}, {transform_indices = @transform_2, window_bounds = array<i64: 1, 32>}, {transform_indices = @transform_3, window_bounds = array<i64: 1, 32>}, {transform_indices = @transform_4, window_bounds = array<i64: 34, 96>}]} {
    %c0_i32 = arith.constant 0 : i32
    %0 = arith.cmpi eq, %arg2, %c0_i32 : i32
    %1 = arith.extui %0 : i1 to i32
    %c0_i32_0 = arith.constant 0 : i32
    %2 = arith.cmpi ne, %1, %c0_i32_0 : i32
    scf.if %2 {
      %cst_19 = arith.constant 0.000000e+00 : f32
      %36 = vector.broadcast %cst_19 : f32 to vector<34x96xf32>
      %c0_20 = arith.constant 0 : index
      %c0_21 = arith.constant 0 : index
      %37 = vector.load %arg8[%c0_20, %c0_21] : memref<34x96xf32, #tpu.memory_space<vmem>>, vector<34x96xf32>
      tpu.vector_store %arg8[%c0_20, %c0_21], %36 {strides = array<i32>} : memref<34x96xf32, #tpu.memory_space<vmem>>, vector<34x96xf32>,
    } else {
    }
    %c0 = arith.constant 0 : index
    %c0_1 = arith.constant 0 : index
    %3 = vector.load %arg3[%c0, %c0_1] : memref<34x32xbf16, #tpu.memory_space<vmem>>, vector<34x32xbf16>
    %4 = arith.extf %3 : vector<34x32xbf16> to vector<34x32xf32>
    %cst = arith.constant dense<0.000000e+00> : vector<34xf32>
    %5 = vector.multi_reduction <add>, %4, %cst [1] : vector<34x32xf32> to vector<34xf32>
    %6 = vector.shape_cast %5 : vector<34xf32> to vector<34x1xf32>
    %cst_2 = arith.constant 3.200000e+01 : f32
    %7 = vector.broadcast %cst_2 : f32 to vector<34x1xf32>
    %8 = arith.divf %6, %7 : vector<34x1xf32>
    %9 = vector.broadcast %8 : vector<34x1xf32> to vector<34x32xf32>
    %10 = arith.subf %4, %9 : vector<34x32xf32>
    %11 = arith.mulf %10, %10 : vector<34x32xf32>
    %cst_3 = arith.constant dense<0.000000e+00> : vector<34xf32>
    %12 = vector.multi_reduction <add>, %11, %cst_3 [1] : vector<34x32xf32> to vector<34xf32>
    %13 = vector.shape_cast %12 : vector<34xf32> to vector<34x1xf32>
    %cst_4 = arith.constant 3.200000e+01 : f32
    %14 = vector.broadcast %cst_4 : f32 to vector<34x1xf32>
    %15 = arith.divf %13, %14 : vector<34x1xf32>
    %cst_5 = arith.constant 9.99999974E-6 : f32
    %16 = vector.broadcast %cst_5 : f32 to vector<34x1xf32>
    %17 = arith.addf %15, %16 : vector<34x1xf32>
    %18 = math.rsqrt %17 : vector<34x1xf32>
    %19 = vector.broadcast %18 : vector<34x1xf32> to vector<34x32xf32>
    %20 = arith.mulf %10, %19 : vector<34x32xf32>
    %c0_6 = arith.constant 0 : index
    %c0_7 = arith.constant 0 : index
    %21 = vector.load %arg5[%c0_6, %c0_7] : memref<1x32xf32, #tpu.memory_space<vmem>>, vector<1x32xf32>
    %22 = vector.broadcast %21 : vector<1x32xf32> to vector<34x32xf32>
    %23 = arith.mulf %20, %22 : vector<34x32xf32>
    %c0_8 = arith.constant 0 : index
    %c0_9 = arith.constant 0 : index
    %24 = vector.load %arg6[%c0_8, %c0_9] : memref<1x32xf32, #tpu.memory_space<vmem>>, vector<1x32xf32>
    %25 = vector.broadcast %24 : vector<1x32xf32> to vector<34x32xf32>
    %26 = arith.addf %23, %25 : vector<34x32xf32>
    %27 = arith.truncf %26 : vector<34x32xf32> to vector<34x32xbf16>
    %c0_10 = arith.constant 0 : index
    %c0_11 = arith.constant 0 : index
    %28 = vector.load %arg4[%c0_10, %c0_11] : memref<32x96xbf16, #tpu.memory_space<vmem>>, vector<32x96xbf16>
    %c0_12 = arith.constant 0 : index
    %c0_13 = arith.constant 0 : index
    %29 = vector.load %arg8[%c0_12, %c0_13] : memref<34x96xf32, #tpu.memory_space<vmem>>, vector<34x96xf32>
    %cst_14 = arith.constant dense<0.000000e+00> : vector<34x96xf32>
    %30 = tpu.matmul %27, %28, %cst_14 {dimension_numbers = #tpu.dot_dimension_numbers<[1], [0], [0], [1], [0, 0, 1, 1], [], []>} : vector<34x32xbf16>, vector<32x96xbf16>, vector<34x96xf32> -> vector<34x96xf32>
    %31 = arith.addf %29, %30 : vector<34x96xf32>
    %c0_15 = arith.constant 0 : index
    %c0_16 = arith.constant 0 : index
    %32 = vector.load %arg8[%c0_15, %c0_16] : memref<34x96xf32, #tpu.memory_space<vmem>>, vector<34x96xf32>
    tpu.vector_store %arg8[%c0_15, %c0_16], %31 {strides = array<i32>} : memref<34x96xf32, #tpu.memory_space<vmem>>, vector<34x96xf32>,
    %c0_i32_17 = arith.constant 0 : i32
    %33 = arith.cmpi eq, %arg2, %c0_i32_17 : i32
    %34 = arith.extui %33 : i1 to i32
    %c0_i32_18 = arith.constant 0 : i32
    %35 = arith.cmpi ne, %34, %c0_i32_18 : i32
    scf.if %35 {
      %c0_19 = arith.constant 0 : index
      %c0_20 = arith.constant 0 : index
      %36 = vector.load %arg8[%c0_19, %c0_20] : memref<34x96xf32, #tpu.memory_space<vmem>>, vector<34x96xf32>
      %37 = arith.truncf %36 : vector<34x96xf32> to vector<34x96xbf16>
      %c0_21 = arith.constant 0 : index
      %c0_22 = arith.constant 0 : index
      %38 = vector.load %arg7[%c0_21, %c0_22] : memref<34x96xbf16, #tpu.memory_space<vmem>>, vector<34x96xbf16>
      tpu.vector_store %arg7[%c0_21, %c0_22], %37 {strides = array<i32>} : memref<34x96xbf16, #tpu.memory_space<vmem>>, vector<34x96xbf16>,
    } else {
    }
    return
  }
  func.func @transform_0(%arg0: i32, %arg1: i32, %arg2: i32) -> (i32, i32) {
    %c0_i32 = arith.constant 0 : i32
    return %arg0, %arg2 : i32, i32
  }
  func.func @transform_1(%arg0: i32, %arg1: i32, %arg2: i32) -> (i32, i32) {
    %c0_i32 = arith.constant 0 : i32
    return %arg2, %arg1 : i32, i32
  }
  func.func @transform_2(%arg0: i32, %arg1: i32, %arg2: i32) -> (i32, i32) {
    %c0_i32 = arith.constant 0 : i32
    %c0_i32_0 = arith.constant 0 : i32
    return %c0_i32, %arg2 : i32, i32
  }
  func.func @transform_3(%arg0: i32, %arg1: i32, %arg2: i32) -> (i32, i32) {
    %c0_i32 = arith.constant 0 : i32
    %c0_i32_0 = arith.constant 0 : i32
    return %c0_i32, %arg2 : i32, i32
  }
  func.func @transform_4(%arg0: i32, %arg1: i32, %arg2: i32) -> (i32, i32) {
    %c0_i32 = arith.constant 0 : i32
    return %arg0, %arg1 : i32, i32
  }
}

module attributes {stable_mosaic.version = 11 : i64} {
  func.func @_attn_kernel(%arg0: i32, %arg1: memref<8x17x8xbf16, #tpu.memory_space<vmem>>, %arg2: memref<8x17x8xbf16, #tpu.memory_space<vmem>>, %arg3: memref<8x17x8xbf16, #tpu.memory_space<vmem>>, %arg4: memref<8x17x8xbf16, #tpu.memory_space<vmem>>) attributes {dimension_semantics = [#tpu.dimension_semantics<parallel>], iteration_bounds = array<i64: 1>, scalar_prefetch = 0 : i64, scratch_operands = 0 : i64, tpu.core_type = #tpu.core_type<tc>, window_params = [{transform_indices = @transform_0, window_bounds = array<i64: 8, 17, 8>}, {transform_indices = @transform_1, window_bounds = array<i64: 8, 17, 8>}, {transform_indices = @transform_2, window_bounds = array<i64: 8, 17, 8>}, {transform_indices = @transform_3, window_bounds = array<i64: 8, 17, 8>}]} {
    %c0 = arith.constant 0 : index
    %c0_0 = arith.constant 0 : index
    %c0_1 = arith.constant 0 : index
    %0 = vector.load %arg1[%c0, %c0_0, %c0_1] : memref<8x17x8xbf16, #tpu.memory_space<vmem>>, vector<8x17x8xbf16>
    %c0_2 = arith.constant 0 : index
    %c0_3 = arith.constant 0 : index
    %c0_4 = arith.constant 0 : index
    %1 = vector.load %arg2[%c0_2, %c0_3, %c0_4] : memref<8x17x8xbf16, #tpu.memory_space<vmem>>, vector<8x17x8xbf16>
    %c0_5 = arith.constant 0 : index
    %c0_6 = arith.constant 0 : index
    %c0_7 = arith.constant 0 : index
    %2 = vector.load %arg3[%c0_5, %c0_6, %c0_7] : memref<8x17x8xbf16, #tpu.memory_space<vmem>>, vector<8x17x8xbf16>
    "tpu.trace_start"() <{level = 10 : i32, message = "gqd,gkd->gqk"}> : () -> ()
    %cst = arith.constant dense<0.000000e+00> : vector<8x17x17xf32>
    %3 = tpu.matmul %0, %1, %cst {dimension_numbers = #tpu.dot_dimension_numbers<[2], [2], [1], [1], [0, 0, 0, 1, 1, 1], [0], [0]>} : vector<8x17x8xbf16>, vector<8x17x8xbf16>, vector<8x17x17xf32> -> vector<8x17x17xf32>
    "tpu.trace_stop"() : () -> ()
    %cst_8 = arith.constant 0.353553385 : f32
    %4 = vector.broadcast %cst_8 : f32 to vector<8x17x17xf32>
    %5 = arith.mulf %3, %4 : vector<8x17x17xf32>
    %cst_9 = arith.constant dense<0xFF800000> : vector<8x17xf32>
    %6 = vector.multi_reduction <maximumf>, %5, %cst_9 [2] : vector<8x17x17xf32> to vector<8x17xf32>
    %7 = vector.shape_cast %6 : vector<8x17xf32> to vector<8x17x1xf32>
    %8 = vector.broadcast %7 : vector<8x17x1xf32> to vector<8x17x17xf32>
    %9 = arith.subf %5, %8 : vector<8x17x17xf32>
    %10 = math.exp %9 : vector<8x17x17xf32>
    %cst_10 = arith.constant dense<0.000000e+00> : vector<8x17xf32>
    %11 = vector.multi_reduction <add>, %10, %cst_10 [2] : vector<8x17x17xf32> to vector<8x17xf32>
    %12 = vector.shape_cast %11 : vector<8x17xf32> to vector<8x17x1xf32>
    %13 = tpu.reciprocal %12 {approx = true} : vector<8x17x1xf32> -> vector<8x17x1xf32>
    %14 = vector.broadcast %13 : vector<8x17x1xf32> to vector<8x17x17xf32>
    %15 = arith.mulf %10, %14 : vector<8x17x17xf32>
    %16 = arith.truncf %15 : vector<8x17x17xf32> to vector<8x17x17xbf16>
    "tpu.trace_start"() <{level = 10 : i32, message = "gqk,gkd->gqd"}> : () -> ()
    %cst_11 = arith.constant dense<0.000000e+00> : vector<8x17x8xf32>
    %17 = tpu.matmul %16, %2, %cst_11 {dimension_numbers = #tpu.dot_dimension_numbers<[2], [1], [1], [2], [0, 0, 0, 1, 1, 2], [0], [0]>} : vector<8x17x17xbf16>, vector<8x17x8xbf16>, vector<8x17x8xf32> -> vector<8x17x8xf32>
    "tpu.trace_stop"() : () -> ()
    %18 = arith.truncf %17 : vector<8x17x8xf32> to vector<8x17x8xbf16>
    %c0_12 = arith.constant 0 : index
    %c0_13 = arith.constant 0 : index
    %c0_14 = arith.constant 0 : index
    %19 = vector.load %arg4[%c0_12, %c0_13, %c0_14] : memref<8x17x8xbf16, #tpu.memory_space<vmem>>, vector<8x17x8xbf16>
    tpu.vector_store %arg4[%c0_12, %c0_13, %c0_14], %18 {strides = array<i32>} : memref<8x17x8xbf16, #tpu.memory_space<vmem>>, vector<8x17x8xbf16>,
    return
  }
  func.func @transform_0(%arg0: i32) -> (i32, i32, i32) {
    %c0_i32 = arith.constant 0 : i32
    %c0_i32_0 = arith.constant 0 : i32
    %c0_i32_1 = arith.constant 0 : i32
    return %arg0, %c0_i32, %c0_i32_0 : i32, i32, i32
  }
  func.func @transform_1(%arg0: i32) -> (i32, i32, i32) {
    %c0_i32 = arith.constant 0 : i32
    %c0_i32_0 = arith.constant 0 : i32
    %c0_i32_1 = arith.constant 0 : i32
    return %arg0, %c0_i32, %c0_i32_0 : i32, i32, i32
  }
  func.func @transform_2(%arg0: i32) -> (i32, i32, i32) {
    %c0_i32 = arith.constant 0 : i32
    %c0_i32_0 = arith.constant 0 : i32
    %c0_i32_1 = arith.constant 0 : i32
    return %arg0, %c0_i32, %c0_i32_0 : i32, i32, i32
  }
  func.func @transform_3(%arg0: i32) -> (i32, i32, i32) {
    %c0_i32 = arith.constant 0 : i32
    %c0_i32_0 = arith.constant 0 : i32
    %c0_i32_1 = arith.constant 0 : i32
    return %arg0, %c0_i32, %c0_i32_0 : i32, i32, i32
  }
}

module attributes {stable_mosaic.version = 11 : i64} {
  func.func @_linear_kernel(%arg0: i32, %arg1: i32, %arg2: i32, %arg3: memref<34x32xbf16, #tpu.memory_space<vmem>>, %arg4: memref<32x32xbf16, #tpu.memory_space<vmem>>, %arg5: memref<1x32xf32, #tpu.memory_space<vmem>>, %arg6: memref<34x32xbf16, #tpu.memory_space<vmem>>, %arg7: memref<34x32xbf16, #tpu.memory_space<vmem>>, %arg8: memref<34x32xf32, #tpu.memory_space<vmem>>) attributes {dimension_semantics = [#tpu.dimension_semantics<parallel>, #tpu.dimension_semantics<parallel>, #tpu.dimension_semantics<arbitrary>], iteration_bounds = array<i64: 1, 1, 1>, scalar_prefetch = 0 : i64, scratch_operands = 1 : i64, tpu.core_type = #tpu.core_type<tc>, window_params = [{transform_indices = @transform_0, window_bounds = array<i64: 34, 32>}, {transform_indices = @transform_1, window_bounds = array<i64: 32, 32>}, {transform_indices = @transform_2, window_bounds = array<i64: 1, 32>}, {transform_indices = @transform_3, window_bounds = array<i64: 34, 32>}, {transform_indices = @transform_4, window_bounds = array<i64: 34, 32>}]} {
    %c0_i32 = arith.constant 0 : i32
    %0 = arith.cmpi eq, %arg2, %c0_i32 : i32
    %1 = arith.extui %0 : i1 to i32
    %c0_i32_0 = arith.constant 0 : i32
    %2 = arith.cmpi ne, %1, %c0_i32_0 : i32
    scf.if %2 {
      %cst_10 = arith.constant 0.000000e+00 : f32
      %12 = vector.broadcast %cst_10 : f32 to vector<34x32xf32>
      %c0_11 = arith.constant 0 : index
      %c0_12 = arith.constant 0 : index
      %13 = vector.load %arg8[%c0_11, %c0_12] : memref<34x32xf32, #tpu.memory_space<vmem>>, vector<34x32xf32>
      tpu.vector_store %arg8[%c0_11, %c0_12], %12 {strides = array<i32>} : memref<34x32xf32, #tpu.memory_space<vmem>>, vector<34x32xf32>,
    } else {
    }
    %c0 = arith.constant 0 : index
    %c0_1 = arith.constant 0 : index
    %3 = vector.load %arg3[%c0, %c0_1] : memref<34x32xbf16, #tpu.memory_space<vmem>>, vector<34x32xbf16>
    %c0_2 = arith.constant 0 : index
    %c0_3 = arith.constant 0 : index
    %4 = vector.load %arg4[%c0_2, %c0_3] : memref<32x32xbf16, #tpu.memory_space<vmem>>, vector<32x32xbf16>
    %c0_4 = arith.constant 0 : index
    %c0_5 = arith.constant 0 : index
    %5 = vector.load %arg8[%c0_4, %c0_5] : memref<34x32xf32, #tpu.memory_space<vmem>>, vector<34x32xf32>
    %cst = arith.constant dense<0.000000e+00> : vector<34x32xf32>
    %6 = tpu.matmul %3, %4, %cst {dimension_numbers = #tpu.dot_dimension_numbers<[1], [0], [0], [1], [0, 0, 1, 1], [], []>} : vector<34x32xbf16>, vector<32x32xbf16>, vector<34x32xf32> -> vector<34x32xf32>
    %7 = arith.addf %5, %6 : vector<34x32xf32>
    %c0_6 = arith.constant 0 : index
    %c0_7 = arith.constant 0 : index
    %8 = vector.load %arg8[%c0_6, %c0_7] : memref<34x32xf32, #tpu.memory_space<vmem>>, vector<34x32xf32>
    tpu.vector_store %arg8[%c0_6, %c0_7], %7 {strides = array<i32>} : memref<34x32xf32, #tpu.memory_space<vmem>>, vector<34x32xf32>,
    %c0_i32_8 = arith.constant 0 : i32
    %9 = arith.cmpi eq, %arg2, %c0_i32_8 : i32
    %10 = arith.extui %9 : i1 to i32
    %c0_i32_9 = arith.constant 0 : i32
    %11 = arith.cmpi ne, %10, %c0_i32_9 : i32
    scf.if %11 {
      %c0_10 = arith.constant 0 : index
      %c0_11 = arith.constant 0 : index
      %12 = vector.load %arg8[%c0_10, %c0_11] : memref<34x32xf32, #tpu.memory_space<vmem>>, vector<34x32xf32>
      %c0_12 = arith.constant 0 : index
      %c0_13 = arith.constant 0 : index
      %13 = vector.load %arg5[%c0_12, %c0_13] : memref<1x32xf32, #tpu.memory_space<vmem>>, vector<1x32xf32>
      %14 = vector.broadcast %13 : vector<1x32xf32> to vector<34x32xf32>
      %15 = arith.addf %12, %14 : vector<34x32xf32>
      %c0_14 = arith.constant 0 : index
      %c0_15 = arith.constant 0 : index
      %16 = vector.load %arg6[%c0_14, %c0_15] : memref<34x32xbf16, #tpu.memory_space<vmem>>, vector<34x32xbf16>
      %17 = arith.extf %16 : vector<34x32xbf16> to vector<34x32xf32>
      %18 = arith.addf %15, %17 : vector<34x32xf32>
      %19 = arith.truncf %18 : vector<34x32xf32> to vector<34x32xbf16>
      %c0_16 = arith.constant 0 : index
      %c0_17 = arith.constant 0 : index
      %20 = vector.load %arg7[%c0_16, %c0_17] : memref<34x32xbf16, #tpu.memory_space<vmem>>, vector<34x32xbf16>
      tpu.vector_store %arg7[%c0_16, %c0_17], %19 {strides = array<i32>} : memref<34x32xbf16, #tpu.memory_space<vmem>>, vector<34x32xbf16>,
    } else {
    }
    return
  }
  func.func @transform_0(%arg0: i32, %arg1: i32, %arg2: i32) -> (i32, i32) {
    %c0_i32 = arith.constant 0 : i32
    return %arg0, %arg2 : i32, i32
  }
  func.func @transform_1(%arg0: i32, %arg1: i32, %arg2: i32) -> (i32, i32) {
    %c0_i32 = arith.constant 0 : i32
    return %arg2, %arg1 : i32, i32
  }
  func.func @transform_2(%arg0: i32, %arg1: i32, %arg2: i32) -> (i32, i32) {
    %c0_i32 = arith.constant 0 : i32
    %c0_i32_0 = arith.constant 0 : i32
    return %c0_i32, %arg1 : i32, i32
  }
  func.func @transform_3(%arg0: i32, %arg1: i32, %arg2: i32) -> (i32, i32) {
    %c0_i32 = arith.constant 0 : i32
    return %arg0, %arg1 : i32, i32
  }
  func.func @transform_4(%arg0: i32, %arg1: i32, %arg2: i32) -> (i32, i32) {
    %c0_i32 = arith.constant 0 : i32
    return %arg0, %arg1 : i32, i32
  }
}

module attributes {stable_mosaic.version = 11 : i64} {
  func.func @_linear_kernel(%arg0: i32, %arg1: i32, %arg2: i32, %arg3: memref<34x32xbf16, #tpu.memory_space<vmem>>, %arg4: memref<32x128xbf16, #tpu.memory_space<vmem>>, %arg5: memref<1x32xf32, #tpu.memory_space<vmem>>, %arg6: memref<1x32xf32, #tpu.memory_space<vmem>>, %arg7: memref<1x128xf32, #tpu.memory_space<vmem>>, %arg8: memref<34x128xbf16, #tpu.memory_space<vmem>>, %arg9: memref<34x128xf32, #tpu.memory_space<vmem>>) attributes {dimension_semantics = [#tpu.dimension_semantics<parallel>, #tpu.dimension_semantics<parallel>, #tpu.dimension_semantics<arbitrary>], iteration_bounds = array<i64: 1, 1, 1>, scalar_prefetch = 0 : i64, scratch_operands = 1 : i64, tpu.core_type = #tpu.core_type<tc>, window_params = [{transform_indices = @transform_0, window_bounds = array<i64: 34, 32>}, {transform_indices = @transform_1, window_bounds = array<i64: 32, 128>}, {transform_indices = @transform_2, window_bounds = array<i64: 1, 32>}, {transform_indices = @transform_3, window_bounds = array<i64: 1, 32>}, {transform_indices = @transform_4, window_bounds = array<i64: 1, 128>}, {transform_indices = @transform_5, window_bounds = array<i64: 34, 128>}]} {
    %c0_i32 = arith.constant 0 : i32
    %0 = arith.cmpi eq, %arg2, %c0_i32 : i32
    %1 = arith.extui %0 : i1 to i32
    %c0_i32_0 = arith.constant 0 : i32
    %2 = arith.cmpi ne, %1, %c0_i32_0 : i32
    scf.if %2 {
      %cst_19 = arith.constant 0.000000e+00 : f32
      %36 = vector.broadcast %cst_19 : f32 to vector<34x128xf32>
      %c0_20 = arith.constant 0 : index
      %c0_21 = arith.constant 0 : index
      %37 = vector.load %arg9[%c0_20, %c0_21] : memref<34x128xf32, #tpu.memory_space<vmem>>, vector<34x128xf32>
      tpu.vector_store %arg9[%c0_20, %c0_21], %36 {strides = array<i32>} : memref<34x128xf32, #tpu.memory_space<vmem>>, vector<34x128xf32>,
    } else {
    }
    %c0 = arith.constant 0 : index
    %c0_1 = arith.constant 0 : index
    %3 = vector.load %arg3[%c0, %c0_1] : memref<34x32xbf16, #tpu.memory_space<vmem>>, vector<34x32xbf16>
    %4 = arith.extf %3 : vector<34x32xbf16> to vector<34x32xf32>
    %cst = arith.constant dense<0.000000e+00> : vector<34xf32>
    %5 = vector.multi_reduction <add>, %4, %cst [1] : vector<34x32xf32> to vector<34xf32>
    %6 = vector.shape_cast %5 : vector<34xf32> to vector<34x1xf32>
    %cst_2 = arith.constant 3.200000e+01 : f32
    %7 = vector.broadcast %cst_2 : f32 to vector<34x1xf32>
    %8 = arith.divf %6, %7 : vector<34x1xf32>
    %9 = vector.broadcast %8 : vector<34x1xf32> to vector<34x32xf32>
    %10 = arith.subf %4, %9 : vector<34x32xf32>
    %11 = arith.mulf %10, %10 : vector<34x32xf32>
    %cst_3 = arith.constant dense<0.000000e+00> : vector<34xf32>
    %12 = vector.multi_reduction <add>, %11, %cst_3 [1] : vector<34x32xf32> to vector<34xf32>
    %13 = vector.shape_cast %12 : vector<34xf32> to vector<34x1xf32>
    %cst_4 = arith.constant 3.200000e+01 : f32
    %14 = vector.broadcast %cst_4 : f32 to vector<34x1xf32>
    %15 = arith.divf %13, %14 : vector<34x1xf32>
    %cst_5 = arith.constant 9.99999974E-6 : f32
    %16 = vector.broadcast %cst_5 : f32 to vector<34x1xf32>
    %17 = arith.addf %15, %16 : vector<34x1xf32>
    %18 = math.rsqrt %17 : vector<34x1xf32>
    %19 = vector.broadcast %18 : vector<34x1xf32> to vector<34x32xf32>
    %20 = arith.mulf %10, %19 : vector<34x32xf32>
    %c0_6 = arith.constant 0 : index
    %c0_7 = arith.constant 0 : index
    %21 = vector.load %arg5[%c0_6, %c0_7] : memref<1x32xf32, #tpu.memory_space<vmem>>, vector<1x32xf32>
    %22 = vector.broadcast %21 : vector<1x32xf32> to vector<34x32xf32>
    %23 = arith.mulf %20, %22 : vector<34x32xf32>
    %c0_8 = arith.constant 0 : index
    %c0_9 = arith.constant 0 : index
    %24 = vector.load %arg6[%c0_8, %c0_9] : memref<1x32xf32, #tpu.memory_space<vmem>>, vector<1x32xf32>
    %25 = vector.broadcast %24 : vector<1x32xf32> to vector<34x32xf32>
    %26 = arith.addf %23, %25 : vector<34x32xf32>
    %27 = arith.truncf %26 : vector<34x32xf32> to vector<34x32xbf16>
    %c0_10 = arith.constant 0 : index
    %c0_11 = arith.constant 0 : index
    %28 = vector.load %arg4[%c0_10, %c0_11] : memref<32x128xbf16, #tpu.memory_space<vmem>>, vector<32x128xbf16>
    %c0_12 = arith.constant 0 : index
    %c0_13 = arith.constant 0 : index
    %29 = vector.load %arg9[%c0_12, %c0_13] : memref<34x128xf32, #tpu.memory_space<vmem>>, vector<34x128xf32>
    %cst_14 = arith.constant dense<0.000000e+00> : vector<34x128xf32>
    %30 = tpu.matmul %27, %28, %cst_14 {dimension_numbers = #tpu.dot_dimension_numbers<[1], [0], [0], [1], [0, 0, 1, 1], [], []>} : vector<34x32xbf16>, vector<32x128xbf16>, vector<34x128xf32> -> vector<34x128xf32>
    %31 = arith.addf %29, %30 : vector<34x128xf32>
    %c0_15 = arith.constant 0 : index
    %c0_16 = arith.constant 0 : index
    %32 = vector.load %arg9[%c0_15, %c0_16] : memref<34x128xf32, #tpu.memory_space<vmem>>, vector<34x128xf32>
    tpu.vector_store %arg9[%c0_15, %c0_16], %31 {strides = array<i32>} : memref<34x128xf32, #tpu.memory_space<vmem>>, vector<34x128xf32>,
    %c0_i32_17 = arith.constant 0 : i32
    %33 = arith.cmpi eq, %arg2, %c0_i32_17 : i32
    %34 = arith.extui %33 : i1 to i32
    %c0_i32_18 = arith.constant 0 : i32
    %35 = arith.cmpi ne, %34, %c0_i32_18 : i32
    scf.if %35 {
      %c0_19 = arith.constant 0 : index
      %c0_20 = arith.constant 0 : index
      %36 = vector.load %arg9[%c0_19, %c0_20] : memref<34x128xf32, #tpu.memory_space<vmem>>, vector<34x128xf32>
      %c0_21 = arith.constant 0 : index
      %c0_22 = arith.constant 0 : index
      %37 = vector.load %arg7[%c0_21, %c0_22] : memref<1x128xf32, #tpu.memory_space<vmem>>, vector<1x128xf32>
      %38 = vector.broadcast %37 : vector<1x128xf32> to vector<34x128xf32>
      %39 = arith.addf %36, %38 : vector<34x128xf32>
      %cst_23 = arith.constant 5.000000e-01 : f32
      %40 = vector.broadcast %cst_23 : f32 to vector<34x128xf32>
      %41 = arith.mulf %40, %39 : vector<34x128xf32>
      %cst_24 = arith.constant 0.707106769 : f32
      %42 = vector.broadcast %cst_24 : f32 to vector<34x128xf32>
      %43 = arith.mulf %39, %42 : vector<34x128xf32>
      %44 = math.absf %43 : vector<34x128xf32>
      %cst_25 = arith.constant 0.327591091 : f32
      %45 = vector.broadcast %cst_25 : f32 to vector<34x128xf32>
      %46 = arith.mulf %45, %44 : vector<34x128xf32>
      %cst_26 = arith.constant 1.000000e+00 : f32
      %47 = vector.broadcast %cst_26 : f32 to vector<34x128xf32>
      %48 = arith.addf %47, %46 : vector<34x128xf32>
      %cst_27 = arith.constant 1.000000e+00 : f32
      %49 = vector.broadcast %cst_27 : f32 to vector<34x128xf32>
      %50 = arith.divf %49, %48 : vector<34x128xf32>
      %cst_28 = arith.constant 1.06140542 : f32
      %51 = vector.broadcast %cst_28 : f32 to vector<34x128xf32>
      %52 = arith.mulf %51, %50 : vector<34x128xf32>
      %cst_29 = arith.constant -1.45315206 : f32
      %53 = vector.broadcast %cst_29 : f32 to vector<34x128xf32>
      %54 = arith.addf %52, %53 : vector<34x128xf32>
      %55 = arith.mulf %54, %50 : vector<34x128xf32>
      %cst_30 = arith.constant 1.42141378 : f32
      %56 = vector.broadcast %cst_30 : f32 to vector<34x128xf32>
      %57 = arith.addf %55, %56 : vector<34x128xf32>
      %58 = arith.mulf %57, %50 : vector<34x128xf32>
      %cst_31 = arith.constant -0.284496725 : f32
      %59 = vector.broadcast %cst_31 : f32 to vector<34x128xf32>
      %60 = arith.addf %58, %59 : vector<34x128xf32>
      %61 = arith.mulf %60, %50 : vector<34x128xf32>
      %cst_32 = arith.constant 0.254829586 : f32
      %62 = vector.broadcast %cst_32 : f32 to vector<34x128xf32>
      %63 = arith.addf %61, %62 : vector<34x128xf32>
      %64 = arith.mulf %63, %50 : vector<34x128xf32>
      %cst_33 = arith.constant 0.000000e+00 : f32
      %65 = vector.broadcast %cst_33 : f32 to vector<34x128xf32>
      %66 = arith.subf %65, %44 : vector<34x128xf32>
      %67 = arith.mulf %66, %44 : vector<34x128xf32>
      %68 = math.exp %67 : vector<34x128xf32>
      %69 = arith.mulf %64, %68 : vector<34x128xf32>
      %cst_34 = arith.constant 1.000000e+00 : f32
      %70 = vector.broadcast %cst_34 : f32 to vector<34x128xf32>
      %71 = arith.subf %70, %69 : vector<34x128xf32>
      %cst_35 = arith.constant 0.000000e+00 : f32
      %72 = vector.broadcast %cst_35 : f32 to vector<34x128xf32>
      %73 = arith.cmpf oge, %43, %72 : vector<34x128xf32>
      %cst_36 = arith.constant 0.000000e+00 : f32
      %74 = vector.broadcast %cst_36 : f32 to vector<34x128xf32>
      %75 = arith.subf %74, %71 : vector<34x128xf32>
      %76 = arith.select %73, %71, %75 : vector<34x128xi1>, vector<34x128xf32>
      %cst_37 = arith.constant 1.000000e+00 : f32
      %77 = vector.broadcast %cst_37 : f32 to vector<34x128xf32>
      %78 = arith.addf %77, %76 : vector<34x128xf32>
      %79 = arith.mulf %41, %78 : vector<34x128xf32>
      %80 = arith.truncf %79 : vector<34x128xf32> to vector<34x128xbf16>
      %c0_38 = arith.constant 0 : index
      %c0_39 = arith.constant 0 : index
      %81 = vector.load %arg8[%c0_38, %c0_39] : memref<34x128xbf16, #tpu.memory_space<vmem>>, vector<34x128xbf16>
      tpu.vector_store %arg8[%c0_38, %c0_39], %80 {strides = array<i32>} : memref<34x128xbf16, #tpu.memory_space<vmem>>, vector<34x128xbf16>,
    } else {
    }
    return
  }
  func.func @transform_0(%arg0: i32, %arg1: i32, %arg2: i32) -> (i32, i32) {
    %c0_i32 = arith.constant 0 : i32
    return %arg0, %arg2 : i32, i32
  }
  func.func @transform_1(%arg0: i32, %arg1: i32, %arg2: i32) -> (i32, i32) {
    %c0_i32 = arith.constant 0 : i32
    return %arg2, %arg1 : i32, i32
  }
  func.func @transform_2(%arg0: i32, %arg1: i32, %arg2: i32) -> (i32, i32) {
    %c0_i32 = arith.constant 0 : i32
    %c0_i32_0 = arith.constant 0 : i32
    return %c0_i32, %arg2 : i32, i32
  }
  func.func @transform_3(%arg0: i32, %arg1: i32, %arg2: i32) -> (i32, i32) {
    %c0_i32 = arith.constant 0 : i32
    %c0_i32_0 = arith.constant 0 : i32
    return %c0_i32, %arg2 : i32, i32
  }
  func.func @transform_4(%arg0: i32, %arg1: i32, %arg2: i32) -> (i32, i32) {
    %c0_i32 = arith.constant 0 : i32
    %c0_i32_0 = arith.constant 0 : i32
    return %c0_i32, %arg1 : i32, i32
  }
  func.func @transform_5(%arg0: i32, %arg1: i32, %arg2: i32) -> (i32, i32) {
    %c0_i32 = arith.constant 0 : i32
    return %arg0, %arg1 : i32, i32
  }
}

module attributes {stable_mosaic.version = 11 : i64} {
  func.func @_linear_kernel(%arg0: i32, %arg1: i32, %arg2: i32, %arg3: memref<34x128xbf16, #tpu.memory_space<vmem>>, %arg4: memref<128x32xbf16, #tpu.memory_space<vmem>>, %arg5: memref<1x32xf32, #tpu.memory_space<vmem>>, %arg6: memref<34x32xbf16, #tpu.memory_space<vmem>>, %arg7: memref<34x32xbf16, #tpu.memory_space<vmem>>, %arg8: memref<34x32xf32, #tpu.memory_space<vmem>>) attributes {dimension_semantics = [#tpu.dimension_semantics<parallel>, #tpu.dimension_semantics<parallel>, #tpu.dimension_semantics<arbitrary>], iteration_bounds = array<i64: 1, 1, 1>, scalar_prefetch = 0 : i64, scratch_operands = 1 : i64, tpu.core_type = #tpu.core_type<tc>, window_params = [{transform_indices = @transform_0, window_bounds = array<i64: 34, 128>}, {transform_indices = @transform_1, window_bounds = array<i64: 128, 32>}, {transform_indices = @transform_2, window_bounds = array<i64: 1, 32>}, {transform_indices = @transform_3, window_bounds = array<i64: 34, 32>}, {transform_indices = @transform_4, window_bounds = array<i64: 34, 32>}]} {
    %c0_i32 = arith.constant 0 : i32
    %0 = arith.cmpi eq, %arg2, %c0_i32 : i32
    %1 = arith.extui %0 : i1 to i32
    %c0_i32_0 = arith.constant 0 : i32
    %2 = arith.cmpi ne, %1, %c0_i32_0 : i32
    scf.if %2 {
      %cst_10 = arith.constant 0.000000e+00 : f32
      %12 = vector.broadcast %cst_10 : f32 to vector<34x32xf32>
      %c0_11 = arith.constant 0 : index
      %c0_12 = arith.constant 0 : index
      %13 = vector.load %arg8[%c0_11, %c0_12] : memref<34x32xf32, #tpu.memory_space<vmem>>, vector<34x32xf32>
      tpu.vector_store %arg8[%c0_11, %c0_12], %12 {strides = array<i32>} : memref<34x32xf32, #tpu.memory_space<vmem>>, vector<34x32xf32>,
    } else {
    }
    %c0 = arith.constant 0 : index
    %c0_1 = arith.constant 0 : index
    %3 = vector.load %arg3[%c0, %c0_1] : memref<34x128xbf16, #tpu.memory_space<vmem>>, vector<34x128xbf16>
    %c0_2 = arith.constant 0 : index
    %c0_3 = arith.constant 0 : index
    %4 = vector.load %arg4[%c0_2, %c0_3] : memref<128x32xbf16, #tpu.memory_space<vmem>>, vector<128x32xbf16>
    %c0_4 = arith.constant 0 : index
    %c0_5 = arith.constant 0 : index
    %5 = vector.load %arg8[%c0_4, %c0_5] : memref<34x32xf32, #tpu.memory_space<vmem>>, vector<34x32xf32>
    %cst = arith.constant dense<0.000000e+00> : vector<34x32xf32>
    %6 = tpu.matmul %3, %4, %cst {dimension_numbers = #tpu.dot_dimension_numbers<[1], [0], [0], [1], [0, 0, 1, 1], [], []>} : vector<34x128xbf16>, vector<128x32xbf16>, vector<34x32xf32> -> vector<34x32xf32>
    %7 = arith.addf %5, %6 : vector<34x32xf32>
    %c0_6 = arith.constant 0 : index
    %c0_7 = arith.constant 0 : index
    %8 = vector.load %arg8[%c0_6, %c0_7] : memref<34x32xf32, #tpu.memory_space<vmem>>, vector<34x32xf32>
    tpu.vector_store %arg8[%c0_6, %c0_7], %7 {strides = array<i32>} : memref<34x32xf32, #tpu.memory_space<vmem>>, vector<34x32xf32>,
    %c0_i32_8 = arith.constant 0 : i32
    %9 = arith.cmpi eq, %arg2, %c0_i32_8 : i32
    %10 = arith.extui %9 : i1 to i32
    %c0_i32_9 = arith.constant 0 : i32
    %11 = arith.cmpi ne, %10, %c0_i32_9 : i32
    scf.if %11 {
      %c0_10 = arith.constant 0 : index
      %c0_11 = arith.constant 0 : index
      %12 = vector.load %arg8[%c0_10, %c0_11] : memref<34x32xf32, #tpu.memory_space<vmem>>, vector<34x32xf32>
      %c0_12 = arith.constant 0 : index
      %c0_13 = arith.constant 0 : index
      %13 = vector.load %arg5[%c0_12, %c0_13] : memref<1x32xf32, #tpu.memory_space<vmem>>, vector<1x32xf32>
      %14 = vector.broadcast %13 : vector<1x32xf32> to vector<34x32xf32>
      %15 = arith.addf %12, %14 : vector<34x32xf32>
      %c0_14 = arith.constant 0 : index
      %c0_15 = arith.constant 0 : index
      %16 = vector.load %arg6[%c0_14, %c0_15] : memref<34x32xbf16, #tpu.memory_space<vmem>>, vector<34x32xbf16>
      %17 = arith.extf %16 : vector<34x32xbf16> to vector<34x32xf32>
      %18 = arith.addf %15, %17 : vector<34x32xf32>
      %19 = arith.truncf %18 : vector<34x32xf32> to vector<34x32xbf16>
      %c0_16 = arith.constant 0 : index
      %c0_17 = arith.constant 0 : index
      %20 = vector.load %arg7[%c0_16, %c0_17] : memref<34x32xbf16, #tpu.memory_space<vmem>>, vector<34x32xbf16>
      tpu.vector_store %arg7[%c0_16, %c0_17], %19 {strides = array<i32>} : memref<34x32xbf16, #tpu.memory_space<vmem>>, vector<34x32xbf16>,
    } else {
    }
    return
  }
  func.func @transform_0(%arg0: i32, %arg1: i32, %arg2: i32) -> (i32, i32) {
    %c0_i32 = arith.constant 0 : i32
    return %arg0, %arg2 : i32, i32
  }
  func.func @transform_1(%arg0: i32, %arg1: i32, %arg2: i32) -> (i32, i32) {
    %c0_i32 = arith.constant 0 : i32
    return %arg2, %arg1 : i32, i32
  }
  func.func @transform_2(%arg0: i32, %arg1: i32, %arg2: i32) -> (i32, i32) {
    %c0_i32 = arith.constant 0 : i32
    %c0_i32_0 = arith.constant 0 : i32
    return %c0_i32, %arg1 : i32, i32
  }
  func.func @transform_3(%arg0: i32, %arg1: i32, %arg2: i32) -> (i32, i32) {
    %c0_i32 = arith.constant 0 : i32
    return %arg0, %arg1 : i32, i32
  }
  func.func @transform_4(%arg0: i32, %arg1: i32, %arg2: i32) -> (i32, i32) {
    %c0_i32 = arith.constant 0 : i32
    return %arg0, %arg1 : i32, i32
  }
}

module attributes {stable_mosaic.version = 11 : i64} {
  func.func @_linear_kernel(%arg0: i32, %arg1: i32, %arg2: i32, %arg3: memref<34x32xbf16, #tpu.memory_space<vmem>>, %arg4: memref<32x64xbf16, #tpu.memory_space<vmem>>, %arg5: memref<1x32xf32, #tpu.memory_space<vmem>>, %arg6: memref<1x32xf32, #tpu.memory_space<vmem>>, %arg7: memref<1x64xf32, #tpu.memory_space<vmem>>, %arg8: memref<34x64xf32, #tpu.memory_space<vmem>>, %arg9: memref<34x64xf32, #tpu.memory_space<vmem>>) attributes {dimension_semantics = [#tpu.dimension_semantics<parallel>, #tpu.dimension_semantics<parallel>, #tpu.dimension_semantics<arbitrary>], iteration_bounds = array<i64: 1, 1, 1>, scalar_prefetch = 0 : i64, scratch_operands = 1 : i64, tpu.core_type = #tpu.core_type<tc>, window_params = [{transform_indices = @transform_0, window_bounds = array<i64: 34, 32>}, {transform_indices = @transform_1, window_bounds = array<i64: 32, 64>}, {transform_indices = @transform_2, window_bounds = array<i64: 1, 32>}, {transform_indices = @transform_3, window_bounds = array<i64: 1, 32>}, {transform_indices = @transform_4, window_bounds = array<i64: 1, 64>}, {transform_indices = @transform_5, window_bounds = array<i64: 34, 64>}]} {
    %c0_i32 = arith.constant 0 : i32
    %0 = arith.cmpi eq, %arg2, %c0_i32 : i32
    %1 = arith.extui %0 : i1 to i32
    %c0_i32_0 = arith.constant 0 : i32
    %2 = arith.cmpi ne, %1, %c0_i32_0 : i32
    scf.if %2 {
      %cst_19 = arith.constant 0.000000e+00 : f32
      %36 = vector.broadcast %cst_19 : f32 to vector<34x64xf32>
      %c0_20 = arith.constant 0 : index
      %c0_21 = arith.constant 0 : index
      %37 = vector.load %arg9[%c0_20, %c0_21] : memref<34x64xf32, #tpu.memory_space<vmem>>, vector<34x64xf32>
      tpu.vector_store %arg9[%c0_20, %c0_21], %36 {strides = array<i32>} : memref<34x64xf32, #tpu.memory_space<vmem>>, vector<34x64xf32>,
    } else {
    }
    %c0 = arith.constant 0 : index
    %c0_1 = arith.constant 0 : index
    %3 = vector.load %arg3[%c0, %c0_1] : memref<34x32xbf16, #tpu.memory_space<vmem>>, vector<34x32xbf16>
    %4 = arith.extf %3 : vector<34x32xbf16> to vector<34x32xf32>
    %cst = arith.constant dense<0.000000e+00> : vector<34xf32>
    %5 = vector.multi_reduction <add>, %4, %cst [1] : vector<34x32xf32> to vector<34xf32>
    %6 = vector.shape_cast %5 : vector<34xf32> to vector<34x1xf32>
    %cst_2 = arith.constant 3.200000e+01 : f32
    %7 = vector.broadcast %cst_2 : f32 to vector<34x1xf32>
    %8 = arith.divf %6, %7 : vector<34x1xf32>
    %9 = vector.broadcast %8 : vector<34x1xf32> to vector<34x32xf32>
    %10 = arith.subf %4, %9 : vector<34x32xf32>
    %11 = arith.mulf %10, %10 : vector<34x32xf32>
    %cst_3 = arith.constant dense<0.000000e+00> : vector<34xf32>
    %12 = vector.multi_reduction <add>, %11, %cst_3 [1] : vector<34x32xf32> to vector<34xf32>
    %13 = vector.shape_cast %12 : vector<34xf32> to vector<34x1xf32>
    %cst_4 = arith.constant 3.200000e+01 : f32
    %14 = vector.broadcast %cst_4 : f32 to vector<34x1xf32>
    %15 = arith.divf %13, %14 : vector<34x1xf32>
    %cst_5 = arith.constant 9.99999974E-6 : f32
    %16 = vector.broadcast %cst_5 : f32 to vector<34x1xf32>
    %17 = arith.addf %15, %16 : vector<34x1xf32>
    %18 = math.rsqrt %17 : vector<34x1xf32>
    %19 = vector.broadcast %18 : vector<34x1xf32> to vector<34x32xf32>
    %20 = arith.mulf %10, %19 : vector<34x32xf32>
    %c0_6 = arith.constant 0 : index
    %c0_7 = arith.constant 0 : index
    %21 = vector.load %arg5[%c0_6, %c0_7] : memref<1x32xf32, #tpu.memory_space<vmem>>, vector<1x32xf32>
    %22 = vector.broadcast %21 : vector<1x32xf32> to vector<34x32xf32>
    %23 = arith.mulf %20, %22 : vector<34x32xf32>
    %c0_8 = arith.constant 0 : index
    %c0_9 = arith.constant 0 : index
    %24 = vector.load %arg6[%c0_8, %c0_9] : memref<1x32xf32, #tpu.memory_space<vmem>>, vector<1x32xf32>
    %25 = vector.broadcast %24 : vector<1x32xf32> to vector<34x32xf32>
    %26 = arith.addf %23, %25 : vector<34x32xf32>
    %27 = arith.truncf %26 : vector<34x32xf32> to vector<34x32xbf16>
    %c0_10 = arith.constant 0 : index
    %c0_11 = arith.constant 0 : index
    %28 = vector.load %arg4[%c0_10, %c0_11] : memref<32x64xbf16, #tpu.memory_space<vmem>>, vector<32x64xbf16>
    %c0_12 = arith.constant 0 : index
    %c0_13 = arith.constant 0 : index
    %29 = vector.load %arg9[%c0_12, %c0_13] : memref<34x64xf32, #tpu.memory_space<vmem>>, vector<34x64xf32>
    %cst_14 = arith.constant dense<0.000000e+00> : vector<34x64xf32>
    %30 = tpu.matmul %27, %28, %cst_14 {dimension_numbers = #tpu.dot_dimension_numbers<[1], [0], [0], [1], [0, 0, 1, 1], [], []>} : vector<34x32xbf16>, vector<32x64xbf16>, vector<34x64xf32> -> vector<34x64xf32>
    %31 = arith.addf %29, %30 : vector<34x64xf32>
    %c0_15 = arith.constant 0 : index
    %c0_16 = arith.constant 0 : index
    %32 = vector.load %arg9[%c0_15, %c0_16] : memref<34x64xf32, #tpu.memory_space<vmem>>, vector<34x64xf32>
    tpu.vector_store %arg9[%c0_15, %c0_16], %31 {strides = array<i32>} : memref<34x64xf32, #tpu.memory_space<vmem>>, vector<34x64xf32>,
    %c0_i32_17 = arith.constant 0 : i32
    %33 = arith.cmpi eq, %arg2, %c0_i32_17 : i32
    %34 = arith.extui %33 : i1 to i32
    %c0_i32_18 = arith.constant 0 : i32
    %35 = arith.cmpi ne, %34, %c0_i32_18 : i32
    scf.if %35 {
      %c0_19 = arith.constant 0 : index
      %c0_20 = arith.constant 0 : index
      %36 = vector.load %arg9[%c0_19, %c0_20] : memref<34x64xf32, #tpu.memory_space<vmem>>, vector<34x64xf32>
      %c0_21 = arith.constant 0 : index
      %c0_22 = arith.constant 0 : index
      %37 = vector.load %arg7[%c0_21, %c0_22] : memref<1x64xf32, #tpu.memory_space<vmem>>, vector<1x64xf32>
      %38 = vector.broadcast %37 : vector<1x64xf32> to vector<34x64xf32>
      %39 = arith.addf %36, %38 : vector<34x64xf32>
      %c0_23 = arith.constant 0 : index
      %c0_24 = arith.constant 0 : index
      %40 = vector.load %arg8[%c0_23, %c0_24] : memref<34x64xf32, #tpu.memory_space<vmem>>, vector<34x64xf32>
      tpu.vector_store %arg8[%c0_23, %c0_24], %39 {strides = array<i32>} : memref<34x64xf32, #tpu.memory_space<vmem>>, vector<34x64xf32>,
    } else {
    }
    return
  }
  func.func @transform_0(%arg0: i32, %arg1: i32, %arg2: i32) -> (i32, i32) {
    %c0_i32 = arith.constant 0 : i32
    return %arg0, %arg2 : i32, i32
  }
  func.func @transform_1(%arg0: i32, %arg1: i32, %arg2: i32) -> (i32, i32) {
    %c0_i32 = arith.constant 0 : i32
    return %arg2, %arg1 : i32, i32
  }
  func.func @transform_2(%arg0: i32, %arg1: i32, %arg2: i32) -> (i32, i32) {
    %c0_i32 = arith.constant 0 : i32
    %c0_i32_0 = arith.constant 0 : i32
    return %c0_i32, %arg2 : i32, i32
  }
  func.func @transform_3(%arg0: i32, %arg1: i32, %arg2: i32) -> (i32, i32) {
    %c0_i32 = arith.constant 0 : i32
    %c0_i32_0 = arith.constant 0 : i32
    return %c0_i32, %arg2 : i32, i32
  }
  func.func @transform_4(%arg0: i32, %arg1: i32, %arg2: i32) -> (i32, i32) {
    %c0_i32 = arith.constant 0 : i32
    %c0_i32_0 = arith.constant 0 : i32
    return %c0_i32, %arg1 : i32, i32
  }
  func.func @transform_5(%arg0: i32, %arg1: i32, %arg2: i32) -> (i32, i32) {
    %c0_i32 = arith.constant 0 : i32
    return %arg0, %arg1 : i32, i32
  }
}

module attributes {stable_mosaic.version = 11 : i64} {
  func.func @_loss_kernel(%arg0: i32, %arg1: memref<32x64xf32, #tpu.memory_space<vmem>>, %arg2: memref<32x64xf32, #tpu.memory_space<vmem>>, %arg3: memref<32x1xf32, #tpu.memory_space<vmem>>, %arg4: memref<1x1xf32, #tpu.memory_space<vmem>>, %arg5: memref<1x1xf32, #tpu.memory_space<vmem>>, %arg6: memref<1x1xf32, #tpu.memory_space<vmem>>) attributes {dimension_semantics = [#tpu.dimension_semantics<arbitrary>], iteration_bounds = array<i64: 1>, scalar_prefetch = 0 : i64, scratch_operands = 2 : i64, tpu.core_type = #tpu.core_type<tc>, window_params = [{transform_indices = @transform_0, window_bounds = array<i64: 32, 64>}, {transform_indices = @transform_1, window_bounds = array<i64: 32, 64>}, {transform_indices = @transform_2, window_bounds = array<i64: 32, 1>}, {pipeline_mode = #tpu.pipeline_mode<synchronous>, transform_indices = @transform_3, window_bounds = array<i64: 1, 1>}]} {
    %c0_i32 = arith.constant 0 : i32
    %0 = arith.cmpi eq, %arg0, %c0_i32 : i32
    %1 = arith.extui %0 : i1 to i32
    %c0_i32_0 = arith.constant 0 : i32
    %2 = arith.cmpi ne, %1, %c0_i32_0 : i32
    scf.if %2 {
      %cst_19 = arith.constant 0.000000e+00 : f32
      %26 = vector.broadcast %cst_19 : f32 to vector<1x1xf32>
      %c0_20 = arith.constant 0 : index
      %c0_21 = arith.constant 0 : index
      %27 = vector.load %arg5[%c0_20, %c0_21] : memref<1x1xf32, #tpu.memory_space<vmem>>, vector<1x1xf32>
      tpu.vector_store %arg5[%c0_20, %c0_21], %26 {strides = array<i32>} : memref<1x1xf32, #tpu.memory_space<vmem>>, vector<1x1xf32>,
      %cst_22 = arith.constant 0.000000e+00 : f32
      %28 = vector.broadcast %cst_22 : f32 to vector<1x1xf32>
      %c0_23 = arith.constant 0 : index
      %c0_24 = arith.constant 0 : index
      %29 = vector.load %arg6[%c0_23, %c0_24] : memref<1x1xf32, #tpu.memory_space<vmem>>, vector<1x1xf32>
      tpu.vector_store %arg6[%c0_23, %c0_24], %28 {strides = array<i32>} : memref<1x1xf32, #tpu.memory_space<vmem>>, vector<1x1xf32>,
    } else {
    }
    %c0 = arith.constant 0 : index
    %c0_1 = arith.constant 0 : index
    %3 = vector.load %arg1[%c0, %c0_1] : memref<32x64xf32, #tpu.memory_space<vmem>>, vector<32x64xf32>
    %c0_2 = arith.constant 0 : index
    %c0_3 = arith.constant 0 : index
    %4 = vector.load %arg2[%c0_2, %c0_3] : memref<32x64xf32, #tpu.memory_space<vmem>>, vector<32x64xf32>
    %5 = arith.subf %3, %4 : vector<32x64xf32>
    %6 = arith.mulf %5, %5 : vector<32x64xf32>
    %cst = arith.constant dense<0.000000e+00> : vector<32xf32>
    %7 = vector.multi_reduction <add>, %6, %cst [1] : vector<32x64xf32> to vector<32xf32>
    %8 = vector.shape_cast %7 : vector<32xf32> to vector<32x1xf32>
    %cst_4 = arith.constant 6.400000e+01 : f32
    %9 = vector.broadcast %cst_4 : f32 to vector<32x1xf32>
    %10 = arith.divf %8, %9 : vector<32x1xf32>
    %c0_5 = arith.constant 0 : index
    %c0_6 = arith.constant 0 : index
    %11 = vector.load %arg3[%c0_5, %c0_6] : memref<32x1xf32, #tpu.memory_space<vmem>>, vector<32x1xf32>
    %c0_7 = arith.constant 0 : index
    %c0_8 = arith.constant 0 : index
    %12 = vector.load %arg5[%c0_7, %c0_8] : memref<1x1xf32, #tpu.memory_space<vmem>>, vector<1x1xf32>
    %13 = arith.mulf %10, %11 : vector<32x1xf32>
    %cst_9 = arith.constant dense<0.000000e+00> : vector<1xf32>
    %14 = vector.multi_reduction <add>, %13, %cst_9 [0] : vector<32x1xf32> to vector<1xf32>
    %15 = vector.shape_cast %14 : vector<1xf32> to vector<1x1xf32>
    %16 = arith.addf %12, %15 : vector<1x1xf32>
    %c0_10 = arith.constant 0 : index
    %c0_11 = arith.constant 0 : index
    %17 = vector.load %arg5[%c0_10, %c0_11] : memref<1x1xf32, #tpu.memory_space<vmem>>, vector<1x1xf32>
    tpu.vector_store %arg5[%c0_10, %c0_11], %16 {strides = array<i32>} : memref<1x1xf32, #tpu.memory_space<vmem>>, vector<1x1xf32>,
    %c0_12 = arith.constant 0 : index
    %c0_13 = arith.constant 0 : index
    %18 = vector.load %arg6[%c0_12, %c0_13] : memref<1x1xf32, #tpu.memory_space<vmem>>, vector<1x1xf32>
    %cst_14 = arith.constant dense<0.000000e+00> : vector<1xf32>
    %19 = vector.multi_reduction <add>, %11, %cst_14 [0] : vector<32x1xf32> to vector<1xf32>
    %20 = vector.shape_cast %19 : vector<1xf32> to vector<1x1xf32>
    %21 = arith.addf %18, %20 : vector<1x1xf32>
    %c0_15 = arith.constant 0 : index
    %c0_16 = arith.constant 0 : index
    %22 = vector.load %arg6[%c0_15, %c0_16] : memref<1x1xf32, #tpu.memory_space<vmem>>, vector<1x1xf32>
    tpu.vector_store %arg6[%c0_15, %c0_16], %21 {strides = array<i32>} : memref<1x1xf32, #tpu.memory_space<vmem>>, vector<1x1xf32>,
    %c0_i32_17 = arith.constant 0 : i32
    %23 = arith.cmpi eq, %arg0, %c0_i32_17 : i32
    %24 = arith.extui %23 : i1 to i32
    %c0_i32_18 = arith.constant 0 : i32
    %25 = arith.cmpi ne, %24, %c0_i32_18 : i32
    scf.if %25 {
      %c0_19 = arith.constant 0 : index
      %c0_20 = arith.constant 0 : index
      %26 = vector.load %arg5[%c0_19, %c0_20] : memref<1x1xf32, #tpu.memory_space<vmem>>, vector<1x1xf32>
      %c0_21 = arith.constant 0 : index
      %c0_22 = arith.constant 0 : index
      %27 = vector.load %arg6[%c0_21, %c0_22] : memref<1x1xf32, #tpu.memory_space<vmem>>, vector<1x1xf32>
      %28 = arith.divf %26, %27 : vector<1x1xf32>
      %c0_23 = arith.constant 0 : index
      %c0_24 = arith.constant 0 : index
      %29 = vector.load %arg4[%c0_23, %c0_24] : memref<1x1xf32, #tpu.memory_space<vmem>>, vector<1x1xf32>
      tpu.vector_store %arg4[%c0_23, %c0_24], %28 {strides = array<i32>} : memref<1x1xf32, #tpu.memory_space<vmem>>, vector<1x1xf32>,
    } else {
    }
    return
  }
  func.func @transform_0(%arg0: i32) -> (i32, i32) {
    %c0_i32 = arith.constant 0 : i32
    %c0_i32_0 = arith.constant 0 : i32
    return %arg0, %c0_i32 : i32, i32
  }
  func.func @transform_1(%arg0: i32) -> (i32, i32) {
    %c0_i32 = arith.constant 0 : i32
    %c0_i32_0 = arith.constant 0 : i32
    return %arg0, %c0_i32 : i32, i32
  }
  func.func @transform_2(%arg0: i32) -> (i32, i32) {
    %c0_i32 = arith.constant 0 : i32
    %c0_i32_0 = arith.constant 0 : i32
    return %arg0, %c0_i32 : i32, i32
  }
  func.func @transform_3(%arg0: i32) -> (i32, i32) {
    %c0_i32 = arith.constant 0 : i32
    %c0_i32_0 = arith.constant 0 : i32
    %c0_i32_1 = arith.constant 0 : i32
    return %c0_i32, %c0_i32_0 : i32, i32
  }
}

</mosaic_0001>

<bundles_post_ra>
// kernel: _lambda_.24
= control target key start
LH: loop header
LB: loop body
LE: loop exit
PB: predicated region body
PF: predicated region fallthrough
CT: control target
= control target key end

     0   :  { %vm19_vm0 = vcmask 261120   ;;  %v212_v1 = vmov 0.0   ;;  %vm66_vm1 = vcmask 523264   ;;  %vm165_vm2 = vcmask 257024   ;;  %s280_s1 = inlined_call_operand.vmem [shape: bf16[64,32], index: 1, kind: input, shape index: {}]   ;;  %s281_s0 = inlined_call_operand.vmem [shape: f32[32,64], index: 0, kind: input, shape index: {}]   ;;  %s282_s2 = inlined_call_operand.vmem [shape: f32[1,32], index: 2, kind: input, shape index: {}]   ;;  %s283_s3 = inlined_call_operand.vmem [shape: bf16[32,32], index: 3, kind: output, shape index: {}]  }
   0x1   :  { %v208_v0 = vld [vmem:[%s280_s1] sm:$0xff]   ;;  %22 = vst.msk [vmem:[#allocation2 + $0x10] sm:$0xff] %vm19_vm0, %v212_v1  ;;  %20 = vst.msk [vmem:[#allocation2] sm:$0xff] %vm19_vm0, %v212_v1  ;;  %v209_v2 = vld [vmem:[%s280_s1 + $0x8] sm:$0xff]  }
   0x2   :  { %21 = vst.msk [vmem:[#allocation2 + $0x8] sm:$0xff] %vm19_vm0, %v212_v1  ;;  %23 = vst.msk [vmem:[#allocation2 + $0x18] sm:$0xff] %vm19_vm0, %v212_v1  ;;  %195 = vmatprep.subr.bf16.mxu0 %v208_v0  ;;  %v210_v3 = vld [vmem:[%s280_s1 + $0x10] sm:$0xff]   ;;  %v24_v4 = vld [vmem:[%s281_s0] sm:$0xff] }
   0x3   :  { %196 = vmatpush3.bf16.msra.mxu0 %v208_v0  ;;  %v25_v5 = vld [vmem:[%s281_s0 + $0x8] sm:$0xff]  ;;  %v211_v7 = vld [vmem:[%s280_s1 + $0x18] sm:$0xff]   ;;  %v26_v8 = vld [vmem:[%s281_s0 + $0x10] sm:$0xff] }
   0x4   :  { %197 = vmatprep.subr.bf16.mxu0 %v209_v2  ;;  %v28_v6 = vpack.c.bf16 %v25_v5, %v24_v4  ;;  %v27_v9 = vld [vmem:[%s281_s0 + $0x18] sm:$0xff]  ;;  %v180_v23 = vld [vmem:[%s282_s2] ss:$0 sm:$0xff] }
   0x5   :  { %v29_v10 = vpack.c.bf16 %v27_v9, %v26_v8 }
   0x6   :  { %203 = vmatprep.mubr.msk.bf16.mxu0 %vm66_vm1, %v28_v6 }
   0x7   :  { %198 = vmatpush3.bf16.msra.mxu0 %v209_v2 }
   0x8   :  { %199 = vmatprep.subr.bf16.mxu0 %v210_v3  ;;  %v40_v11 = vld [vmem:[#allocation2 + $0x10] sm:$0xff]  ;;  %v38_v12 = vld [vmem:[#allocation2] sm:$0xff] }
   0x9   :  { %v41_v14 = vld [vmem:[#allocation2 + $0x18] sm:$0xff]  ;;  %v39_v17 = vld [vmem:[#allocation2 + $0x8] sm:$0xff] }
   0xb   :  { %200 = vmatpush3.bf16.msra.mxu0 %v210_v3 }
   0xc   :  { %201 = vmatprep.subr.bf16.mxu0 %v211_v7 }
   0xf   :  { %202 = vmatpush3.bf16.msra.mxu0 %v211_v7 }
  0x12   :  { %204 = vmatmul.mubr.msk.bf16.vlgmr.msra.gmra.mrb[0].mxu0 %vm66_vm1, %v29_v10 }
  0xe5   :  { %v205_v13 = vpop.f32.mrb[0].mxu0 }
  0xe6   :  { %v124_v15 = vadd.f32 %v205_v13, %v40_v11  ;;  %v107_v16 = vpop.f32.mrb[1].mxu0 }
  0xe7   :  { %v122_v18 = vadd.f32 %v107_v16, %v38_v12  ;;  %v206_v19 = vpop.f32.mrb[2].mxu0 }
  0xe8   :  { %129 = vst.msk [vmem:[#allocation2 + $0x10] sm:$0xff] %vm19_vm0, %v124_v15  ;;  %v125_v20 = vadd.f32 %v206_v19, %v41_v14  ;;  %v110_v21 = vpop.f32.mrb[3].mxu0 }
  0xe9   :  { %127 = vst.msk [vmem:[#allocation2] sm:$0xff] %vm19_vm0, %v122_v18  ;;  %v123_v22 = vadd.f32 %v110_v21, %v39_v17 }
  0xea   :  { %130 = vst.msk [vmem:[#allocation2 + $0x18] sm:$0xff] %vm19_vm0, %v125_v20 }
  0xeb   :  { %128 = vst.msk [vmem:[#allocation2 + $0x8] sm:$0xff] %vm19_vm0, %v123_v22 }
  0xef   :  { %v136_v24 = vld [vmem:[#allocation2 + $0x10] sm:$0xff] }
  0xf0   :  { %v147_v25 = vadd.f32 %v180_v23, %v136_v24  ;;  %v134_v26 = vld [vmem:[#allocation2] sm:$0xff] }
  0xf1   :  { %v145_v27 = vadd.f32 %v180_v23, %v134_v26  ;;  %v137_v28 = vld [vmem:[#allocation2 + $0x18] sm:$0xff] }
  0xf2   :  { %v187_v29 = vpack.c.bf16 %v147_v25, %v147_v25  ;;  %v148_v30 = vadd.f32 %v180_v23, %v137_v28  ;;  %v135_v31 = vld [vmem:[#allocation2 + $0x8] sm:$0xff] }
  0xf3   :  { %v185_v32 = vpack.c.bf16 %v145_v27, %v145_v27  ;;  %v146_v33 = vadd.f32 %v180_v23, %v135_v31 }
  0xf4   :  { %168 = vst.msk [vmem:[%s283_s3 + $0x8] sm:$0xf] %vm165_vm2, %v187_v29  ;;  %v188_v34 = vpack.c.bf16 %v148_v30, %v148_v30 }
  0xf5   :  { %166 = vst.msk [vmem:[%s283_s3] sm:$0xf] %vm165_vm2, %v185_v32  ;;  %v186_v35 = vpack.c.bf16 %v146_v33, %v146_v33 }
  0xf6   :  { %169 = vst.msk [vmem:[%s283_s3 + $0xc] sm:$0xf] %vm165_vm2, %v188_v34 }
  0xf7   :  { %167 = vst.msk [vmem:[%s283_s3 + $0x4] sm:$0xf] %vm165_vm2, %v186_v35 }

// kernel: _lambda_.25
= control target key start
LH: loop header
LB: loop body
LE: loop exit
PB: predicated region body
PF: predicated region fallthrough
CT: control target
= control target key end

     0   :  { %vm30_vm0 = vcmask 261120   ;;  %vm34_vm1 = vcmask 254976   ;;  %v195_v17 = vmov 0.0   ;;  %vm196_vm2 = vmmov 0   ;;  %s251_s0 = inlined_call_operand.vmem [shape: bf16[10,32], index: 0, kind: input, shape index: {}]   ;;  %s252_s1 = inlined_call_operand.vmem [shape: bf16[32,96], index: 1, kind: input, shape index: {}]   ;;  %s253_s2 = inlined_call_operand.vmem [shape: f32[1,32], index: 2, kind: input, shape index: {}]   ;;  %s254_s3 = inlined_call_operand.vmem [shape: f32[1,32], index: 3, kind: input, shape index: {}]   ;;  %s255_s4 = inlined_call_operand.vmem [shape: bf16[10,96], index: 4, kind: output, shape index: {}]  }
   0x1   :  { %v26_v0 = vld [vmem:[%s251_s0] sm:$0xf]  ;;  %v27_v1 = vld [vmem:[%s251_s0 + $0x4] sm:$0x1]  ;;  %179 = vmatprep.subr.bf16.mxu0 %v195_v17  ;;  %v190_v18 = vld [vmem:[%s252_s1 + $0x8] sm:$0xff]   ;;  %183 = vmatprep.mubr.msk.bf16.mxu0 %vm196_vm2, %v195_v17  ;;  %vm22_vm3 = vcmask 785408  }
   0x2   :  { %v28_v2 = vunpack.c.l.bf16 %v26_v0  ;;  %v29_v3 = vunpack.c.l.bf16 %v27_v1  ;;  %v189_v16 = vld [vmem:[%s252_s1] sm:$0xff]   ;;  %23 = vst.msk [vmem:[#allocation2] sm:$0xff] %vm22_vm3, %v195_v17  ;;  %vm24_vm4 = vcmask 779264   ;;  %vm159_vm5 = vcmask 781312  }
   0x3   :  { %180 = vmatpush3.bf16.msra.mxu0 %v189_v16  ;;  %v167_v27 = vld [vmem:[%s253_s2] ss:$0 sm:$0xff]  ;;  %25 = vst.msk [vmem:[#allocation2 + $0x8] sm:$0x3] %vm24_vm4, %v195_v17  ;;  %vm161_vm6 = vcmask 778240  }
   0x4   :  { %v31_v4 = vsel %vm30_vm0, %v28_v2, 0.0  ;;  %v35_v5 = vsel %vm34_vm1, %v29_v3, 0.0  ;;  %181 = vmatprep.subr.bf16.mxu0 %v195_v17  ;;  %v168_v31 = vld [vmem:[%s254_s3] ss:$0 sm:$0xff] }
   0x5   :  { %32 = vadd.xlane.f32.xlu0 %v31_v4 }
   0x7   :  { %182 = vmatpush3.bf16.msra.mxu0 %v190_v18 }
   0x9   :  { %36 = vadd.xlane.f32.xlu0 %v35_v5  ;;  %v82_v36 = vld [vmem:[#allocation2] sm:$0xff] }
   0xa   :  { %v83_v38 = vld [vmem:[#allocation2 + $0x8] sm:$0x3] }
  0x92   :  { %v33_v6 = vpop.xlane.xlu0 %32 }
  0x93   :  { %v39_v7 = vmul.f32 0.03125, %v33_v6 }
  0x95   :  { %v41_v8 = vsub.f32 %v28_v2, %v39_v7 }
  0x96   :  { %v37_v9 = vpop.xlane.xlu0 %36 }
  0x97   :  { %v40_v10 = vmul.f32 0.03125, %v37_v9  ;;  %v43_v11 = vmul.f32 %v41_v8, %v41_v8 }
  0x99   :  { %v42_v12 = vsub.f32 %v29_v3, %v40_v10  ;;  %v45_v13 = vsel %vm30_vm0, %v43_v11, 0.0 }
  0x9a   :  { %46 = vadd.xlane.f32.xlu1 %v45_v13 }
  0x9b   :  { %v44_v14 = vmul.f32 %v42_v12, %v42_v12 }
  0x9d   :  { %v48_v15 = vsel %vm34_vm1, %v44_v14, 0.0 }
  0x9e   :  { %49 = vadd.xlane.f32.xlu1 %v48_v15 }
 0x127   :  { %v47_v19 = vpop.xlane.xlu1 %46 }
 0x128   :  { %v51_v20 = vmul.f32 0.03125, %v47_v19 }
 0x12a   :  { %v53_v21 = vadd.f32 1e-05, %v51_v20 }
 0x12b   :  { %v50_v22 = vpop.xlane.xlu1 %49 }
 0x12c   :  { %191 = vrsqrt.f32 %v53_v21  ;;  %v52_v23 = vmul.f32 0.03125, %v50_v22 }
 0x12e   :  { %v54_v24 = vadd.f32 1e-05, %v52_v23 }
 0x130   :  { %193 = vrsqrt.f32 %v54_v24 }
 0x136   :  { %v192_v25 = vpop.eup %191 }
 0x137   :  { %v57_v26 = vmul.f32 %v192_v25, %v41_v8 }
 0x139   :  { %v66_v30 = vmul.f32 %v167_v27, %v57_v26 }
 0x13a   :  { %v194_v28 = vpop.eup %193 }
 0x13b   :  { %v58_v29 = vmul.f32 %v194_v28, %v42_v12  ;;  %v75_v33 = vadd.f32 %v168_v31, %v66_v30 }
 0x13d   :  { %v67_v32 = vmul.f32 %v167_v27, %v58_v29 }
 0x13f   :  { %v76_v34 = vadd.f32 %v168_v31, %v67_v32 }
 0x141   :  { %v77_v35 = vpack.c.bf16 %v76_v34, %v75_v33 }
 0x143   :  { %184 = vmatmul.mubr.msk.bf16.vlgmr.msra.gmra.mrb[0].mxu0 %vm30_vm0, %v77_v35 }
 0x216   :  { %v133_v37 = vpop.f32.mrb[0].mxu0 }
 0x217   :  { %v140_v39 = vadd.f32 %v133_v37, %v82_v36  ;;  %v185_v40 = vpop.f32.mrb[1].mxu0 }
 0x218   :  { %v136_v41 = vpop.f32.mrb[2].mxu0 }
 0x219   :  { %143 = vst.msk [vmem:[#allocation2] sm:$0xff] %vm22_vm3, %v140_v39  ;;  %v141_v42 = vadd.f32 %v136_v41, %v83_v38  ;;  %v186_v43 = vpop.f32.mrb[3].mxu0 }
 0x21b   :  { %145 = vst.msk [vmem:[#allocation2 + $0x8] sm:$0x3] %vm24_vm4, %v141_v42 }
 0x220   :  { %v149_v44 = vld [vmem:[#allocation2] sm:$0xff] }
 0x221   :  { %v174_v45 = vpack.c.bf16 %v149_v44, %v149_v44 }
 0x222   :  { %v150_v46 = vld [vmem:[#allocation2 + $0x8] sm:$0x3] }
 0x223   :  { %160 = vst.msk [vmem:[%s255_s4] sm:$0xf] %vm159_vm5, %v174_v45  ;;  %v175_v47 = vpack.c.bf16 %v150_v46, %v150_v46 }
 0x225   :  { %162 = vst.msk [vmem:[%s255_s4 + $0x4] sm:$0x1] %vm161_vm6, %v175_v47 }

// kernel: _lambda_.28
= control target key start
LH: loop header
LB: loop body
LE: loop exit
PB: predicated region body
PF: predicated region fallthrough
CT: control target
= control target key end

     0   :  { %vm31_vm0 = vcmask 261120   ;;  %vm35_vm1 = vcmask 254976   ;;  %v264_v17 = vmov 0.0   ;;  %vm265_vm2 = vmmov 0   ;;  %s326_s0 = inlined_call_operand.vmem [shape: bf16[10,32], index: 0, kind: input, shape index: {}]   ;;  %s327_s1 = inlined_call_operand.vmem [shape: bf16[32,128], index: 1, kind: input, shape index: {}]   ;;  %s328_s2 = inlined_call_operand.vmem [shape: f32[1,32], index: 2, kind: input, shape index: {}]   ;;  %s329_s3 = inlined_call_operand.vmem [shape: f32[1,32], index: 3, kind: input, shape index: {}]   ;;  %s330_s4 = inlined_call_operand.vmem [shape: f32[1,128], index: 4, kind: input, shape index: {}]   ;;  %s331_s5 = inlined_call_operand.vmem [shape: bf16[10,128], index: 5, kind: output, shape index: {}]  }
   0x1   :  { %v27_v0 = vld [vmem:[%s326_s0] sm:$0xf]  ;;  %v28_v1 = vld [vmem:[%s326_s0 + $0x4] sm:$0x1]  ;;  %240 = vmatprep.subr.bf16.mxu0 %v264_v17  ;;  %26 = vst [vmem:[#allocation2 + $0x8] sm:$0x3] %v264_v17  ;;  %244 = vmatprep.mubr.msk.bf16.mxu0 %vm265_vm2, %v264_v17 }
   0x2   :  { %v29_v2 = vunpack.c.l.bf16 %v27_v0  ;;  %v30_v3 = vunpack.c.l.bf16 %v28_v1  ;;  %v250_v16 = vld [vmem:[%s327_s1] sm:$0xff]   ;;  %v251_v18 = vld [vmem:[%s327_s1 + $0x8] sm:$0xff]  }
   0x3   :  { %241 = vmatpush3.bf16.msra.mxu0 %v250_v16  ;;  %v227_v27 = vld [vmem:[%s328_s2] ss:$0 sm:$0xff] }
   0x4   :  { %v32_v4 = vsel %vm31_vm0, %v29_v2, 0.0  ;;  %v36_v5 = vsel %vm35_vm1, %v30_v3, 0.0  ;;  %242 = vmatprep.subr.bf16.mxu0 %v264_v17  ;;  %v228_v31 = vld [vmem:[%s329_s3] ss:$0 sm:$0xff] }
   0x5   :  { %33 = vadd.xlane.f32.xlu0 %v32_v4  ;;  %v232_v37 = vld [vmem:[%s330_s4] ss:$0 sm:$0xff] }
   0x7   :  { %243 = vmatpush3.bf16.msra.mxu0 %v251_v18 }
   0x8   :  { %v84_v38 = vld [vmem:[#allocation2 + $0x8] sm:$0x3] }
   0x9   :  { %37 = vadd.xlane.f32.xlu0 %v36_v5 }
  0x92   :  { %v34_v6 = vpop.xlane.xlu0 %33 }
  0x93   :  { %v40_v7 = vmul.f32 0.03125, %v34_v6 }
  0x95   :  { %v42_v8 = vsub.f32 %v29_v2, %v40_v7 }
  0x96   :  { %v38_v9 = vpop.xlane.xlu0 %37 }
  0x97   :  { %v41_v10 = vmul.f32 0.03125, %v38_v9  ;;  %v44_v11 = vmul.f32 %v42_v8, %v42_v8 }
  0x99   :  { %v43_v12 = vsub.f32 %v30_v3, %v41_v10  ;;  %v46_v13 = vsel %vm31_vm0, %v44_v11, 0.0 }
  0x9a   :  { %47 = vadd.xlane.f32.xlu1 %v46_v13 }
  0x9b   :  { %v45_v14 = vmul.f32 %v43_v12, %v43_v12 }
  0x9d   :  { %v49_v15 = vsel %vm35_vm1, %v45_v14, 0.0 }
  0x9e   :  { %50 = vadd.xlane.f32.xlu1 %v49_v15 }
 0x127   :  { %v48_v19 = vpop.xlane.xlu1 %47 }
 0x128   :  { %v52_v20 = vmul.f32 0.03125, %v48_v19 }
 0x12a   :  { %v54_v21 = vadd.f32 1e-05, %v52_v20 }
 0x12b   :  { %v51_v22 = vpop.xlane.xlu1 %50 }
 0x12c   :  { %252 = vrsqrt.f32 %v54_v21  ;;  %v53_v23 = vmul.f32 0.03125, %v51_v22 }
 0x12e   :  { %v55_v24 = vadd.f32 1e-05, %v53_v23 }
 0x130   :  { %254 = vrsqrt.f32 %v55_v24 }
 0x136   :  { %v253_v25 = vpop.eup %252 }
 0x137   :  { %v58_v26 = vmul.f32 %v253_v25, %v42_v8 }
 0x139   :  { %v67_v30 = vmul.f32 %v227_v27, %v58_v26 }
 0x13a   :  { %v255_v28 = vpop.eup %254 }
 0x13b   :  { %v59_v29 = vmul.f32 %v255_v28, %v43_v12  ;;  %v76_v33 = vadd.f32 %v228_v31, %v67_v30 }
 0x13d   :  { %v68_v32 = vmul.f32 %v227_v27, %v59_v29 }
 0x13f   :  { %v77_v34 = vadd.f32 %v228_v31, %v68_v32 }
 0x141   :  { %v78_v35 = vpack.c.bf16 %v77_v34, %v76_v33 }
 0x143   :  { %245 = vmatmul.mubr.msk.bf16.vlgmr.msra.gmra.mrb[0].mxu0 %vm31_vm0, %v78_v35 }
 0x216   :  { %v134_v36 = vpop.f32.mrb[0].mxu0 }
 0x217   :  { %v246_v39 = vpop.f32.mrb[1].mxu0  ;;  %v157_v41 = vadd.f32 %v232_v37, %v134_v36 }
 0x218   :  { %v137_v40 = vpop.f32.mrb[2].mxu0 }
 0x219   :  { %v142_v42 = vadd.f32 %v137_v40, %v84_v38  ;;  %v247_v43 = vpop.f32.mrb[3].mxu0  ;;  %v161_v44 = vmul.f32 0.70710677, %v157_v41  ;;  %v159_v20 = vmul.f32 0.5, %v157_v41 }
 0x21b   :  { %144 = vst [vmem:[#allocation2 + $0x8] sm:$0x3] %v142_v42  ;;  %v163_v45 = vand.u32 2147483647, %v161_v44  ;;  %vm203_vm3 = vcmp.ge.f32.partialorder %v161_v44, 0.0 }
 0x21d   :  { %v165_v46 = vmul.f32 0.3275911, %v163_v45  ;;  %v191_v52 = vsub.f32 0.0, %v163_v45 }
 0x21f   :  { %v167_v47 = vadd.f32 1.0, %v165_v46  ;;  %v193_v56 = vmul.f32 %v191_v52, %v163_v45 }
 0x221   :  { %256 = vrcp.f32 %v167_v47  ;;  %v195_v59 = vmul.f32 1.442695, %v193_v56 }
 0x222   :  { %v149_v48 = vld [vmem:[#allocation2 + $0x8] sm:$0x3] }
 0x223   :  { %v158_v49 = vadd.f32 %v232_v37, %v149_v48 }
 0x225   :  { %v162_v50 = vmul.f32 0.70710677, %v158_v49  ;;  %v160_v30 = vmul.f32 0.5, %v158_v49 }
 0x227   :  { %v164_v51 = vand.u32 2147483647, %v162_v50  ;;  %vm204_vm4 = vcmp.ge.f32.partialorder %v162_v50, 0.0 }
 0x229   :  { %v166_v53 = vmul.f32 0.3275911, %v164_v51  ;;  %v192_v61 = vsub.f32 0.0, %v164_v51 }
 0x22b   :  { %v168_v54 = vadd.f32 1.0, %v166_v53  ;;  %v257_v55 = vpop.eup %256  ;;  %v194_v1 = vmul.f32 %v192_v61, %v164_v51 }
 0x22c   :  { %v173_v57 = vmul.f32 1.0614054, %v257_v55 }
 0x22d   :  { %258 = vrcp.f32 %v168_v54  ;;  %v197_v6 = vmul.f32 1.442695, %v194_v1 }
 0x22e   :  { %v175_v58 = vadd.f32 -1.4531521, %v173_v57  ;;  %260 = vpow2.f32 %v195_v59 }
 0x22f   :  { %262 = vpow2.f32 %v197_v6 }
 0x230   :  { %v177_v60 = vmul.f32 %v257_v55, %v175_v58 }
 0x232   :  { %v179_v62 = vadd.f32 1.4214138, %v177_v60 }
 0x234   :  { %v181_v63 = vmul.f32 %v257_v55, %v179_v62 }
 0x236   :  { %v183_v2 = vadd.f32 -0.28449672, %v181_v63 }
 0x237   :  { %v259_v0 = vpop.eup %258 }
 0x238   :  { %v174_v3 = vmul.f32 1.0614054, %v259_v0  ;;  %v185_v4 = vmul.f32 %v257_v55, %v183_v2  ;;  %v261_v11 = vpop.eup %260 }
 0x239   :  { %v263_v23 = vpop.eup %262 }
 0x23a   :  { %v176_v5 = vadd.f32 -1.4531521, %v174_v3  ;;  %v187_v7 = vadd.f32 0.2548296, %v185_v4 }
 0x23c   :  { %v178_v8 = vmul.f32 %v259_v0, %v176_v5  ;;  %v189_v9 = vmul.f32 %v257_v55, %v187_v7 }
 0x23e   :  { %v180_v10 = vadd.f32 1.4214138, %v178_v8  ;;  %v199_v12 = vmul.f32 %v261_v11, %v189_v9 }
 0x240   :  { %v182_v13 = vmul.f32 %v259_v0, %v180_v10  ;;  %v201_v14 = vsub.f32 1.0, %v199_v12 }
 0x242   :  { %v184_v15 = vadd.f32 -0.28449672, %v182_v13  ;;  %v205_v16 = vsub.f32 0.0, %v201_v14 }
 0x244   :  { %v186_v17 = vmul.f32 %v259_v0, %v184_v15  ;;  %v207_v18 = vsel %vm203_vm3, %v201_v14, %v205_v16 }
 0x245   :  { %v209_v21 = vadd.f32 1.0, %v207_v18 }
 0x246   :  { %v188_v19 = vadd.f32 0.2548296, %v186_v17 }
 0x247   :  { %v211_v24 = vmul.f32 %v209_v21, %v159_v20 }
 0x248   :  { %v190_v22 = vmul.f32 %v259_v0, %v188_v19 }
 0x249   :  { %v235_v26 = vpack.c.bf16 %v211_v24, %v211_v24 }
 0x24a   :  { %v200_v25 = vmul.f32 %v263_v23, %v190_v22 }
 0x24b   :  { %221 = vst [vmem:[%s331_s5] sm:$0xf] %v235_v26 }
 0x24c   :  { %v202_v27 = vsub.f32 1.0, %v200_v25 }
 0x24e   :  { %v206_v28 = vsub.f32 0.0, %v202_v27 }
 0x250   :  { %v208_v29 = vsel %vm204_vm4, %v202_v27, %v206_v28 }
 0x251   :  { %v210_v31 = vadd.f32 1.0, %v208_v29 }
 0x253   :  { %v212_v32 = vmul.f32 %v210_v31, %v160_v30 }
 0x255   :  { %v236_v33 = vpack.c.bf16 %v212_v32, %v212_v32 }
 0x257   :  { %222 = vst [vmem:[%s331_s5 + $0x4] sm:$0x1] %v236_v33 }

// kernel: _lambda_.26
= control target key start
LH: loop header
LB: loop body
LE: loop exit
PB: predicated region body
PF: predicated region fallthrough
CT: control target
= control target key end

     0   :  { %vm39_vm0 = vcmask 64512   ;;  %v1104_v0 = vmov 0.0   ;;  %vm1105_vm1 = vmmov 0   ;;  %vm416_vm2 = vcmask 36864   ;;  %s1397_s1 = inlined_call_operand.vmem [shape: bf16[8,5,8], index: 1, kind: input, shape index: {}]   ;;  %s1398_s0 = inlined_call_operand.vmem [shape: bf16[8,5,8], index: 0, kind: input, shape index: {}]   ;;  %s1399_s2 = inlined_call_operand.vmem [shape: bf16[8,5,8], index: 2, kind: input, shape index: {}]   ;;  %s1400_s3 = inlined_call_operand.vmem [shape: bf16[8,5,8], index: 3, kind: output, shape index: {}]  }
   0x1   :  { %973 = vmatprep.subr.bf16.mxu0 %v1104_v0  ;;  %979 = vmatprep.subr.bf16.mxu1 %v1104_v0  ;;  %v23_v1 = vld [vmem:[%s1397_s1] sm:$0x7]  ;;  %v24_v2 = vld [vmem:[%s1397_s1 + $0x4] sm:$0x7]  ;;  %v25_v5 = vld [vmem:[%s1397_s1 + $0x8] sm:$0x7] }
   0x2   :  { %v44_v3 = vsel %vm39_vm0, %v23_v1, 0  ;;  %v90_v4 = vsel %vm39_vm0, %v24_v2, 0  ;;  %975 = vmatprep.mubr.msk.bf16.mxu0 %vm1105_vm1, %v1104_v0  ;;  %981 = vmatprep.mubr.msk.bf16.mxu1 %vm1105_vm1, %v1104_v0  ;;  %v26_v6 = vld [vmem:[%s1397_s1 + $0xc] sm:$0x7]  ;;  %v15_v7 = vld [vmem:[%s1398_s0] sm:$0x7] }
   0x3   :  { %974 = vmatpush3.bf16.xpose.msra.mxu0 %v44_v3  ;;  %980 = vmatpush3.bf16.xpose.msra.mxu1 %v90_v4  ;;  %v16_v8 = vld [vmem:[%s1398_s0 + $0x4] sm:$0x7]  ;;  %v136_v9 = vsel %vm39_vm0, %v25_v5, 0  ;;  %v182_v10 = vsel %vm39_vm0, %v26_v6, 0  ;;  %v27_v11 = vld [vmem:[%s1397_s1 + $0x10] sm:$0x7] }
   0x4   :  { %985 = vmatprep.subr.bf16.mxu0 %v1104_v0  ;;  %991 = vmatprep.subr.bf16.mxu1 %v1104_v0  ;;  %v28_v12 = vld [vmem:[%s1397_s1 + $0x14] sm:$0x7]  ;;  %v17_v13 = vld [vmem:[%s1398_s0 + $0x8] sm:$0x7]  ;;  %v18_v14 = vld [vmem:[%s1398_s0 + $0xc] sm:$0x7] }
   0x5   :  { %v228_v15 = vsel %vm39_vm0, %v27_v11, 0  ;;  %v274_v16 = vsel %vm39_vm0, %v28_v12, 0  ;;  %v29_v17 = vld [vmem:[%s1397_s1 + $0x18] sm:$0x7]  ;;  %v30_v18 = vld [vmem:[%s1397_s1 + $0x1c] sm:$0x7] }
   0x6   :  { %v19_v19 = vld [vmem:[%s1398_s0 + $0x10] sm:$0x7]  ;;  %v20_v20 = vld [vmem:[%s1398_s0 + $0x14] sm:$0x7]  ;;  %v320_v21 = vsel %vm39_vm0, %v29_v17, 0  ;;  %v366_v22 = vsel %vm39_vm0, %v30_v18, 0 }
   0x7   :  { %v21_v23 = vld [vmem:[%s1398_s0 + $0x18] sm:$0x7]  ;;  %v22_v24 = vld [vmem:[%s1398_s0 + $0x1c] sm:$0x7]  ;;  %vm517_vm3 = vcmask 1041408   ;;  %vm518_vm4 = vcmask 1042432  }
   0x8   :  { %vm513_vm5 = vcmask 39936   ;;  %vm894_vm6 = vcmask 59392   ;;  %vm895_vm7 = vsmask.f32 2304 }
   0x9   :  { %vm1329_vm8 = vmand %vm894_vm6, %vm895_vm7 }
   0xa   :  { %976 = vmatmul.mubr.msk.bf16.vlgmr.msra.gmra.mrb[0].mxu0 %vm39_vm0, %v15_v7  ;;  %982 = vmatmul.mubr.msk.bf16.vlgmr.msra.gmra.mrb[0].mxu1 %vm39_vm0, %v16_v8 }
   0xb   :  { %986 = vmatpush3.bf16.xpose.msra.mxu0 %v136_v9  ;;  %992 = vmatpush3.bf16.xpose.msra.mxu1 %v182_v10 }
   0xc   :  { %987 = vmatprep.mubr.msk.bf16.mxu0 %vm1105_vm1, %v1104_v0  ;;  %993 = vmatprep.mubr.msk.bf16.mxu1 %vm1105_vm1, %v1104_v0 }
   0xd   :  { %997 = vmatprep.subr.bf16.mxu0 %v1104_v0  ;;  %1003 = vmatprep.subr.bf16.mxu1 %v1104_v0 }
  0x12   :  { %988 = vmatmul.mubr.msk.bf16.vlgmr.msra.gmra.mrb[4].mxu0 %vm39_vm0, %v17_v13  ;;  %994 = vmatmul.mubr.msk.bf16.vlgmr.msra.gmra.mrb[4].mxu1 %vm39_vm0, %v18_v14 }
  0x13   :  { %998 = vmatpush3.bf16.xpose.msra.mxu0 %v228_v15  ;;  %1004 = vmatpush3.bf16.xpose.msra.mxu1 %v274_v16 }
  0x14   :  { %999 = vmatprep.mubr.msk.bf16.mxu0 %vm1105_vm1, %v1104_v0  ;;  %1005 = vmatprep.mubr.msk.bf16.mxu1 %vm1105_vm1, %v1104_v0 }
  0x15   :  { %1009 = vmatprep.subr.bf16.mxu0 %v1104_v0  ;;  %1015 = vmatprep.subr.bf16.mxu1 %v1104_v0 }
  0x1a   :  { %1000 = vmatmul.mubr.msk.bf16.vlgmr.msra.gmra.mrb[8].mxu0 %vm39_vm0, %v19_v19  ;;  %1006 = vmatmul.mubr.msk.bf16.vlgmr.msra.gmra.mrb[8].mxu1 %vm39_vm0, %v20_v20 }
  0x1b   :  { %1010 = vmatpush3.bf16.xpose.msra.mxu0 %v320_v21  ;;  %1016 = vmatpush3.bf16.xpose.msra.mxu1 %v366_v22 }
  0x1c   :  { %1011 = vmatprep.mubr.msk.bf16.mxu0 %vm1105_vm1, %v1104_v0  ;;  %1017 = vmatprep.mubr.msk.bf16.mxu1 %vm1105_vm1, %v1104_v0 }
  0x1d   :  { %1021 = vmatprep.subr.bf16.mxu0 %v1104_v0  ;;  %1027 = vmatprep.subr.bf16.mxu1 %v1104_v0 }
  0x22   :  { %1012 = vmatmul.mubr.msk.bf16.vlgmr.msra.gmra.mrb[12].mxu0 %vm39_vm0, %v21_v23  ;;  %1018 = vmatmul.mubr.msk.bf16.vlgmr.msra.gmra.mrb[12].mxu1 %vm39_vm0, %v22_v24 }
  0x23   :  { %1023 = vmatprep.mubr.msk.bf16.mxu0 %vm1105_vm1, %v1104_v0  ;;  %1029 = vmatprep.mubr.msk.bf16.mxu1 %vm1105_vm1, %v1104_v0 }
  0xdd   :  { %v80_v25 = vpop.f32.mrb[0].mxu0  ;;  %v126_v26 = vpop.f32.mrb[0].mxu1 }
  0xde   :  { %v408_v27 = vmul.f32 0.35355338, %v80_v25  ;;  %v977_v28 = vpop.f32.mrb[1].mxu0  ;;  %v409_v29 = vmul.f32 0.35355338, %v126_v26  ;;  %v983_v30 = vpop.f32.mrb[1].mxu1 }
  0xdf   :  { %v83_v31 = vpop.f32.mrb[2].mxu0  ;;  %v129_v32 = vpop.f32.mrb[2].mxu1 }
  0xe0   :  { %v978_v33 = vpop.f32.mrb[3].mxu0  ;;  %v417_v34 = vsel %vm416_vm2, %v408_v27, -inf  ;;  %v984_v35 = vpop.f32.mrb[3].mxu1  ;;  %v420_v36 = vsel %vm416_vm2, %v409_v29, -inf }
  0xe1   :  { %418 = vmax.xlane.f32.xlu0 %v417_v34 }
  0xe5   :  { %421 = vmax.xlane.f32.xlu0 %v420_v36  ;;  %v172_v37 = vpop.f32.mrb[4].mxu0  ;;  %v218_v38 = vpop.f32.mrb[4].mxu1 }
  0xe6   :  { %v410_v39 = vmul.f32 0.35355338, %v172_v37  ;;  %v989_v40 = vpop.f32.mrb[5].mxu0  ;;  %v411_v41 = vmul.f32 0.35355338, %v218_v38  ;;  %v995_v42 = vpop.f32.mrb[5].mxu1 }
  0xe7   :  { %v175_v43 = vpop.f32.mrb[6].mxu0  ;;  %v221_v44 = vpop.f32.mrb[6].mxu1 }
  0xe8   :  { %v990_v45 = vpop.f32.mrb[7].mxu0  ;;  %v423_v46 = vsel %vm416_vm2, %v410_v39, -inf  ;;  %v996_v47 = vpop.f32.mrb[7].mxu1  ;;  %v426_v48 = vsel %vm416_vm2, %v411_v41, -inf }
  0xe9   :  { %424 = vmax.xlane.f32.xlu1 %v423_v46 }
  0xed   :  { %v310_v49 = vpop.f32.mrb[8].mxu1  ;;  %427 = vmax.xlane.f32.xlu1 %v426_v48  ;;  %v264_v50 = vpop.f32.mrb[8].mxu0 }
  0xee   :  { %v413_v51 = vmul.f32 0.35355338, %v310_v49  ;;  %v412_v52 = vmul.f32 0.35355338, %v264_v50  ;;  %v1001_v53 = vpop.f32.mrb[9].mxu0  ;;  %v1007_v54 = vpop.f32.mrb[9].mxu1 }
  0xef   :  { %v313_v55 = vpop.f32.mrb[10].mxu1  ;;  %v267_v56 = vpop.f32.mrb[10].mxu0  ;;  %v1106_v49 = vmov 65535  }
  0xf0   :  { %v432_v57 = vsel %vm416_vm2, %v413_v51, -inf  ;;  %v429_v58 = vsel %vm416_vm2, %v412_v52, -inf  ;;  %v1002_v59 = vpop.f32.mrb[11].mxu0  ;;  %v1008_v60 = vpop.f32.mrb[11].mxu1  ;;  %v519_v50 = vsel %vm517_vm3, 4294967295, %v1106_v49 }
  0xf1   :  { %433 = vmax.xlane.f32.xlu1 %v432_v57  ;;  %430 = vmax.xlane.f32.xlu0 %v429_v58  ;;  %v1264_v53 = vsel %vm518_vm4, %v519_v50, 0  ;;  %v32_v55 = vld [vmem:[%s1399_s2 + $0x4] sm:$0x7]  ;;  %v33_v57 = vld [vmem:[%s1399_s2 + $0x8] sm:$0x7] }
  0xf2   :  { %v568_v56 = vand.u32 %v1264_v53, %v32_v55  ;;  %v614_v58 = vand.u32 %v1264_v53, %v33_v57  ;;  %v34_v59 = vld [vmem:[%s1399_s2 + $0xc] sm:$0x7] }
  0xf3   :  { %v660_v60 = vand.u32 %v1264_v53, %v34_v59 }
  0xf4   :  { %1028 = vmatpush3.bf16.msra.mxu1 %v568_v56 }
  0xf5   :  { %v356_v61 = vpop.f32.mrb[12].mxu0  ;;  %v402_v62 = vpop.f32.mrb[12].mxu1  ;;  %1039 = vmatprep.subr.bf16.mxu1 %v1104_v0 }
  0xf6   :  { %v414_v63 = vmul.f32 0.35355338, %v356_v61  ;;  %v415_v1 = vmul.f32 0.35355338, %v402_v62  ;;  %v1013_v2 = vpop.f32.mrb[13].mxu0  ;;  %v1019_v3 = vpop.f32.mrb[13].mxu1 }
  0xf7   :  { %v405_v4 = vpop.f32.mrb[14].mxu1  ;;  %v359_v5 = vpop.f32.mrb[14].mxu0  ;;  %v35_v61 = vld [vmem:[%s1399_s2 + $0x10] sm:$0x7]  ;;  %v37_v2 = vld [vmem:[%s1399_s2 + $0x18] sm:$0x7] }
  0xf8   :  { %v438_v6 = vsel %vm416_vm2, %v415_v1, -inf  ;;  %v435_v7 = vsel %vm416_vm2, %v414_v63, -inf  ;;  %v1014_v8 = vpop.f32.mrb[15].mxu0  ;;  %v1020_v9 = vpop.f32.mrb[15].mxu1  ;;  %v706_v62 = vand.u32 %v1264_v53, %v35_v61  ;;  %v798_v3 = vand.u32 %v1264_v53, %v37_v2  ;;  %v38_v4 = vld [vmem:[%s1399_s2 + $0x1c] sm:$0x7] }
  0xf9   :  { %439 = vmax.xlane.f32.xlu1 %v438_v6  ;;  %436 = vmax.xlane.f32.xlu0 %v435_v7  ;;  %v844_v5 = vand.u32 %v1264_v53, %v38_v4  ;;  %v909_v4 = vld [vmem:[%s1400_s3 + $0x10] sm:$0x7] }
 0x16e   :  { %v419_v10 = vpop.xlane.xlu0 %418 }
 0x16f   :  { %v441_v11 = vsub.f32 %v408_v27, %v419_v10 }
 0x171   :  { %v449_v12 = vmul.f32 1.442695, %v441_v11 }
 0x172   :  { %v422_v13 = vpop.xlane.xlu0 %421 }
 0x173   :  { %1072 = vpow2.f32 %v449_v12  ;;  %v442_v14 = vsub.f32 %v409_v29, %v422_v13 }
 0x175   :  { %v451_v15 = vmul.f32 1.442695, %v442_v14 }
 0x176   :  { %v425_v16 = vpop.xlane.xlu1 %424 }
 0x177   :  { %1074 = vpow2.f32 %v451_v15  ;;  %v443_v17 = vsub.f32 %v410_v39, %v425_v16 }
 0x179   :  { %v453_v18 = vmul.f32 1.442695, %v443_v17 }
 0x17a   :  { %v428_v19 = vpop.xlane.xlu1 %427 }
 0x17b   :  { %1076 = vpow2.f32 %v453_v18  ;;  %v444_v20 = vsub.f32 %v411_v41, %v428_v19 }
 0x17d   :  { %v1229_v21 = vpop.eup %1072  ;;  %v455_v22 = vmul.f32 1.442695, %v444_v20 }
 0x17e   :  { %v434_v23 = vpop.xlane.xlu1 %433  ;;  %v431_v24 = vpop.xlane.xlu0 %430  ;;  %v465_v25 = vsel %vm416_vm2, %v1229_v21, 0.0 }
 0x17f   :  { %1078 = vpow2.f32 %v455_v22  ;;  %v446_v26 = vsub.f32 %v413_v51, %v434_v23  ;;  %v445_v27 = vsub.f32 %v412_v52, %v431_v24  ;;  %466 = vadd.xlane.f32.xlu0 %v465_v25  ;;  %v31_v52 = vld [vmem:[%s1399_s2] sm:$0x7] }
 0x180   :  { %v522_v54 = vand.u32 %v1264_v53, %v31_v52 }
 0x181   :  { %v1233_v28 = vpop.eup %1074  ;;  %v459_v29 = vmul.f32 1.442695, %v446_v26  ;;  %v457_v30 = vmul.f32 1.442695, %v445_v27 }
 0x182   :  { %v468_v31 = vsel %vm416_vm2, %v1233_v28, 0.0  ;;  %1022 = vmatpush3.bf16.msra.mxu0 %v522_v54 }
 0x183   :  { %1080 = vpow2.f32 %v459_v29  ;;  %469 = vadd.xlane.f32.xlu1 %v468_v31  ;;  %1033 = vmatprep.subr.bf16.mxu0 %v1104_v0 }
 0x184   :  { %1082 = vpow2.f32 %v457_v30 }
 0x185   :  { %v1237_v32 = vpop.eup %1076 }
 0x186   :  { %v440_v33 = vpop.xlane.xlu1 %439  ;;  %v437_v34 = vpop.xlane.xlu0 %436  ;;  %v471_v35 = vsel %vm416_vm2, %v1237_v32, 0.0 }
 0x187   :  { %v448_v36 = vsub.f32 %v415_v1, %v440_v33  ;;  %v447_v37 = vsub.f32 %v414_v63, %v437_v34  ;;  %472 = vadd.xlane.f32.xlu0 %v471_v35  ;;  %v36_v63 = vld [vmem:[%s1399_s2 + $0x14] sm:$0x7] }
 0x188   :  { %v752_v1 = vand.u32 %v1264_v53, %v36_v63  ;;  %v903_v53 = vld [vmem:[%s1400_s3 + $0x8] sm:$0x7] }
 0x189   :  { %v1241_v38 = vpop.eup %1078  ;;  %v463_v39 = vmul.f32 1.442695, %v448_v36  ;;  %v461_v40 = vmul.f32 1.442695, %v447_v37 }
 0x18a   :  { %v474_v41 = vsel %vm416_vm2, %v1241_v38, 0.0 }
 0x18b   :  { %1084 = vpow2.f32 %v463_v39  ;;  %475 = vadd.xlane.f32.xlu1 %v474_v41 }
 0x18c   :  { %1086 = vpow2.f32 %v461_v40  ;;  %v897_v40 = vld [vmem:[%s1400_s3] sm:$0x7] }
 0x18d   :  { %v1245_v42 = vpop.eup %1080 }
 0x18e   :  { %v1247_v43 = vpop.eup %1082  ;;  %v480_v44 = vsel %vm416_vm2, %v1245_v42, 0.0 }
 0x18f   :  { %481 = vadd.xlane.f32.xlu1 %v480_v44  ;;  %v477_v45 = vsel %vm416_vm2, %v1247_v43, 0.0 }
 0x190   :  { %478 = vadd.xlane.f32.xlu0 %v477_v45 }
 0x195   :  { %v1253_v46 = vpop.eup %1084 }
 0x196   :  { %v1255_v47 = vpop.eup %1086  ;;  %v486_v48 = vsel %vm416_vm2, %v1253_v46, 0.0 }
 0x197   :  { %487 = vadd.xlane.f32.xlu1 %v486_v48  ;;  %v483_v51 = vsel %vm416_vm2, %v1255_v47, 0.0 }
 0x198   :  { %484 = vadd.xlane.f32.xlu0 %v483_v51 }
 0x20c   :  { %v467_v6 = vpop.xlane.xlu0 %466 }
 0x20d   :  { %1088 = vrcp.f32 %v467_v6 }
 0x210   :  { %v470_v7 = vpop.xlane.xlu1 %469 }
 0x211   :  { %1090 = vrcp.f32 %v470_v7 }
 0x214   :  { %v473_v8 = vpop.xlane.xlu0 %472 }
 0x215   :  { %1092 = vrcp.f32 %v473_v8 }
 0x217   :  { %v1089_v9 = vpop.eup %1088 }
 0x218   :  { %v497_v10 = vmul.f32 %v1089_v9, %v1229_v21  ;;  %v476_v11 = vpop.xlane.xlu1 %475 }
 0x219   :  { %1094 = vrcp.f32 %v476_v11  ;;  %v912_v11 = vld [vmem:[%s1400_s3 + $0x14] sm:$0x7] }
 0x21a   :  { %v505_v12 = vpack.c.bf16 %v497_v10, %v497_v10 }
 0x21b   :  { %v1091_v13 = vpop.eup %1090 }
 0x21c   :  { %v498_v14 = vmul.f32 %v1091_v13, %v1233_v28  ;;  %v482_v15 = vpop.xlane.xlu1 %481  ;;  %1024 = vmatmul.mubr.msk.bf16.vlgmr.msra.gmra.mrb[16].mxu0 %vm513_vm5, %v505_v12 }
 0x21d   :  { %1096 = vrcp.f32 %v482_v15  ;;  %v479_v16 = vpop.xlane.xlu0 %478  ;;  %1034 = vmatpush3.bf16.msra.mxu0 %v614_v58  ;;  %1035 = vmatprep.mubr.msk.bf16.mxu0 %vm1105_vm1, %v1104_v0 }
 0x21e   :  { %1098 = vrcp.f32 %v479_v16  ;;  %v506_v17 = vpack.c.bf16 %v498_v14, %v498_v14  ;;  %1045 = vmatprep.subr.bf16.mxu0 %v1104_v0 }
 0x21f   :  { %v1093_v18 = vpop.eup %1092 }
 0x220   :  { %v499_v19 = vmul.f32 %v1093_v18, %v1237_v32  ;;  %1030 = vmatmul.mubr.msk.bf16.vlgmr.msra.gmra.mrb[16].mxu1 %vm513_vm5, %v506_v17  ;;  %v915_v18 = vld [vmem:[%s1400_s3 + $0x18] sm:$0x7] }
 0x221   :  { %1040 = vmatpush3.bf16.msra.mxu1 %v660_v60  ;;  %1041 = vmatprep.mubr.msk.bf16.mxu1 %vm1105_vm1, %v1104_v0  ;;  %v906_v60 = vld [vmem:[%s1400_s3 + $0xc] sm:$0x7] }
 0x222   :  { %v507_v20 = vpack.c.bf16 %v499_v19, %v499_v19  ;;  %1051 = vmatprep.subr.bf16.mxu1 %v1104_v0 }
 0x223   :  { %v1095_v21 = vpop.eup %1094 }
 0x224   :  { %v500_v22 = vmul.f32 %v1095_v21, %v1241_v38  ;;  %v488_v23 = vpop.xlane.xlu1 %487  ;;  %1036 = vmatmul.mubr.msk.bf16.vlgmr.msra.gmra.mrb[20].mxu0 %vm513_vm5, %v507_v20 }
 0x225   :  { %1100 = vrcp.f32 %v488_v23  ;;  %v485_v24 = vpop.xlane.xlu0 %484  ;;  %1046 = vmatpush3.bf16.msra.mxu0 %v706_v62  ;;  %1047 = vmatprep.mubr.msk.bf16.mxu0 %vm1105_vm1, %v1104_v0 }
 0x226   :  { %1102 = vrcp.f32 %v485_v24  ;;  %v508_v25 = vpack.c.bf16 %v500_v22, %v500_v22  ;;  %1057 = vmatprep.subr.bf16.mxu0 %v1104_v0 }
 0x227   :  { %v1097_v26 = vpop.eup %1096 }
 0x228   :  { %v1099_v27 = vpop.eup %1098  ;;  %1042 = vmatmul.mubr.msk.bf16.vlgmr.msra.gmra.mrb[20].mxu1 %vm513_vm5, %v508_v25  ;;  %v502_v29 = vmul.f32 %v1097_v26, %v1245_v42  ;;  %v918_v25 = vld [vmem:[%s1400_s3 + $0x1c] sm:$0x7] }
 0x229   :  { %v501_v28 = vmul.f32 %v1099_v27, %v1247_v43  ;;  %1052 = vmatpush3.bf16.msra.mxu1 %v752_v1  ;;  %1053 = vmatprep.mubr.msk.bf16.mxu1 %vm1105_vm1, %v1104_v0 }
 0x22a   :  { %1063 = vmatprep.subr.bf16.mxu1 %v1104_v0  ;;  %v510_v31 = vpack.c.bf16 %v502_v29, %v502_v29 }
 0x22b   :  { %v509_v30 = vpack.c.bf16 %v501_v28, %v501_v28 }
 0x22d   :  { %1048 = vmatmul.mubr.msk.bf16.vlgmr.msra.gmra.mrb[24].mxu0 %vm513_vm5, %v509_v30 }
 0x22e   :  { %1058 = vmatpush3.bf16.msra.mxu0 %v798_v3  ;;  %1059 = vmatprep.mubr.msk.bf16.mxu0 %vm1105_vm1, %v1104_v0 }
 0x22f   :  { %v1101_v32 = vpop.eup %1100 }
 0x230   :  { %v1103_v33 = vpop.eup %1102  ;;  %1054 = vmatmul.mubr.msk.bf16.vlgmr.msra.gmra.mrb[24].mxu1 %vm513_vm5, %v510_v31  ;;  %v504_v35 = vmul.f32 %v1101_v32, %v1253_v46  ;;  %v900_v46 = vld [vmem:[%s1400_s3 + $0x4] sm:$0x7] }
 0x231   :  { %v503_v34 = vmul.f32 %v1103_v33, %v1255_v47  ;;  %1064 = vmatpush3.bf16.msra.mxu1 %v844_v5  ;;  %1065 = vmatprep.mubr.msk.bf16.mxu1 %vm1105_vm1, %v1104_v0 }
 0x232   :  { %v512_v37 = vpack.c.bf16 %v504_v35, %v504_v35 }
 0x233   :  { %v511_v36 = vpack.c.bf16 %v503_v34, %v503_v34 }
 0x235   :  { %1060 = vmatmul.mubr.msk.bf16.vlgmr.msra.gmra.mrb[28].mxu0 %vm513_vm5, %v511_v36 }
 0x238   :  { %1066 = vmatmul.mubr.msk.bf16.vlgmr.msra.gmra.mrb[28].mxu1 %vm513_vm5, %v512_v37 }
 0x2ef   :  { %v558_v38 = vpop.f32.mrb[16].mxu0 }
 0x2f0   :  { %v886_v0 = vpack.c.bf16 %v558_v38, %v558_v38  ;;  %v1025_v41 = vpop.f32.mrb[17].mxu0 }
 0x2f1   :  { %v561_v42 = vpop.f32.mrb[18].mxu0 }
 0x2f2   :  { %v898_v43 = vsel %vm1329_vm8, %v886_v0, %v897_v40  ;;  %v1026_v44 = vpop.f32.mrb[19].mxu0 }
 0x2f3   :  { %899 = vst [vmem:[%s1400_s3] sm:$0x7] %v898_v43  ;;  %v604_v45 = vpop.f32.mrb[16].mxu1 }
 0x2f4   :  { %v887_v47 = vpack.c.bf16 %v604_v45, %v604_v45  ;;  %v1031_v48 = vpop.f32.mrb[17].mxu1 }
 0x2f5   :  { %v607_v49 = vpop.f32.mrb[18].mxu1 }
 0x2f6   :  { %v901_v50 = vsel %vm1329_vm8, %v887_v47, %v900_v46  ;;  %v1032_v51 = vpop.f32.mrb[19].mxu1 }
 0x2f7   :  { %902 = vst [vmem:[%s1400_s3 + $0x4] sm:$0x7] %v901_v50  ;;  %v650_v52 = vpop.f32.mrb[20].mxu0 }
 0x2f8   :  { %v888_v54 = vpack.c.bf16 %v650_v52, %v650_v52  ;;  %v1037_v55 = vpop.f32.mrb[21].mxu0 }
 0x2f9   :  { %v653_v56 = vpop.f32.mrb[22].mxu0 }
 0x2fa   :  { %v904_v57 = vsel %vm1329_vm8, %v888_v54, %v903_v53  ;;  %v1038_v58 = vpop.f32.mrb[23].mxu0 }
 0x2fb   :  { %905 = vst [vmem:[%s1400_s3 + $0x8] sm:$0x7] %v904_v57  ;;  %v696_v59 = vpop.f32.mrb[20].mxu1 }
 0x2fc   :  { %v889_v61 = vpack.c.bf16 %v696_v59, %v696_v59  ;;  %v1043_v62 = vpop.f32.mrb[21].mxu1 }
 0x2fd   :  { %v699_v63 = vpop.f32.mrb[22].mxu1 }
 0x2fe   :  { %v907_v1 = vsel %vm1329_vm8, %v889_v61, %v906_v60  ;;  %v1044_v2 = vpop.f32.mrb[23].mxu1 }
 0x2ff   :  { %908 = vst [vmem:[%s1400_s3 + $0xc] sm:$0x7] %v907_v1 }
 0x300   :  { %v742_v3 = vpop.f32.mrb[24].mxu0 }
 0x301   :  { %v890_v5 = vpack.c.bf16 %v742_v3, %v742_v3  ;;  %v1049_v6 = vpop.f32.mrb[25].mxu0 }
 0x302   :  { %v745_v7 = vpop.f32.mrb[26].mxu0 }
 0x303   :  { %v910_v8 = vsel %vm1329_vm8, %v890_v5, %v909_v4  ;;  %v1050_v9 = vpop.f32.mrb[27].mxu0  ;;  %v788_v10 = vpop.f32.mrb[24].mxu1 }
 0x304   :  { %911 = vst [vmem:[%s1400_s3 + $0x10] sm:$0x7] %v910_v8  ;;  %v891_v12 = vpack.c.bf16 %v788_v10, %v788_v10  ;;  %v1055_v13 = vpop.f32.mrb[25].mxu1 }
 0x305   :  { %v791_v14 = vpop.f32.mrb[26].mxu1 }
 0x306   :  { %v913_v15 = vsel %vm1329_vm8, %v891_v12, %v912_v11  ;;  %v1056_v16 = vpop.f32.mrb[27].mxu1 }
 0x307   :  { %914 = vst [vmem:[%s1400_s3 + $0x14] sm:$0x7] %v913_v15 }
 0x308   :  { %v834_v17 = vpop.f32.mrb[28].mxu0 }
 0x309   :  { %v892_v19 = vpack.c.bf16 %v834_v17, %v834_v17  ;;  %v1061_v20 = vpop.f32.mrb[29].mxu0 }
 0x30a   :  { %v837_v21 = vpop.f32.mrb[30].mxu0 }
 0x30b   :  { %v916_v22 = vsel %vm1329_vm8, %v892_v19, %v915_v18  ;;  %v1062_v23 = vpop.f32.mrb[31].mxu0  ;;  %v880_v24 = vpop.f32.mrb[28].mxu1 }
 0x30c   :  { %917 = vst [vmem:[%s1400_s3 + $0x18] sm:$0x7] %v916_v22  ;;  %v893_v26 = vpack.c.bf16 %v880_v24, %v880_v24  ;;  %v1067_v27 = vpop.f32.mrb[29].mxu1 }
 0x30d   :  { %v883_v28 = vpop.f32.mrb[30].mxu1 }
 0x30e   :  { %v919_v29 = vsel %vm1329_vm8, %v893_v26, %v918_v25  ;;  %v1068_v30 = vpop.f32.mrb[31].mxu1 }
 0x30f   :  { %920 = vst [vmem:[%s1400_s3 + $0x1c] sm:$0x7] %v919_v29 }

// kernel: _lambda_.27
= control target key start
LH: loop header
LB: loop body
LE: loop exit
PB: predicated region body
PF: predicated region fallthrough
CT: control target
= control target key end

     0   :  { %vm22_vm0 = vcmask 261120   ;;  %v162_v0 = vmov 0.0   ;;  %vm163_vm1 = vmmov 0   ;;  %vm24_vm2 = vcmask 254976   ;;  %s216_s1 = inlined_call_operand.vmem [shape: bf16[32,32], index: 1, kind: input, shape index: {}]   ;;  %s217_s0 = inlined_call_operand.vmem [shape: bf16[10,32], index: 0, kind: input, shape index: {}]   ;;  %s218_s3 = inlined_call_operand.vmem [shape: bf16[10,32], index: 3, kind: input, shape index: {}]   ;;  %s219_s2 = inlined_call_operand.vmem [shape: f32[1,32], index: 2, kind: input, shape index: {}]   ;;  %s220_s4 = inlined_call_operand.vmem [shape: bf16[10,32], index: 4, kind: output, shape index: {}]  }
   0x1   :  { %149 = vmatprep.subr.bf16.mxu0 %v162_v0  ;;  %v159_v1 = vld [vmem:[%s216_s1] sm:$0xff]   ;;  %153 = vmatprep.mubr.msk.bf16.mxu0 %vm163_vm1, %v162_v0  ;;  %23 = vst.msk [vmem:[#allocation2] sm:$0xff] %vm22_vm0, %v162_v0  ;;  %v160_v2 = vld [vmem:[%s216_s1 + $0x8] sm:$0xff]   ;;  %vm129_vm3 = vcmask 257024   ;;  %vm131_vm4 = vcmask 253952  }
   0x2   :  { %150 = vmatpush3.bf16.msra.mxu0 %v159_v1  ;;  %v161_v3 = vld [vmem:[%s217_s0] sm:$0x1f]   ;;  %25 = vst.msk [vmem:[#allocation2 + $0x8] sm:$0x3] %vm24_vm2, %v162_v0 }
   0x3   :  { %151 = vmatprep.subr.bf16.mxu0 %v162_v0  ;;  %v115_v12 = vld [vmem:[%s218_s3] sm:$0xf]  ;;  %v116_v14 = vld [vmem:[%s218_s3 + $0x4] sm:$0x1] }
   0x4   :  { %v141_v13 = vld [vmem:[%s219_s2] ss:$0 sm:$0xff]  ;;  %v117_v15 = vunpack.c.l.bf16 %v115_v12  ;;  %v118_v18 = vunpack.c.l.bf16 %v116_v14 }
   0x6   :  { %152 = vmatpush3.bf16.msra.mxu0 %v160_v2 }
   0x8   :  { %v32_v4 = vld [vmem:[#allocation2] sm:$0xff] }
   0x9   :  { %154 = vmatmul.mubr.msk.bf16.vlgmr.msra.gmra.mrb[0].mxu0 %vm22_vm0, %v161_v3  ;;  %v33_v6 = vld [vmem:[#allocation2 + $0x8] sm:$0x3] }
  0xdc   :  { %v89_v5 = vpop.f32.mrb[0].mxu0 }
  0xdd   :  { %v96_v7 = vadd.f32 %v89_v5, %v32_v4  ;;  %v155_v8 = vpop.f32.mrb[1].mxu0 }
  0xde   :  { %v92_v9 = vpop.f32.mrb[2].mxu0 }
  0xdf   :  { %98 = vst.msk [vmem:[#allocation2] sm:$0xff] %vm22_vm0, %v96_v7  ;;  %v97_v10 = vadd.f32 %v92_v9, %v33_v6  ;;  %v156_v11 = vpop.f32.mrb[3].mxu0 }
  0xe1   :  { %100 = vst.msk [vmem:[#allocation2 + $0x8] sm:$0x3] %vm24_vm2, %v97_v10 }
  0xe6   :  { %v104_v16 = vld [vmem:[#allocation2] sm:$0xff] }
  0xe7   :  { %v113_v17 = vadd.f32 %v141_v13, %v104_v16 }
  0xe8   :  { %v105_v19 = vld [vmem:[#allocation2 + $0x8] sm:$0x3] }
  0xe9   :  { %v119_v20 = vadd.f32 %v117_v15, %v113_v17  ;;  %v114_v21 = vadd.f32 %v141_v13, %v105_v19 }
  0xeb   :  { %v144_v22 = vpack.c.bf16 %v119_v20, %v119_v20  ;;  %v120_v23 = vadd.f32 %v118_v18, %v114_v21 }
  0xed   :  { %130 = vst.msk [vmem:[%s220_s4] sm:$0xf] %vm129_vm3, %v144_v22  ;;  %v145_v24 = vpack.c.bf16 %v120_v23, %v120_v23 }
  0xef   :  { %132 = vst.msk [vmem:[%s220_s4 + $0x4] sm:$0x1] %vm131_vm4, %v145_v24 }

// kernel: _lambda_.29
= control target key start
LH: loop header
LB: loop body
LE: loop exit
PB: predicated region body
PF: predicated region fallthrough
CT: control target
= control target key end

     0   :  { %vm22_vm0 = vcmask 261120   ;;  %v237_v0 = vmov 0.0   ;;  %vm238_vm1 = vmmov 0   ;;  %vm24_vm2 = vcmask 254976   ;;  %s308_s1 = inlined_call_operand.vmem [shape: bf16[128,32], index: 1, kind: input, shape index: {}]   ;;  %s309_s0 = inlined_call_operand.vmem [shape: bf16[10,128], index: 0, kind: input, shape index: {}]   ;;  %s310_s3 = inlined_call_operand.vmem [shape: bf16[10,32], index: 3, kind: input, shape index: {}]   ;;  %s311_s2 = inlined_call_operand.vmem [shape: f32[1,32], index: 2, kind: input, shape index: {}]   ;;  %s312_s4 = inlined_call_operand.vmem [shape: bf16[10,32], index: 4, kind: output, shape index: {}]  }
   0x1   :  { %206 = vmatprep.subr.bf16.mxu0 %v237_v0  ;;  %v228_v1 = vld [vmem:[%s308_s1] sm:$0xff]   ;;  %222 = vmatprep.mubr.msk.bf16.mxu0 %vm238_vm1, %v237_v0  ;;  %23 = vst.msk [vmem:[#allocation2] sm:$0xff] %vm22_vm0, %v237_v0  ;;  %v229_v2 = vld [vmem:[%s308_s1 + $0x8] sm:$0xff]   ;;  %v230_v3 = vld [vmem:[%s308_s1 + $0x10] sm:$0xff]   ;;  %vm175_vm3 = vcmask 257024   ;;  %vm177_vm4 = vcmask 253952  }
   0x2   :  { %207 = vmatpush3.bf16.msra.mxu0 %v228_v1  ;;  %v231_v4 = vld [vmem:[%s308_s1 + $0x18] sm:$0xff]   ;;  %v232_v5 = vld [vmem:[%s308_s1 + $0x20] sm:$0xff]   ;;  %v233_v6 = vld [vmem:[%s308_s1 + $0x28] sm:$0xff]   ;;  %25 = vst.msk [vmem:[#allocation2 + $0x8] sm:$0x3] %vm24_vm2, %v237_v0 }
   0x3   :  { %208 = vmatprep.subr.bf16.mxu0 %v237_v0  ;;  %v234_v7 = vld [vmem:[%s308_s1 + $0x30] sm:$0xff]   ;;  %v235_v8 = vld [vmem:[%s308_s1 + $0x38] sm:$0xff]   ;;  %v236_v9 = vld [vmem:[%s309_s0] sm:$0x1f]  }
   0x4   :  { %v161_v18 = vld [vmem:[%s310_s3] sm:$0xf]  ;;  %v162_v20 = vld [vmem:[%s310_s3 + $0x4] sm:$0x1] }
   0x5   :  { %v192_v19 = vld [vmem:[%s311_s2] ss:$0 sm:$0xff]  ;;  %v163_v21 = vunpack.c.l.bf16 %v161_v18  ;;  %v164_v24 = vunpack.c.l.bf16 %v162_v20 }
   0x6   :  { %209 = vmatpush3.bf16.msra.mxu0 %v229_v2 }
   0x7   :  { %210 = vmatprep.subr.bf16.mxu0 %v237_v0 }
   0x8   :  { %v44_v10 = vld [vmem:[#allocation2] sm:$0xff] }
   0x9   :  { %v45_v12 = vld [vmem:[#allocation2 + $0x8] sm:$0x3] }
   0xa   :  { %211 = vmatpush3.bf16.msra.mxu0 %v230_v3 }
   0xb   :  { %212 = vmatprep.subr.bf16.mxu0 %v237_v0 }
   0xe   :  { %213 = vmatpush3.bf16.msra.mxu0 %v231_v4 }
   0xf   :  { %214 = vmatprep.subr.bf16.mxu0 %v237_v0 }
  0x12   :  { %215 = vmatpush3.bf16.msra.mxu0 %v232_v5 }
  0x13   :  { %216 = vmatprep.subr.bf16.mxu0 %v237_v0 }
  0x16   :  { %217 = vmatpush3.bf16.msra.mxu0 %v233_v6 }
  0x17   :  { %218 = vmatprep.subr.bf16.mxu0 %v237_v0 }
  0x1a   :  { %219 = vmatpush3.bf16.msra.mxu0 %v234_v7 }
  0x1b   :  { %220 = vmatprep.subr.bf16.mxu0 %v237_v0 }
  0x1e   :  { %221 = vmatpush3.bf16.msra.mxu0 %v235_v8 }
  0x21   :  { %223 = vmatmul.mubr.bf16.vlgmr.msra.gmra.mrb[0].mxu0 %v236_v9 }
  0xf4   :  { %v134_v11 = vpop.f32.mrb[0].mxu0 }
  0xf5   :  { %v141_v13 = vadd.f32 %v134_v11, %v44_v10  ;;  %v224_v14 = vpop.f32.mrb[1].mxu0 }
  0xf6   :  { %v137_v15 = vpop.f32.mrb[2].mxu0 }
  0xf7   :  { %144 = vst.msk [vmem:[#allocation2] sm:$0xff] %vm22_vm0, %v141_v13  ;;  %v142_v16 = vadd.f32 %v137_v15, %v45_v12  ;;  %v225_v17 = vpop.f32.mrb[3].mxu0 }
  0xf9   :  { %146 = vst.msk [vmem:[#allocation2 + $0x8] sm:$0x3] %vm24_vm2, %v142_v16 }
  0xfe   :  { %v150_v22 = vld [vmem:[#allocation2] sm:$0xff] }
  0xff   :  { %v159_v23 = vadd.f32 %v192_v19, %v150_v22 }
 0x100   :  { %v151_v25 = vld [vmem:[#allocation2 + $0x8] sm:$0x3] }
 0x101   :  { %v165_v26 = vadd.f32 %v163_v21, %v159_v23  ;;  %v160_v27 = vadd.f32 %v192_v19, %v151_v25 }
 0x103   :  { %v195_v28 = vpack.c.bf16 %v165_v26, %v165_v26  ;;  %v166_v29 = vadd.f32 %v164_v24, %v160_v27 }
 0x105   :  { %176 = vst.msk [vmem:[%s312_s4] sm:$0xf] %vm175_vm3, %v195_v28  ;;  %v196_v30 = vpack.c.bf16 %v166_v29, %v166_v29 }
 0x107   :  { %178 = vst.msk [vmem:[%s312_s4 + $0x4] sm:$0x1] %vm177_vm4, %v196_v30 }

// kernel: _lambda_.35
= control target key start
LH: loop header
LB: loop body
LE: loop exit
PB: predicated region body
PF: predicated region fallthrough
CT: control target
= control target key end

     0   :  { %vm25_vm0 = vcmask 261120   ;;  %vm27_vm1 = vcmask 254976   ;;  %v206_v17 = vmov 0.0   ;;  %vm207_vm2 = vmmov 0   ;;  %s274_s0 = inlined_call_operand.vmem [shape: bf16[10,32], index: 0, kind: input, shape index: {}]   ;;  %s275_s1 = inlined_call_operand.vmem [shape: bf16[32,32], index: 1, kind: input, shape index: {}]   ;;  %s276_s2 = inlined_call_operand.vmem [shape: f32[1,32], index: 2, kind: input, shape index: {}]   ;;  %s277_s3 = inlined_call_operand.vmem [shape: f32[1,32], index: 3, kind: input, shape index: {}]   ;;  %s278_s4 = inlined_call_operand.vmem [shape: f32[1,32], index: 4, kind: input, shape index: {}]   ;;  %s279_s5 = inlined_call_operand.vmem [shape: bf16[10,32], index: 5, kind: output, shape index: {}]  }
   0x1   :  { %v29_v0 = vld [vmem:[%s274_s0] sm:$0xf]  ;;  %v30_v1 = vld [vmem:[%s274_s0 + $0x4] sm:$0x1]  ;;  %190 = vmatprep.subr.bf16.mxu0 %v206_v17  ;;  %26 = vst.msk [vmem:[#allocation2] sm:$0xff] %vm25_vm0, %v206_v17  ;;  %v201_v18 = vld [vmem:[%s275_s1 + $0x8] sm:$0xff]   ;;  %194 = vmatprep.mubr.msk.bf16.mxu0 %vm207_vm2, %v206_v17 }
   0x2   :  { %v31_v2 = vunpack.c.l.bf16 %v29_v0  ;;  %v32_v3 = vunpack.c.l.bf16 %v30_v1  ;;  %v200_v16 = vld [vmem:[%s275_s1] sm:$0xff]   ;;  %28 = vst.msk [vmem:[#allocation2 + $0x8] sm:$0x3] %vm27_vm1, %v206_v17  ;;  %vm169_vm3 = vcmask 257024   ;;  %vm171_vm4 = vcmask 253952  }
   0x3   :  { %191 = vmatpush3.bf16.msra.mxu0 %v200_v16  ;;  %v177_v27 = vld [vmem:[%s276_s2] ss:$0 sm:$0xff] }
   0x4   :  { %v34_v4 = vsel %vm25_vm0, %v31_v2, 0.0  ;;  %v38_v5 = vsel %vm27_vm1, %v32_v3, 0.0  ;;  %192 = vmatprep.subr.bf16.mxu0 %v206_v17  ;;  %v178_v31 = vld [vmem:[%s277_s3] ss:$0 sm:$0xff] }
   0x5   :  { %35 = vadd.xlane.f32.xlu0 %v34_v4  ;;  %v182_v44 = vld [vmem:[%s278_s4] ss:$0 sm:$0xff] }
   0x7   :  { %193 = vmatpush3.bf16.msra.mxu0 %v201_v18 }
   0x8   :  { %v85_v36 = vld [vmem:[#allocation2] sm:$0xff] }
   0x9   :  { %39 = vadd.xlane.f32.xlu0 %v38_v5  ;;  %v86_v38 = vld [vmem:[#allocation2 + $0x8] sm:$0x3] }
  0x92   :  { %v36_v6 = vpop.xlane.xlu0 %35 }
  0x93   :  { %v42_v7 = vmul.f32 0.03125, %v36_v6 }
  0x95   :  { %v44_v8 = vsub.f32 %v31_v2, %v42_v7 }
  0x96   :  { %v40_v9 = vpop.xlane.xlu0 %39 }
  0x97   :  { %v43_v10 = vmul.f32 0.03125, %v40_v9  ;;  %v46_v11 = vmul.f32 %v44_v8, %v44_v8 }
  0x99   :  { %v45_v12 = vsub.f32 %v32_v3, %v43_v10  ;;  %v48_v13 = vsel %vm25_vm0, %v46_v11, 0.0 }
  0x9a   :  { %49 = vadd.xlane.f32.xlu1 %v48_v13 }
  0x9b   :  { %v47_v14 = vmul.f32 %v45_v12, %v45_v12 }
  0x9d   :  { %v51_v15 = vsel %vm27_vm1, %v47_v14, 0.0 }
  0x9e   :  { %52 = vadd.xlane.f32.xlu1 %v51_v15 }
 0x127   :  { %v50_v19 = vpop.xlane.xlu1 %49 }
 0x128   :  { %v54_v20 = vmul.f32 0.03125, %v50_v19 }
 0x12a   :  { %v56_v21 = vadd.f32 1e-05, %v54_v20 }
 0x12b   :  { %v53_v22 = vpop.xlane.xlu1 %52 }
 0x12c   :  { %202 = vrsqrt.f32 %v56_v21  ;;  %v55_v23 = vmul.f32 0.03125, %v53_v22 }
 0x12e   :  { %v57_v24 = vadd.f32 1e-05, %v55_v23 }
 0x130   :  { %204 = vrsqrt.f32 %v57_v24 }
 0x136   :  { %v203_v25 = vpop.eup %202 }
 0x137   :  { %v60_v26 = vmul.f32 %v203_v25, %v44_v8 }
 0x139   :  { %v69_v30 = vmul.f32 %v177_v27, %v60_v26 }
 0x13a   :  { %v205_v28 = vpop.eup %204 }
 0x13b   :  { %v61_v29 = vmul.f32 %v205_v28, %v45_v12  ;;  %v78_v33 = vadd.f32 %v178_v31, %v69_v30 }
 0x13d   :  { %v70_v32 = vmul.f32 %v177_v27, %v61_v29 }
 0x13f   :  { %v79_v34 = vadd.f32 %v178_v31, %v70_v32 }
 0x141   :  { %v80_v35 = vpack.c.bf16 %v79_v34, %v78_v33 }
 0x143   :  { %195 = vmatmul.mubr.msk.bf16.vlgmr.msra.gmra.mrb[0].mxu0 %vm25_vm0, %v80_v35 }
 0x216   :  { %v136_v37 = vpop.f32.mrb[0].mxu0 }
 0x217   :  { %v143_v39 = vadd.f32 %v136_v37, %v85_v36  ;;  %v196_v40 = vpop.f32.mrb[1].mxu0 }
 0x218   :  { %v139_v41 = vpop.f32.mrb[2].mxu0 }
 0x219   :  { %145 = vst.msk [vmem:[#allocation2] sm:$0xff] %vm25_vm0, %v143_v39  ;;  %v144_v42 = vadd.f32 %v139_v41, %v86_v38  ;;  %v197_v43 = vpop.f32.mrb[3].mxu0 }
 0x21b   :  { %146 = vst.msk [vmem:[#allocation2 + $0x8] sm:$0x3] %vm27_vm1, %v144_v42 }
 0x220   :  { %v150_v45 = vld [vmem:[#allocation2] sm:$0xff] }
 0x221   :  { %v159_v46 = vadd.f32 %v182_v44, %v150_v45 }
 0x222   :  { %v151_v47 = vld [vmem:[#allocation2 + $0x8] sm:$0x3] }
 0x223   :  { %v185_v48 = vpack.c.bf16 %v159_v46, %v159_v46  ;;  %v160_v49 = vadd.f32 %v182_v44, %v151_v47 }
 0x225   :  { %170 = vst.msk [vmem:[%s279_s5] sm:$0xf] %vm169_vm3, %v185_v48  ;;  %v186_v50 = vpack.c.bf16 %v160_v49, %v160_v49 }
 0x227   :  { %172 = vst.msk [vmem:[%s279_s5 + $0x4] sm:$0x1] %vm171_vm4, %v186_v50 }

// kernel: _lambda_.36
= control target key start
LH: loop header
LB: loop body
LE: loop exit
PB: predicated region body
PF: predicated region fallthrough
CT: control target
= control target key end

     0   :  { %vm39_vm0 = vcmask 261120   ;;  %vm52_vm1 = vcmask 254976   ;;  %v337_v39 = vmov 0.0   ;;  %vm338_vm2 = vmmov 0   ;;  %s467_s0 = inlined_call_operand.vmem [shape: bf16[34,32], index: 0, kind: input, shape index: {}]   ;;  %s468_s1 = inlined_call_operand.vmem [shape: bf16[32,96], index: 1, kind: input, shape index: {}]   ;;  %s469_s2 = inlined_call_operand.vmem [shape: f32[1,32], index: 2, kind: input, shape index: {}]   ;;  %s470_s3 = inlined_call_operand.vmem [shape: f32[1,32], index: 3, kind: input, shape index: {}]   ;;  %s471_s4 = inlined_call_operand.vmem [shape: bf16[34,96], index: 4, kind: output, shape index: {}]  }
   0x1   :  { %v297_v0 = vld [vmem:[%s467_s0 + $0x8] sm:$0xff]   ;;  %v290_v1 = vld [vmem:[%s467_s0] sm:$0xff]   ;;  %v33_v5 = vld [vmem:[%s467_s0 + $0x10] sm:$0x1]  ;;  %319 = vmatprep.subr.bf16.mxu1 %v337_v39  ;;  %303 = vmatprep.subr.bf16.mxu0 %v337_v39  ;;  %vm22_vm3 = vcmask 785408   ;;  %vm27_vm4 = vcmask 779264  }
   0x2   :  { %v295_v2 = vunpack.c.l.bf16 %v297_v0  ;;  %v296_v3 = vunpack.c.h.bf16 %v297_v0  ;;  %v291_v4 = vunpack.c.l.bf16 %v290_v1  ;;  %v292_v6 = vunpack.c.h.bf16 %v290_v1  ;;  %v325_v38 = vld [vmem:[%s468_s1] sm:$0xff]   ;;  %v326_v40 = vld [vmem:[%s468_s1 + $0x8] sm:$0xff]   ;;  %311 = vmatprep.mubr.msk.bf16.mxu1 %vm338_vm2, %v337_v39  ;;  %307 = vmatprep.mubr.msk.bf16.mxu0 %vm338_vm2, %v337_v39  ;;  %25 = vst.msk [vmem:[#allocation2 + $0x10] sm:$0xff] %vm22_vm3, %v337_v39  ;;  %23 = vst.msk [vmem:[#allocation2] sm:$0xff] %vm22_vm3, %v337_v39 }
   0x3   :  { %v38_v10 = vunpack.c.l.bf16 %v33_v5  ;;  %321 = vmatpush3.bf16.msra.mxu1 %v325_v38  ;;  %304 = vmatpush3.bf16.msra.mxu0 %v325_v38  ;;  %24 = vst.msk [vmem:[#allocation2 + $0x8] sm:$0xff] %vm22_vm3, %v337_v39  ;;  %26 = vst.msk [vmem:[#allocation2 + $0x18] sm:$0xff] %vm22_vm3, %v337_v39  ;;  %v272_v58 = vld [vmem:[%s469_s2] ss:$0 sm:$0xff]  ;;  %vm261_vm5 = vcmask 781312   ;;  %vm266_vm6 = vcmask 778240  }
   0x4   :  { %v46_v7 = vsel %vm39_vm0, %v295_v2, 0.0  ;;  %v40_v8 = vsel %vm39_vm0, %v291_v4, 0.0  ;;  %v49_v9 = vsel %vm39_vm0, %v296_v3, 0.0  ;;  %v43_v11 = vsel %vm39_vm0, %v292_v6, 0.0  ;;  %320 = vmatprep.subr.bf16.mxu1 %v337_v39  ;;  %305 = vmatprep.subr.bf16.mxu0 %v337_v39  ;;  %v273_v0 = vld [vmem:[%s470_s3] ss:$0 sm:$0xff] }
   0x5   :  { %47 = vadd.xlane.f32.xlu0 %v46_v7  ;;  %41 = vadd.xlane.f32.xlu1 %v40_v8  ;;  %v53_v12 = vsel %vm52_vm1, %v38_v10, 0.0  ;;  %28 = vst.msk [vmem:[#allocation2 + $0x20] sm:$0x3] %vm27_vm4, %v337_v39 }
   0x7   :  { %322 = vmatpush3.bf16.msra.mxu1 %v326_v40  ;;  %306 = vmatpush3.bf16.msra.mxu0 %v326_v40 }
   0x9   :  { %50 = vadd.xlane.f32.xlu0 %v49_v9  ;;  %44 = vadd.xlane.f32.xlu1 %v43_v11 }
   0xd   :  { %54 = vadd.xlane.f32.xlu0 %v53_v12 }
  0x92   :  { %v48_v13 = vpop.xlane.xlu0 %47  ;;  %v42_v14 = vpop.xlane.xlu1 %41 }
  0x93   :  { %v59_v15 = vmul.f32 0.03125, %v48_v13  ;;  %v57_v16 = vmul.f32 0.03125, %v42_v14 }
  0x95   :  { %v378_v17 = vsub.f32 %v295_v2, %v59_v15  ;;  %v380_v18 = vsub.f32 %v291_v4, %v57_v16 }
  0x96   :  { %v51_v19 = vpop.xlane.xlu0 %50  ;;  %v45_v20 = vpop.xlane.xlu1 %44 }
  0x97   :  { %v60_v21 = vmul.f32 0.03125, %v51_v19  ;;  %v69_v22 = vmul.f32 %v378_v17, %v378_v17  ;;  %v58_v23 = vmul.f32 0.03125, %v45_v20  ;;  %v67_v24 = vmul.f32 %v380_v18, %v380_v18  ;;  %v141_v19 = vld [vmem:[#allocation2 + $0x18] sm:$0xff] }
  0x99   :  { %v386_v25 = vsub.f32 %v296_v3, %v60_v21  ;;  %v78_v26 = vsel %vm39_vm0, %v69_v22, 0.0  ;;  %v389_v27 = vsub.f32 %v292_v6, %v58_v23  ;;  %v72_v31 = vsel %vm39_vm0, %v67_v24, 0.0  ;;  %v138_v23 = vld [vmem:[#allocation2] sm:$0xff] }
  0x9a   :  { %v55_v28 = vpop.xlane.xlu0 %54  ;;  %79 = vadd.xlane.f32.xlu1 %v78_v26 }
  0x9b   :  { %v61_v29 = vmul.f32 0.03125, %v55_v28  ;;  %v70_v30 = vmul.f32 %v386_v25, %v386_v25  ;;  %v68_v32 = vmul.f32 %v389_v27, %v389_v27 }
  0x9d   :  { %v396_v33 = vsub.f32 %v38_v10, %v61_v29  ;;  %v81_v34 = vsel %vm39_vm0, %v70_v30, 0.0  ;;  %v75_v36 = vsel %vm39_vm0, %v68_v32, 0.0 }
  0x9e   :  { %82 = vadd.xlane.f32.xlu0 %v81_v34  ;;  %73 = vadd.xlane.f32.xlu1 %v72_v31  ;;  %v142_v31 = vld [vmem:[#allocation2 + $0x20] sm:$0x3] }
  0x9f   :  { %v71_v35 = vmul.f32 %v396_v33, %v396_v33 }
  0xa1   :  { %v84_v37 = vsel %vm52_vm1, %v71_v35, 0.0 }
  0xa2   :  { %85 = vadd.xlane.f32.xlu1 %v84_v37  ;;  %76 = vadd.xlane.f32.xlu0 %v75_v36 }
 0x127   :  { %v80_v41 = vpop.xlane.xlu1 %79 }
 0x128   :  { %v89_v42 = vmul.f32 0.03125, %v80_v41 }
 0x12a   :  { %v94_v43 = vadd.f32 1e-05, %v89_v42 }
 0x12b   :  { %v83_v44 = vpop.xlane.xlu0 %82  ;;  %v74_v45 = vpop.xlane.xlu1 %73 }
 0x12c   :  { %327 = vrsqrt.f32 %v94_v43  ;;  %v90_v46 = vmul.f32 0.03125, %v83_v44  ;;  %v87_v47 = vmul.f32 0.03125, %v74_v45 }
 0x12e   :  { %v95_v48 = vadd.f32 1e-05, %v90_v46  ;;  %v92_v49 = vadd.f32 1e-05, %v87_v47 }
 0x12f   :  { %v77_v50 = vpop.xlane.xlu0 %76  ;;  %v86_v51 = vpop.xlane.xlu1 %85 }
 0x130   :  { %329 = vrsqrt.f32 %v95_v48  ;;  %v88_v52 = vmul.f32 0.03125, %v77_v50  ;;  %v91_v53 = vmul.f32 0.03125, %v86_v51 }
 0x131   :  { %331 = vrsqrt.f32 %v92_v49 }
 0x132   :  { %v93_v54 = vadd.f32 1e-05, %v88_v52  ;;  %v96_v55 = vadd.f32 1e-05, %v91_v53 }
 0x134   :  { %333 = vrsqrt.f32 %v93_v54 }
 0x135   :  { %335 = vrsqrt.f32 %v96_v55 }
 0x136   :  { %v328_v56 = vpop.eup %327 }
 0x137   :  { %v104_v57 = vmul.f32 %v328_v56, %v378_v17  ;;  %v140_v17 = vld [vmem:[#allocation2 + $0x10] sm:$0xff] }
 0x139   :  { %v116_v62 = vmul.f32 %v272_v58, %v104_v57 }
 0x13a   :  { %v330_v59 = vpop.eup %329 }
 0x13b   :  { %v332_v60 = vpop.eup %331  ;;  %v105_v61 = vmul.f32 %v330_v59, %v386_v25  ;;  %v128_v5 = vadd.f32 %v273_v0, %v116_v62 }
 0x13c   :  { %v102_v63 = vmul.f32 %v332_v60, %v380_v18 }
 0x13d   :  { %v117_v1 = vmul.f32 %v272_v58, %v105_v61 }
 0x13e   :  { %v334_v2 = vpop.eup %333  ;;  %v114_v7 = vmul.f32 %v272_v58, %v102_v63 }
 0x13f   :  { %v336_v3 = vpop.eup %335  ;;  %v103_v4 = vmul.f32 %v334_v2, %v389_v27  ;;  %v129_v6 = vadd.f32 %v273_v0, %v117_v1  ;;  %v139_v27 = vld [vmem:[#allocation2 + $0x8] sm:$0xff] }
 0x140   :  { %v106_v8 = vmul.f32 %v336_v3, %v396_v33  ;;  %v126_v12 = vadd.f32 %v273_v0, %v114_v7 }
 0x141   :  { %v132_v9 = vpack.c.bf16 %v129_v6, %v128_v5  ;;  %v115_v10 = vmul.f32 %v272_v58, %v103_v4 }
 0x142   :  { %v118_v11 = vmul.f32 %v272_v58, %v106_v8 }
 0x143   :  { %312 = vmatmul.mubr.msk.bf16.vlgmr.msra.gmra.mrb[0].mxu1 %vm39_vm0, %v132_v9  ;;  %v127_v13 = vadd.f32 %v273_v0, %v115_v10 }
 0x144   :  { %315 = vmatprep.mubr.msk.bf16.mxu1 %vm338_vm2, %v337_v39  ;;  %v130_v15 = vadd.f32 %v273_v0, %v118_v11 }
 0x145   :  { %v131_v14 = vpack.c.bf16 %v127_v13, %v126_v12 }
 0x146   :  { %v133_v16 = vpack.c.bf16 %v130_v15, %v130_v15 }
 0x147   :  { %308 = vmatmul.mubr.msk.bf16.vlgmr.msra.gmra.mrb[0].mxu0 %vm39_vm0, %v131_v14 }
 0x14b   :  { %316 = vmatmul.mubr.msk.bf16.gmra.mrb[4].mxu1 %vm39_vm0, %v133_v16 }
 0x216   :  { %v206_v18 = vpop.f32.mrb[0].mxu1 }
 0x217   :  { %v222_v20 = vadd.f32 %v206_v18, %v140_v17  ;;  %v313_v21 = vpop.f32.mrb[1].mxu1 }
 0x218   :  { %v209_v22 = vpop.f32.mrb[2].mxu1 }
 0x219   :  { %228 = vst.msk [vmem:[#allocation2 + $0x10] sm:$0xff] %vm22_vm3, %v222_v20  ;;  %v223_v24 = vadd.f32 %v209_v22, %v141_v19  ;;  %v314_v25 = vpop.f32.mrb[3].mxu1 }
 0x21a   :  { %v198_v26 = vpop.f32.mrb[0].mxu0 }
 0x21b   :  { %229 = vst.msk [vmem:[#allocation2 + $0x18] sm:$0xff] %vm22_vm3, %v223_v24  ;;  %v220_v28 = vadd.f32 %v198_v26, %v138_v23  ;;  %v309_v29 = vpop.f32.mrb[1].mxu0 }
 0x21c   :  { %v201_v30 = vpop.f32.mrb[2].mxu0 }
 0x21d   :  { %226 = vst.msk [vmem:[#allocation2] sm:$0xff] %vm22_vm3, %v220_v28  ;;  %v221_v32 = vadd.f32 %v201_v30, %v139_v27  ;;  %v310_v33 = vpop.f32.mrb[3].mxu0 }
 0x21e   :  { %v214_v34 = vpop.f32.mrb[4].mxu1 }
 0x21f   :  { %227 = vst.msk [vmem:[#allocation2 + $0x8] sm:$0xff] %vm22_vm3, %v221_v32  ;;  %v224_v35 = vadd.f32 %v214_v34, %v142_v31  ;;  %v317_v36 = vpop.f32.mrb[5].mxu1 }
 0x220   :  { %v237_v37 = vld [vmem:[#allocation2 + $0x10] sm:$0xff]  ;;  %v217_v38 = vpop.f32.mrb[6].mxu1 }
 0x221   :  { %v286_v39 = vpack.c.bf16 %v237_v37, %v237_v37  ;;  %231 = vst.msk [vmem:[#allocation2 + $0x20] sm:$0x3] %vm27_vm4, %v224_v35  ;;  %v318_v40 = vpop.f32.mrb[7].mxu1 }
 0x222   :  { %v238_v41 = vld [vmem:[#allocation2 + $0x18] sm:$0xff] }
 0x223   :  { %264 = vst.msk [vmem:[%s471_s4 + $0x8] sm:$0xf] %vm261_vm5, %v286_v39  ;;  %v287_v42 = vpack.c.bf16 %v238_v41, %v238_v41 }
 0x224   :  { %v235_v43 = vld [vmem:[#allocation2] sm:$0xff] }
 0x225   :  { %265 = vst.msk [vmem:[%s471_s4 + $0xc] sm:$0xf] %vm261_vm5, %v287_v42  ;;  %v284_v44 = vpack.c.bf16 %v235_v43, %v235_v43 }
 0x226   :  { %v236_v45 = vld [vmem:[#allocation2 + $0x8] sm:$0xff] }
 0x227   :  { %262 = vst.msk [vmem:[%s471_s4] sm:$0xf] %vm261_vm5, %v284_v44  ;;  %v285_v46 = vpack.c.bf16 %v236_v45, %v236_v45 }
 0x228   :  { %v239_v47 = vld [vmem:[#allocation2 + $0x20] sm:$0x3] }
 0x229   :  { %263 = vst.msk [vmem:[%s471_s4 + $0x4] sm:$0xf] %vm261_vm5, %v285_v46  ;;  %v288_v48 = vpack.c.bf16 %v239_v47, %v239_v47 }
 0x22b   :  { %267 = vst.msk [vmem:[%s471_s4 + $0x10] sm:$0x1] %vm266_vm6, %v288_v48 }

// kernel: _lambda_.38
= control target key start
LH: loop header
LB: loop body
LE: loop exit
PB: predicated region body
PF: predicated region fallthrough
CT: control target
= control target key end

     0   :  { %vm22_vm0 = vcmask 261120   ;;  %v272_v0 = vmov 0.0   ;;  %vm273_vm1 = vmmov 0   ;;  %vm27_vm2 = vcmask 254976   ;;  %s354_s1 = inlined_call_operand.vmem [shape: bf16[32,32], index: 1, kind: input, shape index: {}]   ;;  %s355_s0 = inlined_call_operand.vmem [shape: bf16[34,32], index: 0, kind: input, shape index: {}]   ;;  %s356_s3 = inlined_call_operand.vmem [shape: bf16[34,32], index: 3, kind: input, shape index: {}]   ;;  %s357_s2 = inlined_call_operand.vmem [shape: f32[1,32], index: 2, kind: input, shape index: {}]   ;;  %s358_s4 = inlined_call_operand.vmem [shape: bf16[34,32], index: 4, kind: output, shape index: {}]  }
   0x1   :  { %261 = vmatprep.subr.bf16.mxu1 %v272_v0  ;;  %v267_v1 = vld [vmem:[%s354_s1] sm:$0xff]   ;;  %245 = vmatprep.subr.bf16.mxu0 %v272_v0  ;;  %23 = vst.msk [vmem:[#allocation2] sm:$0xff] %vm22_vm0, %v272_v0  ;;  %24 = vst.msk [vmem:[#allocation2 + $0x8] sm:$0xff] %vm22_vm0, %v272_v0  ;;  %v268_v2 = vld [vmem:[%s354_s1 + $0x8] sm:$0xff]   ;;  %vm201_vm3 = vcmask 257024   ;;  %vm206_vm4 = vcmask 253952  }
   0x2   :  { %25 = vst.msk [vmem:[#allocation2 + $0x10] sm:$0xff] %vm22_vm0, %v272_v0  ;;  %26 = vst.msk [vmem:[#allocation2 + $0x18] sm:$0xff] %vm22_vm0, %v272_v0  ;;  %253 = vmatprep.mubr.msk.bf16.mxu1 %vm273_vm1, %v272_v0  ;;  %249 = vmatprep.mubr.msk.bf16.mxu0 %vm273_vm1, %v272_v0  ;;  %v269_v3 = vld [vmem:[%s355_s0 + $0x8] sm:$0xff]   ;;  %v270_v4 = vld [vmem:[%s355_s0] sm:$0xff]  }
   0x3   :  { %263 = vmatpush3.bf16.msra.mxu1 %v267_v1  ;;  %246 = vmatpush3.bf16.msra.mxu0 %v267_v1  ;;  %v271_v5 = vld [vmem:[%s355_s0 + $0x10] ss:$0 sps:$4 sm:$0x11]   ;;  %28 = vst.msk [vmem:[#allocation2 + $0x20] sm:$0x3] %vm27_vm2, %v272_v0  ;;  %v239_v22 = vld [vmem:[%s356_s3 + $0x8] sm:$0xff]  }
   0x4   :  { %262 = vmatprep.subr.bf16.mxu1 %v272_v0  ;;  %247 = vmatprep.subr.bf16.mxu0 %v272_v0  ;;  %v232_v23 = vld [vmem:[%s356_s3] sm:$0xff]   ;;  %v237_v27 = vunpack.c.l.bf16 %v239_v22  ;;  %v238_v35 = vunpack.c.h.bf16 %v239_v22  ;;  %v169_v45 = vld [vmem:[%s356_s3 + $0x10] sm:$0x1] }
   0x5   :  { %v220_v25 = vld [vmem:[%s357_s2] ss:$0 sm:$0xff]  ;;  %v233_v28 = vunpack.c.l.bf16 %v232_v23  ;;  %v234_v37 = vunpack.c.h.bf16 %v232_v23  ;;  %v174_v52 = vunpack.c.l.bf16 %v169_v45 }
   0x7   :  { %264 = vmatpush3.bf16.msra.mxu1 %v268_v2  ;;  %248 = vmatpush3.bf16.msra.mxu0 %v268_v2 }
   0x8   :  { %v38_v7 = vld [vmem:[#allocation2] sm:$0xff]  ;;  %v39_v11 = vld [vmem:[#allocation2 + $0x8] sm:$0xff] }
   0x9   :  { %v40_v6 = vld [vmem:[#allocation2 + $0x10] sm:$0xff]  ;;  %v41_v9 = vld [vmem:[#allocation2 + $0x18] sm:$0xff] }
   0xa   :  { %254 = vmatmul.mubr.msk.bf16.vlgmr.msra.gmra.mrb[0].mxu1 %vm22_vm0, %v269_v3  ;;  %250 = vmatmul.mubr.msk.bf16.vlgmr.msra.gmra.mrb[0].mxu0 %vm22_vm0, %v270_v4  ;;  %v42_v24 = vld [vmem:[#allocation2 + $0x20] sm:$0x3] }
   0xb   :  { %257 = vmatprep.mubr.msk.bf16.mxu1 %vm273_vm1, %v272_v0 }
  0x12   :  { %258 = vmatmul.mubr.msk.bf16.gmra.mrb[4].mxu1 %vm22_vm0, %v271_v5 }
  0xdd   :  { %v120_v8 = vpop.f32.mrb[0].mxu1  ;;  %v112_v10 = vpop.f32.mrb[0].mxu0 }
  0xde   :  { %v136_v12 = vadd.f32 %v120_v8, %v40_v6  ;;  %v255_v13 = vpop.f32.mrb[1].mxu1  ;;  %v134_v14 = vadd.f32 %v112_v10, %v38_v7  ;;  %v251_v15 = vpop.f32.mrb[1].mxu0 }
  0xdf   :  { %v123_v16 = vpop.f32.mrb[2].mxu1  ;;  %v115_v17 = vpop.f32.mrb[2].mxu0 }
  0xe0   :  { %141 = vst.msk [vmem:[#allocation2 + $0x10] sm:$0xff] %vm22_vm0, %v136_v12  ;;  %v137_v18 = vadd.f32 %v123_v16, %v41_v9  ;;  %139 = vst.msk [vmem:[#allocation2] sm:$0xff] %vm22_vm0, %v134_v14  ;;  %v256_v19 = vpop.f32.mrb[3].mxu1  ;;  %v135_v20 = vadd.f32 %v115_v17, %v39_v11  ;;  %v252_v21 = vpop.f32.mrb[3].mxu0 }
  0xe2   :  { %142 = vst.msk [vmem:[#allocation2 + $0x18] sm:$0xff] %vm22_vm0, %v137_v18  ;;  %140 = vst.msk [vmem:[#allocation2 + $0x8] sm:$0xff] %vm22_vm0, %v135_v20 }
  0xe5   :  { %v128_v26 = vpop.f32.mrb[4].mxu1 }
  0xe6   :  { %v138_v29 = vadd.f32 %v128_v26, %v42_v24  ;;  %v259_v30 = vpop.f32.mrb[5].mxu1 }
  0xe7   :  { %v150_v31 = vld [vmem:[#allocation2 + $0x10] sm:$0xff]  ;;  %v148_v32 = vld [vmem:[#allocation2] sm:$0xff]  ;;  %v131_v33 = vpop.f32.mrb[6].mxu1 }
  0xe8   :  { %v162_v34 = vadd.f32 %v220_v25, %v150_v31  ;;  %v160_v36 = vadd.f32 %v220_v25, %v148_v32  ;;  %144 = vst.msk [vmem:[#allocation2 + $0x20] sm:$0x3] %vm27_vm2, %v138_v29  ;;  %v260_v38 = vpop.f32.mrb[7].mxu1 }
  0xe9   :  { %v151_v39 = vld [vmem:[#allocation2 + $0x18] sm:$0xff]  ;;  %v149_v40 = vld [vmem:[#allocation2 + $0x8] sm:$0xff] }
  0xea   :  { %v177_v41 = vadd.f32 %v237_v27, %v162_v34  ;;  %v163_v42 = vadd.f32 %v220_v25, %v151_v39  ;;  %v175_v43 = vadd.f32 %v233_v28, %v160_v36  ;;  %v161_v44 = vadd.f32 %v220_v25, %v149_v40 }
  0xec   :  { %v228_v46 = vpack.c.bf16 %v177_v41, %v177_v41  ;;  %v178_v47 = vadd.f32 %v238_v35, %v163_v42  ;;  %v226_v48 = vpack.c.bf16 %v175_v43, %v175_v43  ;;  %v176_v49 = vadd.f32 %v234_v37, %v161_v44 }
  0xee   :  { %204 = vst.msk [vmem:[%s358_s4 + $0x8] sm:$0xf] %vm201_vm3, %v228_v46  ;;  %v229_v50 = vpack.c.bf16 %v178_v47, %v178_v47  ;;  %202 = vst.msk [vmem:[%s358_s4] sm:$0xf] %vm201_vm3, %v226_v48  ;;  %v227_v51 = vpack.c.bf16 %v176_v49, %v176_v49 }
  0xef   :  { %v152_v53 = vld [vmem:[#allocation2 + $0x20] sm:$0x3] }
  0xf0   :  { %205 = vst.msk [vmem:[%s358_s4 + $0xc] sm:$0xf] %vm201_vm3, %v229_v50  ;;  %203 = vst.msk [vmem:[%s358_s4 + $0x4] sm:$0xf] %vm201_vm3, %v227_v51  ;;  %v164_v54 = vadd.f32 %v220_v25, %v152_v53 }
  0xf2   :  { %v179_v55 = vadd.f32 %v174_v52, %v164_v54 }
  0xf4   :  { %v230_v56 = vpack.c.bf16 %v179_v55, %v179_v55 }
  0xf6   :  { %207 = vst.msk [vmem:[%s358_s4 + $0x10] sm:$0x1] %vm206_vm4, %v230_v56 }

// kernel: _lambda_.39
= control target key start
LH: loop header
LB: loop body
LE: loop exit
PB: predicated region body
PF: predicated region fallthrough
CT: control target
= control target key end

     0   :  { %vm40_vm0 = vcmask 261120   ;;  %vm53_vm1 = vcmask 254976   ;;  %v513_v39 = vmov 0.0   ;;  %vm514_vm2 = vmmov 0   ;;  %s654_s0 = inlined_call_operand.vmem [shape: bf16[34,32], index: 0, kind: input, shape index: {}]   ;;  %s655_s1 = inlined_call_operand.vmem [shape: bf16[32,128], index: 1, kind: input, shape index: {}]   ;;  %s656_s2 = inlined_call_operand.vmem [shape: f32[1,32], index: 2, kind: input, shape index: {}]   ;;  %s657_s3 = inlined_call_operand.vmem [shape: f32[1,32], index: 3, kind: input, shape index: {}]   ;;  %s658_s4 = inlined_call_operand.vmem [shape: f32[1,128], index: 4, kind: input, shape index: {}]   ;;  %s659_s5 = inlined_call_operand.vmem [shape: bf16[34,128], index: 5, kind: output, shape index: {}]  }
   0x1   :  { %v452_v0 = vld [vmem:[%s654_s0 + $0x8] sm:$0xff]   ;;  %v435_v1 = vld [vmem:[%s654_s0] sm:$0xff]   ;;  %v34_v5 = vld [vmem:[%s654_s0 + $0x10] sm:$0x1]  ;;  %475 = vmatprep.subr.bf16.mxu1 %v513_v39  ;;  %29 = vst [vmem:[#allocation2 + $0x20] sm:$0x3] %v513_v39  ;;  %459 = vmatprep.subr.bf16.mxu0 %v513_v39 }
   0x2   :  { %v440_v2 = vunpack.c.l.bf16 %v452_v0  ;;  %v441_v3 = vunpack.c.h.bf16 %v452_v0  ;;  %v436_v4 = vunpack.c.l.bf16 %v435_v1  ;;  %v437_v6 = vunpack.c.h.bf16 %v435_v1  ;;  %v481_v38 = vld [vmem:[%s655_s1] sm:$0xff]   ;;  %v482_v40 = vld [vmem:[%s655_s1 + $0x8] sm:$0xff]   ;;  %467 = vmatprep.mubr.msk.bf16.mxu1 %vm514_vm2, %v513_v39  ;;  %463 = vmatprep.mubr.msk.bf16.mxu0 %vm514_vm2, %v513_v39 }
   0x3   :  { %v39_v10 = vunpack.c.l.bf16 %v34_v5  ;;  %477 = vmatpush3.bf16.msra.mxu1 %v481_v38  ;;  %460 = vmatpush3.bf16.msra.mxu0 %v481_v38  ;;  %v416_v58 = vld [vmem:[%s656_s2] ss:$0 sm:$0xff] }
   0x4   :  { %v47_v7 = vsel %vm40_vm0, %v440_v2, 0.0  ;;  %v41_v8 = vsel %vm40_vm0, %v436_v4, 0.0  ;;  %v50_v9 = vsel %vm40_vm0, %v441_v3, 0.0  ;;  %v44_v11 = vsel %vm40_vm0, %v437_v6, 0.0  ;;  %476 = vmatprep.subr.bf16.mxu1 %v513_v39  ;;  %461 = vmatprep.subr.bf16.mxu0 %v513_v39  ;;  %v417_v0 = vld [vmem:[%s657_s3] ss:$0 sm:$0xff] }
   0x5   :  { %48 = vadd.xlane.f32.xlu0 %v47_v7  ;;  %42 = vadd.xlane.f32.xlu1 %v41_v8  ;;  %v54_v12 = vsel %vm53_vm1, %v39_v10, 0.0 }
   0x7   :  { %478 = vmatpush3.bf16.msra.mxu1 %v482_v40  ;;  %462 = vmatpush3.bf16.msra.mxu0 %v482_v40 }
   0x9   :  { %51 = vadd.xlane.f32.xlu0 %v50_v9  ;;  %45 = vadd.xlane.f32.xlu1 %v44_v11 }
   0xd   :  { %55 = vadd.xlane.f32.xlu0 %v54_v12 }
  0x92   :  { %v49_v13 = vpop.xlane.xlu0 %48  ;;  %v43_v14 = vpop.xlane.xlu1 %42 }
  0x93   :  { %v60_v15 = vmul.f32 0.03125, %v49_v13  ;;  %v58_v16 = vmul.f32 0.03125, %v43_v14 }
  0x95   :  { %v559_v17 = vsub.f32 %v440_v2, %v60_v15  ;;  %v561_v18 = vsub.f32 %v436_v4, %v58_v16 }
  0x96   :  { %v52_v19 = vpop.xlane.xlu0 %51  ;;  %v46_v20 = vpop.xlane.xlu1 %45 }
  0x97   :  { %v61_v21 = vmul.f32 0.03125, %v52_v19  ;;  %v70_v22 = vmul.f32 %v559_v17, %v559_v17  ;;  %v59_v23 = vmul.f32 0.03125, %v46_v20  ;;  %v68_v24 = vmul.f32 %v561_v18, %v561_v18 }
  0x99   :  { %v66_v25 = vsub.f32 %v441_v3, %v61_v21  ;;  %v79_v26 = vsel %vm40_vm0, %v70_v22, 0.0  ;;  %v568_v27 = vsub.f32 %v437_v6, %v59_v23  ;;  %v73_v31 = vsel %vm40_vm0, %v68_v24, 0.0 }
  0x9a   :  { %v56_v28 = vpop.xlane.xlu0 %55  ;;  %80 = vadd.xlane.f32.xlu1 %v79_v26 }
  0x9b   :  { %v62_v29 = vmul.f32 0.03125, %v56_v28  ;;  %v71_v30 = vmul.f32 %v66_v25, %v66_v25  ;;  %v69_v32 = vmul.f32 %v568_v27, %v568_v27 }
  0x9d   :  { %v573_v33 = vsub.f32 %v39_v10, %v62_v29  ;;  %v82_v34 = vsel %vm40_vm0, %v71_v30, 0.0  ;;  %v76_v36 = vsel %vm40_vm0, %v69_v32, 0.0  ;;  %v143_v30 = vld [vmem:[#allocation2 + $0x20] sm:$0x3] }
  0x9e   :  { %83 = vadd.xlane.f32.xlu0 %v82_v34  ;;  %74 = vadd.xlane.f32.xlu1 %v73_v31 }
  0x9f   :  { %v72_v35 = vmul.f32 %v573_v33, %v573_v33 }
  0xa1   :  { %v85_v37 = vsel %vm53_vm1, %v72_v35, 0.0 }
  0xa2   :  { %86 = vadd.xlane.f32.xlu1 %v85_v37  ;;  %77 = vadd.xlane.f32.xlu0 %v76_v36 }
 0x127   :  { %v81_v41 = vpop.xlane.xlu1 %80 }
 0x128   :  { %v90_v42 = vmul.f32 0.03125, %v81_v41 }
 0x12a   :  { %v95_v43 = vadd.f32 1e-05, %v90_v42 }
 0x12b   :  { %v84_v44 = vpop.xlane.xlu0 %83  ;;  %v75_v45 = vpop.xlane.xlu1 %74 }
 0x12c   :  { %483 = vrsqrt.f32 %v95_v43  ;;  %v91_v46 = vmul.f32 0.03125, %v84_v44  ;;  %v88_v47 = vmul.f32 0.03125, %v75_v45 }
 0x12e   :  { %v96_v48 = vadd.f32 1e-05, %v91_v46  ;;  %v93_v49 = vadd.f32 1e-05, %v88_v47 }
 0x12f   :  { %v78_v50 = vpop.xlane.xlu0 %77  ;;  %v87_v51 = vpop.xlane.xlu1 %86 }
 0x130   :  { %485 = vrsqrt.f32 %v96_v48  ;;  %v89_v52 = vmul.f32 0.03125, %v78_v50  ;;  %v92_v53 = vmul.f32 0.03125, %v87_v51 }
 0x131   :  { %487 = vrsqrt.f32 %v93_v49 }
 0x132   :  { %v94_v54 = vadd.f32 1e-05, %v89_v52  ;;  %v97_v55 = vadd.f32 1e-05, %v92_v53 }
 0x134   :  { %489 = vrsqrt.f32 %v94_v54 }
 0x135   :  { %491 = vrsqrt.f32 %v97_v55 }
 0x136   :  { %v484_v56 = vpop.eup %483 }
 0x137   :  { %v105_v57 = vmul.f32 %v484_v56, %v559_v17 }
 0x139   :  { %v117_v62 = vmul.f32 %v416_v58, %v105_v57 }
 0x13a   :  { %v486_v59 = vpop.eup %485 }
 0x13b   :  { %v488_v60 = vpop.eup %487  ;;  %v106_v61 = vmul.f32 %v486_v59, %v66_v25  ;;  %v129_v5 = vadd.f32 %v417_v0, %v117_v62 }
 0x13c   :  { %v103_v63 = vmul.f32 %v488_v60, %v561_v18  ;;  %v423_v18 = vld [vmem:[%s658_s4] ss:$0 sm:$0xff] }
 0x13d   :  { %v118_v1 = vmul.f32 %v416_v58, %v106_v61 }
 0x13e   :  { %v490_v2 = vpop.eup %489  ;;  %v115_v7 = vmul.f32 %v416_v58, %v103_v63 }
 0x13f   :  { %v492_v3 = vpop.eup %491  ;;  %v104_v4 = vmul.f32 %v490_v2, %v568_v27  ;;  %v130_v6 = vadd.f32 %v417_v0, %v118_v1 }
 0x140   :  { %v107_v8 = vmul.f32 %v492_v3, %v573_v33  ;;  %v127_v12 = vadd.f32 %v417_v0, %v115_v7 }
 0x141   :  { %v133_v9 = vpack.c.bf16 %v130_v6, %v129_v5  ;;  %v116_v10 = vmul.f32 %v416_v58, %v104_v4 }
 0x142   :  { %v119_v11 = vmul.f32 %v416_v58, %v107_v8 }
 0x143   :  { %468 = vmatmul.mubr.msk.bf16.vlgmr.msra.gmra.mrb[0].mxu1 %vm40_vm0, %v133_v9  ;;  %v128_v13 = vadd.f32 %v417_v0, %v116_v10 }
 0x144   :  { %471 = vmatprep.mubr.msk.bf16.mxu1 %vm514_vm2, %v513_v39  ;;  %v131_v15 = vadd.f32 %v417_v0, %v119_v11 }
 0x145   :  { %v132_v14 = vpack.c.bf16 %v128_v13, %v127_v12 }
 0x146   :  { %v134_v16 = vpack.c.bf16 %v131_v15, %v131_v15 }
 0x147   :  { %464 = vmatmul.mubr.msk.bf16.vlgmr.msra.gmra.mrb[0].mxu0 %vm40_vm0, %v132_v14 }
 0x14b   :  { %472 = vmatmul.mubr.msk.bf16.gmra.mrb[4].mxu1 %vm40_vm0, %v134_v16 }
 0x216   :  { %v207_v17 = vpop.f32.mrb[0].mxu1 }
 0x217   :  { %v469_v19 = vpop.f32.mrb[1].mxu1  ;;  %v605_v21 = vadd.f32 %v423_v18, %v207_v17 }
 0x218   :  { %v210_v20 = vpop.f32.mrb[2].mxu1 }
 0x219   :  { %v470_v22 = vpop.f32.mrb[3].mxu1  ;;  %v608_v24 = vmul.f32 0.70710677, %v605_v21  ;;  %v610_v25 = vadd.f32 %v423_v18, %v210_v20 }
 0x21a   :  { %v199_v23 = vpop.f32.mrb[0].mxu0 }
 0x21b   :  { %v465_v26 = vpop.f32.mrb[1].mxu0  ;;  %v263_v28 = vand.u32 2147483647, %v608_v24  ;;  %v614_v29 = vmul.f32 0.70710677, %v610_v25  ;;  %v616_v31 = vadd.f32 %v423_v18, %v199_v23  ;;  %vm363_vm3 = vcmp.ge.f32.partialorder %v608_v24, 0.0 }
 0x21c   :  { %v202_v27 = vpop.f32.mrb[2].mxu0  ;;  %v254_v24 = vmul.f32 0.5, %v610_v25 }
 0x21d   :  { %v466_v32 = vpop.f32.mrb[3].mxu0  ;;  %v268_v34 = vmul.f32 0.3275911, %v263_v28  ;;  %v264_v35 = vand.u32 2147483647, %v614_v29  ;;  %v622_v37 = vadd.f32 %v423_v18, %v202_v27  ;;  %v333_v52 = vsub.f32 0.0, %v263_v28 }
 0x21e   :  { %v215_v33 = vpop.f32.mrb[4].mxu1  ;;  %v620_v36 = vmul.f32 0.70710677, %v616_v31  ;;  %vm364_vm4 = vcmp.ge.f32.partialorder %v614_v29, 0.0 }
 0x21f   :  { %v225_v38 = vadd.f32 %v215_v33, %v143_v30  ;;  %v473_v39 = vpop.f32.mrb[5].mxu1  ;;  %v273_v40 = vadd.f32 1.0, %v268_v34  ;;  %v269_v41 = vmul.f32 0.3275911, %v264_v35  ;;  %v626_v44 = vmul.f32 0.70710677, %v622_v37 }
 0x220   :  { %v218_v42 = vpop.f32.mrb[6].mxu1  ;;  %v261_v43 = vand.u32 2147483647, %v620_v36  ;;  %v334_v55 = vsub.f32 0.0, %v264_v35  ;;  %v338_v58 = vmul.f32 %v333_v52, %v263_v28  ;;  %vm361_vm5 = vcmp.ge.f32.partialorder %v620_v36, 0.0 }
 0x221   :  { %230 = vst [vmem:[#allocation2 + $0x20] sm:$0x3] %v225_v38  ;;  %493 = vrcp.f32 %v273_v40  ;;  %v274_v45 = vadd.f32 1.0, %v269_v41  ;;  %v474_v46 = vpop.f32.mrb[7].mxu1  ;;  %v262_v48 = vand.u32 2147483647, %v626_v44 }
 0x222   :  { %v266_v47 = vmul.f32 0.3275911, %v261_v43  ;;  %v331_v60 = vsub.f32 0.0, %v261_v43  ;;  %v339_v0 = vmul.f32 %v334_v55, %v264_v35  ;;  %v345_v2 = vmul.f32 1.442695, %v338_v58 }
 0x223   :  { %495 = vrcp.f32 %v274_v45  ;;  %v267_v50 = vmul.f32 0.3275911, %v262_v48  ;;  %v332_v4 = vsub.f32 0.0, %v262_v48  ;;  %vm362_vm6 = vcmp.ge.f32.partialorder %v626_v44, 0.0 }
 0x224   :  { %v271_v49 = vadd.f32 1.0, %v266_v47  ;;  %v336_v7 = vmul.f32 %v331_v60, %v261_v43  ;;  %v347_v12 = vmul.f32 1.442695, %v339_v0 }
 0x225   :  { %v272_v51 = vadd.f32 1.0, %v267_v50  ;;  %v337_v16 = vmul.f32 %v332_v4, %v262_v48 }
 0x226   :  { %497 = vrcp.f32 %v271_v49 }
 0x227   :  { %499 = vrcp.f32 %v272_v51  ;;  %v343_v30 = vmul.f32 1.442695, %v337_v16 }
 0x228   :  { %v238_v53 = vld [vmem:[#allocation2 + $0x20] sm:$0x3] }
 0x229   :  { %v629_v54 = vadd.f32 %v423_v18, %v238_v53  ;;  %v341_v18 = vmul.f32 1.442695, %v336_v7 }
 0x22b   :  { %v632_v56 = vmul.f32 0.70710677, %v629_v54  ;;  %v494_v57 = vpop.eup %493 }
 0x22c   :  { %v288_v59 = vmul.f32 1.0614054, %v494_v57 }
 0x22d   :  { %v265_v61 = vand.u32 2147483647, %v632_v56  ;;  %v496_v62 = vpop.eup %495  ;;  %vm365_vm7 = vcmp.ge.f32.partialorder %v632_v56, 0.0 }
 0x22e   :  { %v293_v63 = vadd.f32 -1.4531521, %v288_v59  ;;  %v289_v3 = vmul.f32 1.0614054, %v496_v62 }
 0x22f   :  { %v270_v1 = vmul.f32 0.3275911, %v265_v61  ;;  %v335_v34 = vsub.f32 0.0, %v265_v61 }
 0x230   :  { %v498_v5 = vpop.eup %497  ;;  %v298_v6 = vmul.f32 %v494_v57, %v293_v63  ;;  %v294_v9 = vadd.f32 -1.4531521, %v289_v3 }
 0x231   :  { %v275_v8 = vadd.f32 1.0, %v270_v1  ;;  %v286_v10 = vmul.f32 1.0614054, %v498_v5  ;;  %v500_v13 = vpop.eup %499  ;;  %v340_v47 = vmul.f32 %v335_v34, %v265_v61  ;;  %v251_v34 = vmul.f32 0.5, %v616_v31 }
 0x232   :  { %v303_v11 = vadd.f32 1.4214138, %v298_v6  ;;  %v299_v14 = vmul.f32 %v496_v62, %v294_v9  ;;  %v287_v19 = vmul.f32 1.0614054, %v500_v13 }
 0x233   :  { %501 = vrcp.f32 %v275_v8  ;;  %v291_v15 = vadd.f32 -1.4531521, %v286_v10  ;;  %v349_v1 = vmul.f32 1.442695, %v340_v47 }
 0x234   :  { %503 = vpow2.f32 %v345_v2  ;;  %v308_v17 = vmul.f32 %v494_v57, %v303_v11  ;;  %v304_v20 = vadd.f32 1.4214138, %v299_v14  ;;  %v292_v26 = vadd.f32 -1.4531521, %v287_v19 }
 0x235   :  { %v296_v22 = vmul.f32 %v498_v5, %v291_v15  ;;  %505 = vpow2.f32 %v347_v12 }
 0x236   :  { %v313_v23 = vadd.f32 -0.28449672, %v308_v17  ;;  %v309_v27 = vmul.f32 %v496_v62, %v304_v20  ;;  %507 = vpow2.f32 %v341_v18  ;;  %v297_v33 = vmul.f32 %v500_v13, %v292_v26 }
 0x237   :  { %v301_v28 = vadd.f32 1.4214138, %v296_v22  ;;  %509 = vpow2.f32 %v343_v30  ;;  %v253_v17 = vmul.f32 0.5, %v605_v21 }
 0x238   :  { %v318_v32 = vmul.f32 %v494_v57, %v313_v23  ;;  %v314_v35 = vadd.f32 -0.28449672, %v309_v27  ;;  %v302_v40 = vadd.f32 1.4214138, %v297_v33  ;;  %511 = vpow2.f32 %v349_v1 }
 0x239   :  { %v306_v38 = vmul.f32 %v498_v5, %v301_v28 }
 0x23a   :  { %v323_v39 = vadd.f32 0.2548296, %v318_v32  ;;  %v319_v41 = vmul.f32 %v496_v62, %v314_v35  ;;  %v307_v46 = vmul.f32 %v500_v13, %v302_v40  ;;  %v252_v35 = vmul.f32 0.5, %v622_v37 }
 0x23b   :  { %v311_v42 = vadd.f32 -0.28449672, %v306_v38  ;;  %v255_v37 = vmul.f32 0.5, %v629_v54 }
 0x23c   :  { %v328_v45 = vmul.f32 %v494_v57, %v323_v39  ;;  %v324_v49 = vadd.f32 0.2548296, %v319_v41  ;;  %v312_v53 = vadd.f32 -0.28449672, %v307_v46 }
 0x23d   :  { %v502_v43 = vpop.eup %501  ;;  %v316_v50 = vmul.f32 %v498_v5, %v311_v42 }
 0x23e   :  { %v504_v48 = vpop.eup %503  ;;  %v290_v51 = vmul.f32 1.0614054, %v502_v43  ;;  %v329_v55 = vmul.f32 %v496_v62, %v324_v49  ;;  %v317_v0 = vmul.f32 %v500_v13, %v312_v53 }
 0x23f   :  { %v353_v52 = vmul.f32 %v504_v48, %v328_v45  ;;  %v321_v58 = vadd.f32 0.2548296, %v316_v50  ;;  %v506_v60 = vpop.eup %505 }
 0x240   :  { %v295_v59 = vadd.f32 -1.4531521, %v290_v51  ;;  %v354_v2 = vmul.f32 %v506_v60, %v329_v55  ;;  %v508_v6 = vpop.eup %507  ;;  %v322_v7 = vadd.f32 0.2548296, %v317_v0 }
 0x241   :  { %v358_v63 = vsub.f32 1.0, %v353_v52  ;;  %v326_v3 = vmul.f32 %v498_v5, %v321_v58  ;;  %v510_v62 = vpop.eup %509 }
 0x242   :  { %v300_v4 = vmul.f32 %v502_v43, %v295_v59  ;;  %v359_v61 = vsub.f32 1.0, %v354_v2  ;;  %v327_v11 = vmul.f32 %v500_v13, %v322_v7  ;;  %v512_v39 = vpop.eup %511 }
 0x243   :  { %v368_v57 = vsub.f32 0.0, %v358_v63  ;;  %v351_v8 = vmul.f32 %v508_v6, %v326_v3 }
 0x244   :  { %v305_v9 = vadd.f32 1.4214138, %v300_v4  ;;  %v369_v12 = vsub.f32 0.0, %v359_v61  ;;  %v352_v5 = vmul.f32 %v510_v62, %v327_v11 }
 0x245   :  { %v373_v10 = vsel %vm363_vm3, %v358_v63, %v368_v57  ;;  %v356_v14 = vsub.f32 1.0, %v351_v8 }
 0x246   :  { %v310_v15 = vmul.f32 %v502_v43, %v305_v9  ;;  %v378_v16 = vadd.f32 1.0, %v373_v10  ;;  %v374_v18 = vsel %vm364_vm4, %v359_v61, %v369_v12  ;;  %v357_v13 = vsub.f32 1.0, %v352_v5 }
 0x247   :  { %v366_v19 = vsub.f32 0.0, %v356_v14  ;;  %v379_v22 = vadd.f32 1.0, %v374_v18 }
 0x248   :  { %v315_v20 = vadd.f32 -0.28449672, %v310_v15  ;;  %v383_v27 = vmul.f32 %v378_v16, %v253_v17  ;;  %v367_v30 = vsub.f32 0.0, %v357_v13 }
 0x249   :  { %v371_v23 = vsel %vm361_vm5, %v356_v14, %v366_v19  ;;  %v384_v28 = vmul.f32 %v379_v22, %v254_v24 }
 0x24a   :  { %v320_v26 = vmul.f32 %v502_v43, %v315_v20  ;;  %v376_v32 = vadd.f32 1.0, %v371_v23  ;;  %v372_v21 = vsel %vm362_vm6, %v357_v13, %v367_v30 }
 0x24b   :  { %v450_v33 = vpack.c.bf16 %v384_v28, %v383_v27  ;;  %v377_v25 = vadd.f32 1.0, %v372_v21 }
 0x24c   :  { %v325_v29 = vadd.f32 0.2548296, %v320_v26  ;;  %v381_v36 = vmul.f32 %v376_v32, %v251_v34 }
 0x24d   :  { %453 = vst [vmem:[%s659_s5 + $0x8] sm:$0xff] %v450_v33   ;;  %v382_v40 = vmul.f32 %v377_v25, %v252_v35 }
 0x24e   :  { %v330_v38 = vmul.f32 %v502_v43, %v325_v29 }
 0x24f   :  { %v445_v42 = vpack.c.bf16 %v382_v40, %v381_v36 }
 0x250   :  { %v355_v41 = vmul.f32 %v512_v39, %v330_v38 }
 0x251   :  { %446 = vst [vmem:[%s659_s5] sm:$0xff] %v445_v42  }
 0x252   :  { %v360_v45 = vsub.f32 1.0, %v355_v41 }
 0x254   :  { %v370_v44 = vsub.f32 0.0, %v360_v45 }
 0x256   :  { %v375_v31 = vsel %vm365_vm7, %v360_v45, %v370_v44 }
 0x257   :  { %v380_v43 = vadd.f32 1.0, %v375_v31 }
 0x259   :  { %v385_v46 = vmul.f32 %v380_v43, %v255_v37 }
 0x25b   :  { %v433_v47 = vpack.c.bf16 %v385_v46, %v385_v46 }
 0x25d   :  { %411 = vst [vmem:[%s659_s5 + $0x10] sm:$0x1] %v433_v47 }

// kernel: _lambda_.37
= control target key start
LH: loop header
LB: loop body
LE: loop exit
PB: predicated region body
PF: predicated region fallthrough
CT: control target
= control target key end

     0   :  { %vm103_vm0 = vcmask 64512   ;;  %vm727_vm1 = vcmask 131072   ;;  %vm720_vm2 = vcmask 138240   ;;  %vm1017_vm3 = vcmask 1040384   ;;  %s2809_s1 = inlined_call_operand.vmem [shape: bf16[8,17,8], index: 1, kind: input, shape index: {}]   ;;  %s2810_s0 = inlined_call_operand.vmem [shape: bf16[8,17,8], index: 0, kind: input, shape index: {}]   ;;  %s2811_s2 = inlined_call_operand.vmem [shape: bf16[8,17,8], index: 2, kind: input, shape index: {}]   ;;  %s2812_s3 = inlined_call_operand.vmem [shape: bf16[8,17,8], index: 3, kind: output, shape index: {}]  }
   0x1   :  { %v2022_v0 = vld [vmem:[%s2809_s1] sm:$0xff]   ;;  %v2023_v1 = vld [vmem:[%s2809_s1 + $0xc] sm:$0xff]   ;;  %v2024_v3 = vld [vmem:[%s2809_s1 + $0x8] ss:$0 sps:$4 sm:$0x11]   ;;  %vm1640_vm4 = vcmask 57344  }
   0x2   :  { %2005 = vmatprep.subr.msk.bf16.mxu0 %vm103_vm0, %v2022_v0  ;;  %v111_v2 = vsel %vm103_vm0, %v2022_v0, 0  ;;  %2007 = vmatprep.subr.msk.bf16.mxu1 %vm103_vm0, %v2023_v1  ;;  %v187_v4 = vsel %vm103_vm0, %v2023_v1, 0  ;;  %v2025_v5 = vld [vmem:[%s2809_s1 + $0x14] ss:$0 sps:$4 sm:$0x11]   ;;  %v2026_v6 = vld [vmem:[%s2810_s0] sm:$0xff]  }
   0x3   :  { %1878 = vmatpush3.bf16.xpose.msra.mxu0 %v111_v2  ;;  %1886 = vmatpush3.bf16.xpose.msra.mxu1 %v187_v4  ;;  %v2027_v7 = vld [vmem:[%s2810_s0 + $0xc] sm:$0xff]   ;;  %v114_v8 = vsel %vm103_vm0, %v2024_v3, 0  ;;  %v2030_v9 = vld [vmem:[%s2809_s1 + $0x18] sm:$0xff]   ;;  %v190_v10 = vsel %vm103_vm0, %v2025_v5, 0  ;;  %v2031_v11 = vld [vmem:[%s2809_s1 + $0x24] sm:$0xff]   ;;  %vm1637_vm7 = vcmask 60416  }
   0x4   :  { %2006 = vmatprep.subr.msk.bf16.mxu0 %vm103_vm0, %v2024_v3  ;;  %2008 = vmatprep.subr.msk.bf16.mxu1 %vm103_vm0, %v2025_v5  ;;  %v2028_v12 = vld [vmem:[%s2810_s0 + $0x8] ss:$0 sps:$4 sm:$0x11]   ;;  %v2029_v13 = vld [vmem:[%s2810_s0 + $0x14] ss:$0 sps:$4 sm:$0x11]  }
   0x5   :  { %1881 = vmatprep.mubr.msk.bf16.mxu0 %vm103_vm0, %v2026_v6  ;;  %1889 = vmatprep.mubr.msk.bf16.mxu1 %vm103_vm0, %v2027_v7  ;;  %v263_v14 = vsel %vm103_vm0, %v2030_v9, 0  ;;  %v339_v15 = vsel %vm103_vm0, %v2031_v11, 0  ;;  %v2032_v16 = vld [vmem:[%s2809_s1 + $0x20] ss:$0 sps:$4 sm:$0x11]   ;;  %v2034_v18 = vld [vmem:[%s2810_s0 + $0x18] sm:$0xff]  }
   0x6   :  { %v2033_v17 = vld [vmem:[%s2809_s1 + $0x2c] ss:$0 sps:$4 sm:$0x11]   ;;  %v2035_v19 = vld [vmem:[%s2810_s0 + $0x24] sm:$0xff]   ;;  %v266_v20 = vsel %vm103_vm0, %v2032_v16, 0  ;;  %v2038_v21 = vld [vmem:[%s2809_s1 + $0x30] sm:$0xff]  }
   0x7   :  { %v342_v22 = vsel %vm103_vm0, %v2033_v17, 0  ;;  %v2039_v23 = vld [vmem:[%s2809_s1 + $0x3c] sm:$0xff]   ;;  %v2037_v25 = vld [vmem:[%s2810_s0 + $0x2c] ss:$0 sps:$4 sm:$0x11]   ;;  %v415_v26 = vsel %vm103_vm0, %v2038_v21, 0 }
   0x8   :  { %v2036_v24 = vld [vmem:[%s2810_s0 + $0x20] ss:$0 sps:$4 sm:$0x11]   ;;  %v2040_v27 = vld [vmem:[%s2809_s1 + $0x38] ss:$0 sps:$4 sm:$0x11]  }
   0x9   :  { %v491_v28 = vsel %vm103_vm0, %v2039_v23, 0  ;;  %v2041_v29 = vld [vmem:[%s2809_s1 + $0x44] ss:$0 sps:$4 sm:$0x11]   ;;  %v2042_v30 = vld [vmem:[%s2810_s0 + $0x30] sm:$0xff]   ;;  %v2043_v31 = vld [vmem:[%s2810_s0 + $0x3c] sm:$0xff]  }
   0xa   :  { %v418_v32 = vsel %vm103_vm0, %v2040_v27, 0  ;;  %v2046_v33 = vld [vmem:[%s2809_s1 + $0x48] sm:$0xff]   ;;  %v494_v34 = vsel %vm103_vm0, %v2041_v29, 0  ;;  %v2047_v35 = vld [vmem:[%s2809_s1 + $0x54] sm:$0xff]   ;;  %vm1641_vm5 = vsmask.f32 256 }
   0xb   :  { %1880 = vmatpush3.bf16.xpose.msra.mxu0 %v114_v8  ;;  %1888 = vmatpush3.bf16.xpose.msra.mxu1 %v190_v10  ;;  %v2044_v36 = vld [vmem:[%s2810_s0 + $0x38] ss:$0 sps:$4 sm:$0x11]   ;;  %v2045_v37 = vld [vmem:[%s2810_s0 + $0x44] ss:$0 sps:$4 sm:$0x11]   ;;  %vm2677_vm6 = vmand %vm1640_vm4, %vm1641_vm5 }
   0xc   :  { %2009 = vmatprep.subr.msk.bf16.mxu0 %vm103_vm0, %v2030_v9  ;;  %2011 = vmatprep.subr.msk.bf16.mxu1 %vm103_vm0, %v2031_v11  ;;  %v567_v38 = vsel %vm103_vm0, %v2046_v33, 0  ;;  %v2048_v39 = vld [vmem:[%s2809_s1 + $0x50] ss:$0 sps:$4 sm:$0x11]   ;;  %v643_v40 = vsel %vm103_vm0, %v2047_v35, 0  ;;  %v2050_v42 = vld [vmem:[%s2810_s0 + $0x48] sm:$0xff]  }
   0xd   :  { %v2049_v41 = vld [vmem:[%s2809_s1 + $0x5c] ss:$0 sps:$4 sm:$0x11]   ;;  %v2052_v43 = vld [vmem:[%s2810_s0 + $0x54] sm:$0xff]   ;;  %v570_v44 = vsel %vm103_vm0, %v2048_v39, 0 }
   0xe   :  { %v646_v45 = vsel %vm103_vm0, %v2049_v41, 0  ;;  %v2051_v46 = vld [vmem:[%s2810_s0 + $0x50] ss:$0 sps:$4 sm:$0x11]  }
   0xf   :  { %v2053_v47 = vld [vmem:[%s2810_s0 + $0x5c] ss:$0 sps:$4 sm:$0x11]  }
  0x12   :  { %1882 = vmatmul.mubr.msk.bf16.vlgmr.msra.gmra.mrb[0].mxu0 %vm103_vm0, %v2028_v12  ;;  %1890 = vmatmul.mubr.msk.bf16.vlgmr.msra.gmra.mrb[0].mxu1 %vm103_vm0, %v2029_v13 }
  0x13   :  { %1894 = vmatpush3.bf16.xpose.msra.mxu0 %v263_v14  ;;  %1902 = vmatpush3.bf16.xpose.msra.mxu1 %v339_v15 }
  0x14   :  { %2010 = vmatprep.subr.msk.bf16.mxu0 %vm103_vm0, %v2032_v16  ;;  %2012 = vmatprep.subr.msk.bf16.mxu1 %vm103_vm0, %v2033_v17 }
  0x15   :  { %1897 = vmatprep.mubr.msk.bf16.mxu0 %vm103_vm0, %v2034_v18  ;;  %1905 = vmatprep.mubr.msk.bf16.mxu1 %vm103_vm0, %v2035_v19 }
  0x1b   :  { %1896 = vmatpush3.bf16.xpose.msra.mxu0 %v266_v20  ;;  %1904 = vmatpush3.bf16.xpose.msra.mxu1 %v342_v22 }
  0x1c   :  { %2013 = vmatprep.subr.msk.bf16.mxu0 %vm103_vm0, %v2038_v21  ;;  %2015 = vmatprep.subr.msk.bf16.mxu1 %vm103_vm0, %v2039_v23 }
  0x22   :  { %1898 = vmatmul.mubr.msk.bf16.vlgmr.msra.gmra.mrb[4].mxu0 %vm103_vm0, %v2036_v24  ;;  %1906 = vmatmul.mubr.msk.bf16.vlgmr.msra.gmra.mrb[4].mxu1 %vm103_vm0, %v2037_v25 }
  0x23   :  { %1910 = vmatpush3.bf16.xpose.msra.mxu0 %v415_v26  ;;  %1918 = vmatpush3.bf16.xpose.msra.mxu1 %v491_v28 }
  0x24   :  { %2014 = vmatprep.subr.msk.bf16.mxu0 %vm103_vm0, %v2040_v27  ;;  %2016 = vmatprep.subr.msk.bf16.mxu1 %vm103_vm0, %v2041_v29 }
  0x25   :  { %1913 = vmatprep.mubr.msk.bf16.mxu0 %vm103_vm0, %v2042_v30  ;;  %1921 = vmatprep.mubr.msk.bf16.mxu1 %vm103_vm0, %v2043_v31 }
  0x2b   :  { %1912 = vmatpush3.bf16.xpose.msra.mxu0 %v418_v32  ;;  %1920 = vmatpush3.bf16.xpose.msra.mxu1 %v494_v34 }
  0x2c   :  { %2017 = vmatprep.subr.msk.bf16.mxu0 %vm103_vm0, %v2046_v33  ;;  %2019 = vmatprep.subr.msk.bf16.mxu1 %vm103_vm0, %v2047_v35 }
  0x32   :  { %1914 = vmatmul.mubr.msk.bf16.vlgmr.msra.gmra.mrb[8].mxu0 %vm103_vm0, %v2044_v36  ;;  %1922 = vmatmul.mubr.msk.bf16.vlgmr.msra.gmra.mrb[8].mxu1 %vm103_vm0, %v2045_v37 }
  0x33   :  { %1926 = vmatpush3.bf16.xpose.msra.mxu0 %v567_v38  ;;  %1934 = vmatpush3.bf16.xpose.msra.mxu1 %v643_v40 }
  0x34   :  { %2018 = vmatprep.subr.msk.bf16.mxu0 %vm103_vm0, %v2048_v39  ;;  %2020 = vmatprep.subr.msk.bf16.mxu1 %vm103_vm0, %v2049_v41 }
  0x35   :  { %1929 = vmatprep.mubr.msk.bf16.mxu0 %vm103_vm0, %v2050_v42  ;;  %1937 = vmatprep.mubr.msk.bf16.mxu1 %vm103_vm0, %v2052_v43 }
  0x3b   :  { %1928 = vmatpush3.bf16.xpose.msra.mxu0 %v570_v44  ;;  %1936 = vmatpush3.bf16.xpose.msra.mxu1 %v646_v45 }
  0x42   :  { %1930 = vmatmul.mubr.msk.bf16.vlgmr.msra.gmra.mrb[12].mxu0 %vm103_vm0, %v2051_v46  ;;  %1938 = vmatmul.mubr.msk.bf16.vlgmr.msra.gmra.mrb[12].mxu1 %vm103_vm0, %v2053_v47 }
  0xe5   :  { %v1883_v48 = vpop.f32.mrb[0].mxu0  ;;  %v1891_v50 = vpop.f32.mrb[0].mxu1 }
  0xe6   :  { %v2331_v49 = vmul.f32 0.35355338, %v1883_v48  ;;  %v150_v51 = vpop.f32.mrb[1].mxu0  ;;  %v2333_v52 = vmul.f32 0.35355338, %v1891_v50  ;;  %v226_v55 = vpop.f32.mrb[1].mxu1 }
  0xe7   :  { %v2335_v53 = vmul.f32 0.35355338, %v150_v51  ;;  %v1884_v54 = vpop.f32.mrb[2].mxu0  ;;  %v2337_v57 = vmul.f32 0.35355338, %v226_v55  ;;  %v1892_v58 = vpop.f32.mrb[2].mxu1 }
  0xe8   :  { %v153_v56 = vpop.f32.mrb[3].mxu0  ;;  %v728_v59 = vsel %vm727_vm1, %v2331_v49, -inf  ;;  %v737_v60 = vsel %vm727_vm1, %v2333_v52, -inf  ;;  %v229_v61 = vpop.f32.mrb[3].mxu1 }
  0xe9   :  { %729 = vmax.xlane.f32.xlu0 %v728_v59  ;;  %738 = vmax.xlane.f32.xlu1 %v737_v60  ;;  %v731_v62 = vsel %vm720_vm2, %v2337_v57, -inf  ;;  %v2345_v63 = vmul.f32 0.35355338, %v153_v56  ;;  %v721_v0 = vsel %vm720_vm2, %v2335_v53, -inf  ;;  %v2349_v1 = vmul.f32 0.35355338, %v229_v61 }
  0xeb   :  { %v724_v2 = vsel %vm720_vm2, %v2345_v63, -inf  ;;  %v734_v3 = vsel %vm720_vm2, %v2349_v1, -inf }
  0xed   :  { %722 = vmax.xlane.f32.xlu0 %v721_v0  ;;  %732 = vmax.xlane.f32.xlu1 %v731_v62 }
  0xf1   :  { %725 = vmax.xlane.f32.xlu0 %v724_v2  ;;  %735 = vmax.xlane.f32.xlu1 %v734_v3 }
  0xf5   :  { %v1899_v4 = vpop.f32.mrb[4].mxu0  ;;  %v1907_v6 = vpop.f32.mrb[4].mxu1 }
  0xf6   :  { %v2355_v5 = vmul.f32 0.35355338, %v1899_v4  ;;  %v302_v7 = vpop.f32.mrb[5].mxu0  ;;  %v2357_v8 = vmul.f32 0.35355338, %v1907_v6  ;;  %v378_v10 = vpop.f32.mrb[5].mxu1 }
  0xf7   :  { %v1900_v9 = vpop.f32.mrb[6].mxu0  ;;  %v2359_v11 = vmul.f32 0.35355338, %v302_v7  ;;  %v1908_v13 = vpop.f32.mrb[6].mxu1  ;;  %v2369_v19 = vmul.f32 0.35355338, %v378_v10 }
  0xf8   :  { %v305_v12 = vpop.f32.mrb[7].mxu0  ;;  %v746_v14 = vsel %vm727_vm1, %v2355_v5, -inf  ;;  %v755_v16 = vsel %vm727_vm1, %v2357_v8, -inf  ;;  %v381_v17 = vpop.f32.mrb[7].mxu1 }
  0xf9   :  { %v2363_v15 = vmul.f32 0.35355338, %v305_v12  ;;  %747 = vmax.xlane.f32.xlu0 %v746_v14  ;;  %756 = vmax.xlane.f32.xlu1 %v755_v16  ;;  %v740_v20 = vsel %vm720_vm2, %v2359_v11, -inf  ;;  %v2373_v21 = vmul.f32 0.35355338, %v381_v17  ;;  %v749_v22 = vsel %vm720_vm2, %v2369_v19, -inf }
  0xfb   :  { %v743_v18 = vsel %vm720_vm2, %v2363_v15, -inf  ;;  %v752_v23 = vsel %vm720_vm2, %v2373_v21, -inf }
  0xfd   :  { %741 = vmax.xlane.f32.xlu0 %v740_v20  ;;  %744 = vmax.xlane.f32.xlu1 %v743_v18 }
 0x101   :  { %750 = vmax.xlane.f32.xlu0 %v749_v22  ;;  %753 = vmax.xlane.f32.xlu1 %v752_v23 }
 0x105   :  { %v1915_v24 = vpop.f32.mrb[8].mxu0  ;;  %v1923_v26 = vpop.f32.mrb[8].mxu1 }
 0x106   :  { %v2379_v25 = vmul.f32 0.35355338, %v1915_v24  ;;  %v454_v27 = vpop.f32.mrb[9].mxu0  ;;  %v2381_v28 = vmul.f32 0.35355338, %v1923_v26  ;;  %v530_v30 = vpop.f32.mrb[9].mxu1 }
 0x107   :  { %v1916_v29 = vpop.f32.mrb[10].mxu0  ;;  %v2383_v31 = vmul.f32 0.35355338, %v454_v27  ;;  %v1924_v33 = vpop.f32.mrb[10].mxu1  ;;  %v2393_v39 = vmul.f32 0.35355338, %v530_v30 }
 0x108   :  { %v457_v32 = vpop.f32.mrb[11].mxu0  ;;  %v764_v34 = vsel %vm727_vm1, %v2379_v25, -inf  ;;  %v773_v36 = vsel %vm727_vm1, %v2381_v28, -inf  ;;  %v533_v37 = vpop.f32.mrb[11].mxu1 }
 0x109   :  { %v2387_v35 = vmul.f32 0.35355338, %v457_v32  ;;  %765 = vmax.xlane.f32.xlu0 %v764_v34  ;;  %774 = vmax.xlane.f32.xlu1 %v773_v36  ;;  %v758_v40 = vsel %vm720_vm2, %v2383_v31, -inf  ;;  %v2397_v41 = vmul.f32 0.35355338, %v533_v37  ;;  %v767_v42 = vsel %vm720_vm2, %v2393_v39, -inf }
 0x10b   :  { %v761_v38 = vsel %vm720_vm2, %v2387_v35, -inf  ;;  %v770_v43 = vsel %vm720_vm2, %v2397_v41, -inf }
 0x10d   :  { %759 = vmax.xlane.f32.xlu0 %v758_v40  ;;  %762 = vmax.xlane.f32.xlu1 %v761_v38 }
 0x111   :  { %768 = vmax.xlane.f32.xlu0 %v767_v42  ;;  %771 = vmax.xlane.f32.xlu1 %v770_v43 }
 0x115   :  { %v1931_v44 = vpop.f32.mrb[12].mxu0  ;;  %v1939_v46 = vpop.f32.mrb[12].mxu1 }
 0x116   :  { %v606_v45 = vpop.f32.mrb[13].mxu0  ;;  %v682_v50 = vpop.f32.mrb[13].mxu1  ;;  %v2417_v0 = vmul.f32 0.35355338, %v1931_v44  ;;  %v2419_v2 = vmul.f32 0.35355338, %v1939_v46 }
 0x117   :  { %v2403_v47 = vmul.f32 0.35355338, %v606_v45  ;;  %v1932_v48 = vpop.f32.mrb[14].mxu0  ;;  %v2405_v51 = vmul.f32 0.35355338, %v682_v50  ;;  %v1940_v55 = vpop.f32.mrb[14].mxu1 }
 0x118   :  { %v609_v54 = vpop.f32.mrb[15].mxu0  ;;  %v685_v58 = vpop.f32.mrb[15].mxu1  ;;  %v782_v4 = vsel %vm727_vm1, %v2417_v0, -inf  ;;  %v791_v6 = vsel %vm727_vm1, %v2419_v2, -inf }
 0x119   :  { %v2407_v56 = vmul.f32 0.35355338, %v609_v54  ;;  %v776_v59 = vsel %vm720_vm2, %v2403_v47, -inf  ;;  %v2411_v60 = vmul.f32 0.35355338, %v685_v58  ;;  %v785_v62 = vsel %vm720_vm2, %v2405_v51, -inf }
 0x11a   :  { %777 = vmax.xlane.f32.xlu0 %v776_v59 }
 0x11b   :  { %v779_v61 = vsel %vm720_vm2, %v2407_v56, -inf  ;;  %v788_v3 = vsel %vm720_vm2, %v2411_v60, -inf }
 0x11c   :  { %780 = vmax.xlane.f32.xlu1 %v779_v61 }
 0x11e   :  { %786 = vmax.xlane.f32.xlu0 %v785_v62 }
 0x120   :  { %789 = vmax.xlane.f32.xlu1 %v788_v3 }
 0x122   :  { %783 = vmax.xlane.f32.xlu0 %v782_v4 }
 0x124   :  { %792 = vmax.xlane.f32.xlu1 %v791_v6 }
 0x176   :  { %v730_v7 = vpop.xlane.xlu0 %729  ;;  %v739_v9 = vpop.xlane.xlu1 %738 }
 0x177   :  { %v796_v10 = vsub.f32 %v2331_v49, %v730_v7  ;;  %v799_v12 = vsub.f32 %v2333_v52, %v739_v9 }
 0x179   :  { %v822_v13 = vmul.f32 1.442695, %v796_v10  ;;  %v828_v14 = vmul.f32 1.442695, %v799_v12 }
 0x17a   :  { %v723_v16 = vpop.xlane.xlu0 %722  ;;  %v733_v17 = vpop.xlane.xlu1 %732 }
 0x17b   :  { %2070 = vpow2.f32 %v822_v13  ;;  %v794_v18 = vsub.f32 %v2335_v53, %v723_v16  ;;  %v797_v20 = vsub.f32 %v2337_v57, %v733_v17 }
 0x17c   :  { %2072 = vpow2.f32 %v828_v14 }
 0x17d   :  { %v818_v22 = vmul.f32 1.442695, %v794_v18  ;;  %v824_v23 = vmul.f32 1.442695, %v797_v20 }
 0x17e   :  { %v726_v24 = vpop.xlane.xlu0 %725  ;;  %v736_v26 = vpop.xlane.xlu1 %735 }
 0x17f   :  { %2074 = vpow2.f32 %v818_v22  ;;  %v795_v27 = vsub.f32 %v2345_v63, %v726_v24  ;;  %v798_v49 = vsub.f32 %v2349_v1, %v736_v26 }
 0x180   :  { %2076 = vpow2.f32 %v824_v23 }
 0x181   :  { %v820_v52 = vmul.f32 1.442695, %v795_v27  ;;  %v826_v29 = vmul.f32 1.442695, %v798_v49 }
 0x183   :  { %2078 = vpow2.f32 %v820_v52 }
 0x184   :  { %2080 = vpow2.f32 %v826_v29 }
 0x185   :  { %v2433_v30 = vpop.eup %2070 }
 0x186   :  { %v2435_v53 = vpop.eup %2072  ;;  %v748_v32 = vpop.xlane.xlu0 %747  ;;  %v872_v57 = vsel %vm727_vm1, %v2433_v30, 0.0 }
 0x187   :  { %v757_v33 = vpop.xlane.xlu1 %756  ;;  %v802_v34 = vsub.f32 %v2355_v5, %v748_v32  ;;  %873 = vadd.xlane.f32.xlu0 %v872_v57  ;;  %v881_v63 = vsel %vm727_vm1, %v2435_v53, 0.0 }
 0x188   :  { %v805_v1 = vsub.f32 %v2357_v8, %v757_v33  ;;  %882 = vadd.xlane.f32.xlu1 %v881_v63  ;;  %v2054_v63 = vld [vmem:[%s2811_s2] sm:$0xff]  }
 0x189   :  { %v2443_v36 = vpop.eup %2074  ;;  %v834_v37 = vmul.f32 1.442695, %v802_v34  ;;  %1941 = vmatprep.subr.bf16.mxu0 %v2054_v63 }
 0x18a   :  { %v840_v38 = vmul.f32 1.442695, %v805_v1  ;;  %v742_v40 = vpop.xlane.xlu0 %741  ;;  %v866_v42 = vsel %vm720_vm2, %v2443_v36, 0.0  ;;  %v2447_v43 = vpop.eup %2076  ;;  %1942 = vmatpush3.bf16.msra.mxu0 %v2054_v63 }
 0x18b   :  { %2082 = vpow2.f32 %v834_v37  ;;  %v800_v5 = vsub.f32 %v2359_v11, %v742_v40  ;;  %v745_v44 = vpop.xlane.xlu1 %744  ;;  %867 = vadd.xlane.f32.xlu0 %v866_v42  ;;  %v875_v54 = vsel %vm720_vm2, %v2447_v43, 0.0  ;;  %v2166_v42 = vmov 0  }
 0x18c   :  { %2084 = vpow2.f32 %v840_v38  ;;  %v801_v45 = vsub.f32 %v2363_v15, %v745_v44 }
 0x18d   :  { %v2451_v8 = vpop.eup %2078  ;;  %v830_v46 = vmul.f32 1.442695, %v800_v5  ;;  %v2507_v5 = vsel %vm1017_vm3, 65535, %v2166_v42 }
 0x18e   :  { %v832_v48 = vmul.f32 1.442695, %v801_v45  ;;  %v751_v50 = vpop.xlane.xlu0 %750  ;;  %v869_v55 = vsel %vm720_vm2, %v2451_v8, 0.0  ;;  %v2457_v58 = vpop.eup %2080 }
 0x18f   :  { %2086 = vpow2.f32 %v830_v46  ;;  %v803_v11 = vsub.f32 %v2369_v19, %v751_v50  ;;  %v754_v59 = vpop.xlane.xlu1 %753  ;;  %876 = vadd.xlane.f32.xlu0 %v875_v54  ;;  %870 = vadd.xlane.f32.xlu1 %v869_v55  ;;  %v878_v3 = vsel %vm720_vm2, %v2457_v58, 0.0  ;;  %v2056_v46 = vld [vmem:[%s2811_s2 + $0xc] sm:$0xff]  }
 0x190   :  { %2088 = vpow2.f32 %v832_v48  ;;  %v804_v15 = vsub.f32 %v2373_v21, %v754_v59  ;;  %1949 = vmatprep.subr.bf16.mxu1 %v2056_v46 }
 0x191   :  { %v836_v61 = vmul.f32 1.442695, %v803_v11  ;;  %1950 = vmatpush3.bf16.msra.mxu1 %v2056_v46  ;;  %v2068_v46 = vld [vmem:[%s2811_s2 + $0x50] ss:$0 sps:$4 sm:$0x11]  }
 0x192   :  { %v838_v62 = vmul.f32 1.442695, %v804_v15 }
 0x193   :  { %2090 = vpow2.f32 %v836_v61  ;;  %879 = vadd.xlane.f32.xlu1 %v878_v3 }
 0x194   :  { %2092 = vpow2.f32 %v838_v62 }
 0x195   :  { %v2463_v4 = vpop.eup %2082 }
 0x196   :  { %v2465_v6 = vpop.eup %2084  ;;  %v766_v7 = vpop.xlane.xlu0 %765  ;;  %v890_v19 = vsel %vm727_vm1, %v2463_v4, 0.0 }
 0x197   :  { %v775_v9 = vpop.xlane.xlu1 %774  ;;  %v808_v10 = vsub.f32 %v2379_v25, %v766_v7  ;;  %891 = vadd.xlane.f32.xlu0 %v890_v19  ;;  %v899_v21 = vsel %vm727_vm1, %v2465_v6, 0.0 }
 0x198   :  { %v811_v12 = vsub.f32 %v2381_v28, %v775_v9  ;;  %900 = vadd.xlane.f32.xlu1 %v899_v21 }
 0x199   :  { %v2473_v13 = vpop.eup %2086  ;;  %v846_v14 = vmul.f32 1.442695, %v808_v10 }
 0x19a   :  { %v2475_v16 = vpop.eup %2088  ;;  %v852_v17 = vmul.f32 1.442695, %v811_v12  ;;  %v760_v18 = vpop.xlane.xlu0 %759  ;;  %v884_v20 = vsel %vm720_vm2, %v2473_v13, 0.0 }
 0x19b   :  { %2094 = vpow2.f32 %v846_v14  ;;  %v806_v25 = vsub.f32 %v2383_v31, %v760_v18  ;;  %v763_v22 = vpop.xlane.xlu1 %762  ;;  %885 = vadd.xlane.f32.xlu0 %v884_v20  ;;  %v887_v23 = vsel %vm720_vm2, %v2475_v16, 0.0  ;;  %v2541_v20 = vld [vmem:[%s2811_s2 + $0x18] sm:$0xff]  }
 0x19c   :  { %2096 = vpow2.f32 %v852_v17  ;;  %v807_v28 = vsub.f32 %v2387_v35, %v763_v22  ;;  %888 = vadd.xlane.f32.xlu1 %v887_v23  ;;  %v2059_v23 = vld [vmem:[%s2811_s2 + $0x20] ss:$0 sps:$4 sm:$0x11]  }
 0x19d   :  { %v2483_v24 = vpop.eup %2090  ;;  %v842_v26 = vmul.f32 1.442695, %v806_v25 }
 0x19e   :  { %v2485_v27 = vpop.eup %2092  ;;  %v844_v49 = vmul.f32 1.442695, %v807_v28  ;;  %v769_v52 = vpop.xlane.xlu0 %768  ;;  %v893_v29 = vsel %vm720_vm2, %v2483_v24, 0.0  ;;  %v2549_v28 = vand.u32 %v2059_v23, %v2507_v5 }
 0x19f   :  { %2098 = vpow2.f32 %v842_v26  ;;  %v809_v31 = vsub.f32 %v2393_v39, %v769_v52  ;;  %v772_v32 = vpop.xlane.xlu1 %771  ;;  %894 = vadd.xlane.f32.xlu0 %v893_v29  ;;  %v896_v57 = vsel %vm720_vm2, %v2485_v27, 0.0  ;;  %v2554_v26 = vld [vmem:[%s2811_s2 + $0x24] sm:$0xff]  }
 0x1a0   :  { %2100 = vpow2.f32 %v844_v49  ;;  %v810_v35 = vsub.f32 %v2397_v41, %v772_v32  ;;  %897 = vadd.xlane.f32.xlu1 %v896_v57  ;;  %v2055_v41 = vld [vmem:[%s2811_s2 + $0x8] ss:$0 sps:$4 sm:$0x11]  }
 0x1a1   :  { %v848_v33 = vmul.f32 1.442695, %v809_v31  ;;  %v1021_v45 = vand.u32 %v2055_v41, %v2507_v5 }
 0x1a2   :  { %v850_v34 = vmul.f32 1.442695, %v810_v35 }
 0x1a3   :  { %2102 = vpow2.f32 %v848_v33  ;;  %1943 = vmatprep.subr.bf16.mxu0 %v1021_v45 }
 0x1a4   :  { %2104 = vpow2.f32 %v850_v34  ;;  %1944 = vmatpush3.bf16.msra.mxu0 %v1021_v45 }
 0x1a5   :  { %v2496_v1 = vpop.eup %2094  ;;  %1957 = vmatprep.subr.bf16.mxu0 %v2541_v20 }
 0x1a6   :  { %v2498_v39 = vpop.eup %2096  ;;  %v908_v37 = vsel %vm727_vm1, %v2496_v1, 0.0 }
 0x1a7   :  { %909 = vadd.xlane.f32.xlu0 %v908_v37  ;;  %v778_v38 = vpop.xlane.xlu0 %777  ;;  %v917_v40 = vsel %vm727_vm1, %v2498_v39, 0.0 }
 0x1a8   :  { %v812_v44 = vsub.f32 %v2403_v47, %v778_v38  ;;  %918 = vadd.xlane.f32.xlu1 %v917_v40  ;;  %v2057_v47 = vld [vmem:[%s2811_s2 + $0x14] ss:$0 sps:$4 sm:$0x11]   ;;  %v2063_v40 = vld [vmem:[%s2811_s2 + $0x38] ss:$0 sps:$4 sm:$0x11]  }
 0x1a9   :  { %v2514_v48 = vpop.eup %2098  ;;  %v781_v50 = vpop.xlane.xlu1 %780  ;;  %v2591_v42 = vand.u32 %v2063_v40, %v2507_v5 }
 0x1aa   :  { %v2516_v54 = vpop.eup %2100  ;;  %v854_v55 = vmul.f32 1.442695, %v812_v44  ;;  %v813_v11 = vsub.f32 %v2407_v56, %v781_v50  ;;  %v902_v59 = vsel %vm720_vm2, %v2514_v48, 0.0  ;;  %v1087_v56 = vand.u32 %v2057_v47, %v2507_v5  ;;  %v2065_v44 = vld [vmem:[%s2811_s2 + $0x44] ss:$0 sps:$4 sm:$0x11]  }
 0x1ab   :  { %903 = vadd.xlane.f32.xlu0 %v902_v59  ;;  %v787_v15 = vpop.xlane.xlu0 %786  ;;  %v905_v61 = vsel %vm720_vm2, %v2516_v54, 0.0  ;;  %v2597_v45 = vand.u32 %v2065_v44, %v2507_v5  ;;  %v2603_v50 = vand.u32 %v2068_v46, %v2507_v5 }
 0x1ac   :  { %2106 = vpow2.f32 %v854_v55  ;;  %v856_v62 = vmul.f32 1.442695, %v813_v11  ;;  %v815_v3 = vsub.f32 %v2405_v51, %v787_v15  ;;  %906 = vadd.xlane.f32.xlu1 %v905_v61  ;;  %1951 = vmatprep.subr.bf16.mxu1 %v1087_v56  ;;  %v2069_v55 = vld [vmem:[%s2811_s2 + $0x5c] ss:$0 sps:$4 sm:$0x11]  }
 0x1ad   :  { %v2528_v7 = vpop.eup %2102  ;;  %v790_v19 = vpop.xlane.xlu1 %789  ;;  %1952 = vmatpush3.bf16.msra.mxu1 %v1087_v56  ;;  %v2609_v11 = vand.u32 %v2069_v55, %v2507_v5 }
 0x1ae   :  { %v2530_v9 = vpop.eup %2104  ;;  %2108 = vpow2.f32 %v856_v62  ;;  %v860_v10 = vmul.f32 1.442695, %v815_v3  ;;  %v816_v21 = vsub.f32 %v2411_v60, %v790_v19  ;;  %v911_v12 = vsel %vm720_vm2, %v2528_v7, 0.0  ;;  %1965 = vmatprep.subr.bf16.mxu1 %v2554_v26 }
 0x1af   :  { %912 = vadd.xlane.f32.xlu0 %v911_v12  ;;  %v784_v14 = vpop.xlane.xlu0 %783  ;;  %v914_v51 = vsel %vm720_vm2, %v2530_v9, 0.0 }
 0x1b0   :  { %2110 = vpow2.f32 %v860_v10  ;;  %v862_v17 = vmul.f32 1.442695, %v816_v21  ;;  %v814_v18 = vsub.f32 %v2417_v0, %v784_v14  ;;  %915 = vadd.xlane.f32.xlu1 %v914_v51 }
 0x1b1   :  { %v793_v60 = vpop.xlane.xlu1 %792 }
 0x1b2   :  { %2112 = vpow2.f32 %v862_v17  ;;  %v858_v25 = vmul.f32 1.442695, %v814_v18  ;;  %v817_v22 = vsub.f32 %v2419_v2, %v793_v60  ;;  %v2061_v2 = vld [vmem:[%s2811_s2 + $0x2c] ss:$0 sps:$4 sm:$0x11]  }
 0x1b3   :  { %v2567_v31 = vand.u32 %v2061_v2, %v2507_v5 }
 0x1b4   :  { %2114 = vpow2.f32 %v858_v25  ;;  %v864_v0 = vmul.f32 1.442695, %v817_v22 }
 0x1b6   :  { %v2556_v49 = vpop.eup %2106  ;;  %2116 = vpow2.f32 %v864_v0 }
 0x1b7   :  { %v920_v52 = vsel %vm720_vm2, %v2556_v49, 0.0 }
 0x1b8   :  { %v2564_v29 = vpop.eup %2108  ;;  %921 = vadd.xlane.f32.xlu0 %v920_v52 }
 0x1b9   :  { %v923_v32 = vsel %vm720_vm2, %v2564_v29, 0.0 }
 0x1ba   :  { %v2571_v57 = vpop.eup %2110  ;;  %924 = vadd.xlane.f32.xlu1 %v923_v32 }
 0x1bb   :  { %v929_v35 = vsel %vm720_vm2, %v2571_v57, 0.0 }
 0x1bc   :  { %v2575_v33 = vpop.eup %2112  ;;  %930 = vadd.xlane.f32.xlu0 %v929_v35 }
 0x1bd   :  { %v932_v34 = vsel %vm720_vm2, %v2575_v33, 0.0 }
 0x1be   :  { %v2579_v63 = vpop.eup %2114  ;;  %933 = vadd.xlane.f32.xlu1 %v932_v34 }
 0x1bf   :  { %v926_v37 = vsel %vm727_vm1, %v2579_v63, 0.0 }
 0x1c0   :  { %v2583_v41 = vpop.eup %2116  ;;  %927 = vadd.xlane.f32.xlu0 %v926_v37 }
 0x1c1   :  { %v935_v38 = vsel %vm727_vm1, %v2583_v41, 0.0 }
 0x1c2   :  { %936 = vadd.xlane.f32.xlu1 %v935_v38 }
 0x214   :  { %v874_v59 = vpop.xlane.xlu0 %873 }
 0x215   :  { %v883_v47 = vpop.xlane.xlu1 %882  ;;  %2118 = vrcp.f32 %v874_v59 }
 0x218   :  { %v868_v15 = vpop.xlane.xlu0 %867 }
 0x219   :  { %2120 = vrcp.f32 %v868_v15 }
 0x21a   :  { %2122 = vrcp.f32 %v883_v47 }
 0x21c   :  { %v877_v61 = vpop.xlane.xlu0 %876  ;;  %v871_v62 = vpop.xlane.xlu1 %870 }
 0x21d   :  { %2124 = vrcp.f32 %v871_v62 }
 0x21e   :  { %2126 = vrcp.f32 %v877_v61 }
 0x21f   :  { %v2119_v19 = vpop.eup %2118 }
 0x220   :  { %v880_v3 = vpop.xlane.xlu1 %879  ;;  %v964_v14 = vmul.f32 %v2119_v19, %v2433_v30 }
 0x221   :  { %2128 = vrcp.f32 %v880_v3 }
 0x222   :  { %v987_v52 = vpack.c.bf16 %v964_v14, %v964_v14 }
 0x223   :  { %v2121_v21 = vpop.eup %2120 }
 0x224   :  { %v892_v56 = vpop.xlane.xlu0 %891  ;;  %v2123_v12 = vpop.eup %2122  ;;  %v962_v60 = vmul.f32 %v2121_v21, %v2443_v36 }
 0x225   :  { %v901_v10 = vpop.xlane.xlu1 %900  ;;  %2130 = vrcp.f32 %v892_v56  ;;  %v967_v23 = vmul.f32 %v2123_v12, %v2435_v53  ;;  %v2062_v53 = vld [vmem:[%s2811_s2 + $0x30] sm:$0xff]  }
 0x227   :  { %v2125_v5 = vpop.eup %2124 }
 0x228   :  { %v886_v51 = vpop.xlane.xlu0 %885  ;;  %v2127_v17 = vpop.eup %2126  ;;  %v963_v25 = vmul.f32 %v2125_v5, %v2451_v8  ;;  %v989_v8 = vpack.c.bf16 %v967_v23, %v967_v23 }
 0x229   :  { %2132 = vrcp.f32 %v886_v51  ;;  %v889_v18 = vpop.xlane.xlu1 %888  ;;  %v965_v32 = vmul.f32 %v2127_v17, %v2447_v43 }
 0x22a   :  { %2134 = vrcp.f32 %v889_v18  ;;  %v986_v0 = vpack.c.bf16 %v963_v25, %v962_v60 }
 0x22b   :  { %v2129_v22 = vpop.eup %2128  ;;  %2136 = vrcp.f32 %v901_v10 }
 0x22c   :  { %v895_v2 = vpop.xlane.xlu0 %894  ;;  %v966_v30 = vmul.f32 %v2129_v22, %v2457_v58  ;;  %1945 = vmatprep.mubr.msk.bf16.mxu0 %vm720_vm2, %v986_v0 }
 0x22d   :  { %2138 = vrcp.f32 %v895_v2  ;;  %v898_v35 = vpop.xlane.xlu1 %897  ;;  %1946 = vmatmul.mubr.msk.bf16.vlgmr.msra.gmra.mrb[16].mxu0 %vm720_vm2, %v987_v52 }
 0x22e   :  { %2140 = vrcp.f32 %v898_v35  ;;  %v988_v36 = vpack.c.bf16 %v966_v30, %v965_v32  ;;  %1958 = vmatpush3.bf16.msra.mxu0 %v2541_v20  ;;  %v2064_v20 = vld [vmem:[%s2811_s2 + $0x3c] sm:$0xff]  }
 0x22f   :  { %1959 = vmatprep.subr.bf16.mxu0 %v2549_v28  ;;  %v2131_v43 = vpop.eup %2130 }
 0x230   :  { %1953 = vmatprep.mubr.msk.bf16.mxu1 %vm720_vm2, %v988_v36  ;;  %v970_v37 = vmul.f32 %v2131_v43, %v2463_v4 }
 0x231   :  { %1954 = vmatmul.mubr.msk.bf16.vlgmr.msra.gmra.mrb[16].mxu1 %vm720_vm2, %v989_v8 }
 0x232   :  { %1966 = vmatpush3.bf16.msra.mxu1 %v2554_v26  ;;  %1960 = vmatpush3.bf16.msra.mxu0 %v2549_v28  ;;  %v991_v61 = vpack.c.bf16 %v970_v37, %v970_v37 }
 0x233   :  { %v2133_v58 = vpop.eup %2132  ;;  %1967 = vmatprep.subr.bf16.mxu1 %v2567_v31  ;;  %1973 = vmatprep.subr.bf16.mxu0 %v2062_v53 }
 0x234   :  { %v2135_v34 = vpop.eup %2134  ;;  %v910_v38 = vpop.xlane.xlu0 %909  ;;  %v968_v40 = vmul.f32 %v2133_v58, %v2473_v13 }
 0x235   :  { %v2137_v44 = vpop.eup %2136  ;;  %v919_v46 = vpop.xlane.xlu1 %918  ;;  %v969_v26 = vmul.f32 %v2135_v34, %v2475_v16  ;;  %2142 = vrcp.f32 %v910_v38 }
 0x236   :  { %1968 = vmatpush3.bf16.msra.mxu1 %v2567_v31  ;;  %v973_v47 = vmul.f32 %v2137_v44, %v2465_v6  ;;  %v2066_v6 = vld [vmem:[%s2811_s2 + $0x48] sm:$0xff]  }
 0x237   :  { %v2139_v28 = vpop.eup %2138  ;;  %v990_v55 = vpack.c.bf16 %v969_v26, %v968_v40  ;;  %1981 = vmatprep.subr.bf16.mxu1 %v2064_v20  ;;  %v1648_v26 = vld [vmem:[%s2812_s3 + $0x14] sm:$0x1] }
 0x238   :  { %v2141_v59 = vpop.eup %2140  ;;  %v904_v15 = vpop.xlane.xlu0 %903  ;;  %v971_v4 = vmul.f32 %v2139_v28, %v2483_v24  ;;  %v993_v3 = vpack.c.bf16 %v973_v47, %v973_v47 }
 0x239   :  { %2144 = vrcp.f32 %v904_v15  ;;  %1961 = vmatprep.mubr.msk.bf16.mxu0 %vm720_vm2, %v990_v55  ;;  %v907_v13 = vpop.xlane.xlu1 %906  ;;  %v972_v62 = vmul.f32 %v2141_v59, %v2485_v27  ;;  %v2067_v27 = vld [vmem:[%s2811_s2 + $0x54] sm:$0xff]  }
 0x23a   :  { %2146 = vrcp.f32 %v907_v13  ;;  %1962 = vmatmul.mubr.msk.bf16.vlgmr.msra.gmra.mrb[20].mxu0 %vm720_vm2, %v991_v61 }
 0x23b   :  { %2148 = vrcp.f32 %v919_v46  ;;  %v992_v16 = vpack.c.bf16 %v972_v62, %v971_v4  ;;  %1974 = vmatpush3.bf16.msra.mxu0 %v2062_v53 }
 0x23c   :  { %v913_v31 = vpop.xlane.xlu0 %912  ;;  %1975 = vmatprep.subr.bf16.mxu0 %v2591_v42 }
 0x23d   :  { %2150 = vrcp.f32 %v913_v31  ;;  %1969 = vmatprep.mubr.msk.bf16.mxu1 %vm720_vm2, %v992_v16  ;;  %v916_v24 = vpop.xlane.xlu1 %915  ;;  %v1653_v16 = vld [vmem:[%s2812_s3 + $0x20] sm:$0x1] }
 0x23e   :  { %2152 = vrcp.f32 %v916_v24  ;;  %1970 = vmatmul.mubr.msk.bf16.vlgmr.msra.gmra.mrb[20].mxu1 %vm720_vm2, %v993_v3 }
 0x23f   :  { %1976 = vmatpush3.bf16.msra.mxu0 %v2591_v42  ;;  %1982 = vmatpush3.bf16.msra.mxu1 %v2064_v20  ;;  %v2143_v56 = vpop.eup %2142 }
 0x240   :  { %1983 = vmatprep.subr.bf16.mxu1 %v2597_v45  ;;  %1989 = vmatprep.subr.bf16.mxu0 %v2066_v6  ;;  %v976_v21 = vmul.f32 %v2143_v56, %v2496_v1 }
 0x242   :  { %v995_v22 = vpack.c.bf16 %v976_v21, %v976_v21  ;;  %v1658_v21 = vld [vmem:[%s2812_s3 + $0x2c] sm:$0x1] }
 0x243   :  { %v2145_v19 = vpop.eup %2144  ;;  %1984 = vmatpush3.bf16.msra.mxu1 %v2597_v45 }
 0x244   :  { %v2147_v10 = vpop.eup %2146  ;;  %v974_v12 = vmul.f32 %v2145_v19, %v2514_v48  ;;  %1997 = vmatprep.subr.bf16.mxu1 %v2067_v27 }
 0x245   :  { %v2149_v5 = vpop.eup %2148  ;;  %v922_v42 = vpop.xlane.xlu0 %921  ;;  %v975_v14 = vmul.f32 %v2147_v10, %v2516_v54 }
 0x246   :  { %2154 = vrcp.f32 %v922_v42  ;;  %v979_v25 = vmul.f32 %v2149_v5, %v2498_v39 }
 0x247   :  { %v2151_v51 = vpop.eup %2150  ;;  %v925_v17 = vpop.xlane.xlu1 %924  ;;  %v994_v18 = vpack.c.bf16 %v975_v14, %v974_v12 }
 0x248   :  { %v2153_v60 = vpop.eup %2152  ;;  %2156 = vrcp.f32 %v925_v17  ;;  %v977_v45 = vmul.f32 %v2151_v51, %v2528_v7  ;;  %v997_v0 = vpack.c.bf16 %v979_v25, %v979_v25  ;;  %v1663_v25 = vld [vmem:[%s2812_s3 + $0x38] sm:$0x1] }
 0x249   :  { %1977 = vmatprep.mubr.msk.bf16.mxu0 %vm720_vm2, %v994_v18  ;;  %v931_v1 = vpop.xlane.xlu0 %930  ;;  %v978_v48 = vmul.f32 %v2153_v60, %v2530_v9 }
 0x24a   :  { %2158 = vrcp.f32 %v931_v1  ;;  %1978 = vmatmul.mubr.msk.bf16.vlgmr.msra.gmra.mrb[24].mxu0 %vm720_vm2, %v995_v22 }
 0x24b   :  { %v934_v54 = vpop.xlane.xlu1 %933  ;;  %v996_v23 = vpack.c.bf16 %v978_v48, %v977_v45  ;;  %1990 = vmatpush3.bf16.msra.mxu0 %v2066_v6 }
 0x24c   :  { %2160 = vrcp.f32 %v934_v54  ;;  %1991 = vmatprep.subr.bf16.mxu0 %v2603_v50 }
 0x24d   :  { %1985 = vmatprep.mubr.msk.bf16.mxu1 %vm720_vm2, %v996_v23  ;;  %v928_v39 = vpop.xlane.xlu0 %927 }
 0x24e   :  { %2162 = vrcp.f32 %v928_v39  ;;  %1986 = vmatmul.mubr.msk.bf16.vlgmr.msra.gmra.mrb[24].mxu1 %vm720_vm2, %v997_v0 }
 0x24f   :  { %v937_v7 = vpop.xlane.xlu1 %936  ;;  %1998 = vmatpush3.bf16.msra.mxu1 %v2067_v27  ;;  %1992 = vmatpush3.bf16.msra.mxu0 %v2603_v50 }
 0x250   :  { %v2155_v9 = vpop.eup %2154  ;;  %2164 = vrcp.f32 %v937_v7  ;;  %1999 = vmatprep.subr.bf16.mxu1 %v2609_v11  ;;  %v1668_v7 = vld [vmem:[%s2812_s3 + $0x44] sm:$0x1] }
 0x251   :  { %v980_v52 = vmul.f32 %v2155_v9, %v2556_v49 }
 0x252   :  { %v2157_v2 = vpop.eup %2156 }
 0x253   :  { %v981_v32 = vmul.f32 %v2157_v2, %v2564_v29  ;;  %2000 = vmatpush3.bf16.msra.mxu1 %v2609_v11 }
 0x254   :  { %v2159_v30 = vpop.eup %2158 }
 0x255   :  { %v998_v35 = vpack.c.bf16 %v981_v32, %v980_v52  ;;  %v983_v8 = vmul.f32 %v2159_v30, %v2571_v57 }
 0x256   :  { %v2161_v36 = vpop.eup %2160 }
 0x257   :  { %1993 = vmatprep.mubr.msk.bf16.mxu0 %vm720_vm2, %v998_v35  ;;  %v984_v50 = vmul.f32 %v2161_v36, %v2575_v33 }
 0x258   :  { %v2163_v53 = vpop.eup %2162 }
 0x259   :  { %v982_v43 = vmul.f32 %v2163_v53, %v2579_v63  ;;  %v1000_v58 = vpack.c.bf16 %v984_v50, %v983_v8  ;;  %v1643_v63 = vld [vmem:[%s2812_s3 + $0x8] sm:$0x1]  ;;  %v1673_v50 = vld [vmem:[%s2812_s3 + $0x50] sm:$0x1] }
 0x25a   :  { %v2165_v20 = vpop.eup %2164 }
 0x25b   :  { %v999_v34 = vpack.c.bf16 %v982_v43, %v982_v43  ;;  %v985_v49 = vmul.f32 %v2165_v20, %v2583_v41  ;;  %2001 = vmatprep.mubr.msk.bf16.mxu1 %vm720_vm2, %v1000_v58 }
 0x25d   :  { %v1001_v29 = vpack.c.bf16 %v985_v49, %v985_v49  ;;  %1994 = vmatmul.mubr.msk.bf16.vlgmr.msra.gmra.mrb[28].mxu0 %vm720_vm2, %v999_v34  ;;  %v1678_v49 = vld [vmem:[%s2812_s3 + $0x5c] sm:$0x1] }
 0x25f   :  { %2002 = vmatmul.mubr.msk.bf16.vlgmr.msra.gmra.mrb[28].mxu1 %vm720_vm2, %v1001_v29 }
 0x300   :  { %v1947_v57 = vpop.f32.mrb[16].mxu0 }
 0x301   :  { %v1791_v11 = vpack.c.bf16 %v1947_v57, %v1947_v57  ;;  %v1057_v41 = vpop.f32.mrb[17].mxu0 }
 0x302   :  { %v1789_v37 = vpack.c.bf16 %v1057_v41, %v1057_v41  ;;  %v1948_v38 = vpop.f32.mrb[18].mxu0 }
 0x303   :  { %v1644_v40 = vsel %vm2677_vm6, %v1791_v11, %v1643_v63  ;;  %v1060_v44 = vpop.f32.mrb[19].mxu0 }
 0x304   :  { %v1955_v46 = vpop.f32.mrb[16].mxu1  ;;  %1645 = vst [vmem:[%s2812_s3 + $0x8] sm:$0x1] %v1644_v40  ;;  %1638 = vst.msk [vmem:[%s2812_s3] sm:$0xf] %vm1637_vm7, %v1789_v37  ;;  %v1790_v28 = vpack.c.bf16 %v1060_v44, %v1060_v44 }
 0x305   :  { %v1794_v55 = vpack.c.bf16 %v1955_v46, %v1955_v46  ;;  %v1123_v59 = vpop.f32.mrb[17].mxu1 }
 0x306   :  { %v1792_v47 = vpack.c.bf16 %v1123_v59, %v1123_v59  ;;  %v1956_v15 = vpop.f32.mrb[18].mxu1  ;;  %1639 = vst.msk [vmem:[%s2812_s3 + $0x4] sm:$0xf] %vm1637_vm7, %v1790_v28 }
 0x307   :  { %v1649_v61 = vsel %vm2677_vm6, %v1794_v55, %v1648_v26  ;;  %v1126_v4 = vpop.f32.mrb[19].mxu1 }
 0x308   :  { %1650 = vst [vmem:[%s2812_s3 + $0x14] sm:$0x1] %v1649_v61  ;;  %1646 = vst.msk [vmem:[%s2812_s3 + $0xc] sm:$0xf] %vm1637_vm7, %v1792_v47  ;;  %v1793_v13 = vpack.c.bf16 %v1126_v4, %v1126_v4 }
 0x30a   :  { %1647 = vst.msk [vmem:[%s2812_s3 + $0x10] sm:$0xf] %vm1637_vm7, %v1793_v13 }
 0x30d   :  { %v1963_v62 = vpop.f32.mrb[20].mxu0 }
 0x30e   :  { %v1797_v31 = vpack.c.bf16 %v1963_v62, %v1963_v62  ;;  %v1189_v3 = vpop.f32.mrb[21].mxu0 }
 0x30f   :  { %v1795_v6 = vpack.c.bf16 %v1189_v3, %v1189_v3  ;;  %v1964_v24 = vpop.f32.mrb[22].mxu0 }
 0x310   :  { %v1654_v27 = vsel %vm2677_vm6, %v1797_v31, %v1653_v16  ;;  %v1192_v56 = vpop.f32.mrb[23].mxu0 }
 0x311   :  { %1655 = vst [vmem:[%s2812_s3 + $0x20] sm:$0x1] %v1654_v27  ;;  %1651 = vst.msk [vmem:[%s2812_s3 + $0x18] sm:$0xf] %vm1637_vm7, %v1795_v6  ;;  %v1796_v19 = vpack.c.bf16 %v1192_v56, %v1192_v56  ;;  %v1971_v10 = vpop.f32.mrb[20].mxu1 }
 0x312   :  { %v1800_v12 = vpack.c.bf16 %v1971_v10, %v1971_v10  ;;  %v1255_v5 = vpop.f32.mrb[21].mxu1 }
 0x313   :  { %1652 = vst.msk [vmem:[%s2812_s3 + $0x1c] sm:$0xf] %vm1637_vm7, %v1796_v19  ;;  %v1798_v42 = vpack.c.bf16 %v1255_v5, %v1255_v5  ;;  %v1972_v14 = vpop.f32.mrb[22].mxu1 }
 0x314   :  { %v1659_v51 = vsel %vm2677_vm6, %v1800_v12, %v1658_v21  ;;  %v1258_v17 = vpop.f32.mrb[23].mxu1 }
 0x315   :  { %1660 = vst [vmem:[%s2812_s3 + $0x2c] sm:$0x1] %v1659_v51  ;;  %1656 = vst.msk [vmem:[%s2812_s3 + $0x24] sm:$0xf] %vm1637_vm7, %v1798_v42  ;;  %v1799_v18 = vpack.c.bf16 %v1258_v17, %v1258_v17 }
 0x317   :  { %1657 = vst.msk [vmem:[%s2812_s3 + $0x28] sm:$0xf] %vm1637_vm7, %v1799_v18 }
 0x31d   :  { %v1979_v60 = vpop.f32.mrb[24].mxu0 }
 0x31e   :  { %v1803_v22 = vpack.c.bf16 %v1979_v60, %v1979_v60  ;;  %v1321_v45 = vpop.f32.mrb[25].mxu0 }
 0x31f   :  { %v1801_v1 = vpack.c.bf16 %v1321_v45, %v1321_v45  ;;  %v1980_v48 = vpop.f32.mrb[26].mxu0 }
 0x320   :  { %v1664_v54 = vsel %vm2677_vm6, %v1803_v22, %v1663_v25  ;;  %v1324_v23 = vpop.f32.mrb[27].mxu0 }
 0x321   :  { %1665 = vst [vmem:[%s2812_s3 + $0x38] sm:$0x1] %v1664_v54  ;;  %1661 = vst.msk [vmem:[%s2812_s3 + $0x30] sm:$0xf] %vm1637_vm7, %v1801_v1  ;;  %v1802_v0 = vpack.c.bf16 %v1324_v23, %v1324_v23  ;;  %v1987_v39 = vpop.f32.mrb[24].mxu1 }
 0x322   :  { %v1806_v9 = vpack.c.bf16 %v1987_v39, %v1987_v39  ;;  %v1387_v2 = vpop.f32.mrb[25].mxu1 }
 0x323   :  { %1662 = vst.msk [vmem:[%s2812_s3 + $0x34] sm:$0xf] %vm1637_vm7, %v1802_v0  ;;  %v1804_v52 = vpack.c.bf16 %v1387_v2, %v1387_v2  ;;  %v1988_v32 = vpop.f32.mrb[26].mxu1 }
 0x324   :  { %v1669_v30 = vsel %vm2677_vm6, %v1806_v9, %v1668_v7  ;;  %v1390_v35 = vpop.f32.mrb[27].mxu1 }
 0x325   :  { %1670 = vst [vmem:[%s2812_s3 + $0x44] sm:$0x1] %v1669_v30  ;;  %1666 = vst.msk [vmem:[%s2812_s3 + $0x3c] sm:$0xf] %vm1637_vm7, %v1804_v52  ;;  %v1805_v36 = vpack.c.bf16 %v1390_v35, %v1390_v35 }
 0x327   :  { %1667 = vst.msk [vmem:[%s2812_s3 + $0x40] sm:$0xf] %vm1637_vm7, %v1805_v36 }
 0x330   :  { %v1995_v8 = vpop.f32.mrb[28].mxu0 }
 0x331   :  { %v1809_v53 = vpack.c.bf16 %v1995_v8, %v1995_v8  ;;  %v1453_v43 = vpop.f32.mrb[29].mxu0 }
 0x332   :  { %v1807_v58 = vpack.c.bf16 %v1453_v43, %v1453_v43  ;;  %v1996_v20 = vpop.f32.mrb[30].mxu0  ;;  %v2003_v34 = vpop.f32.mrb[28].mxu1 }
 0x333   :  { %v1674_v29 = vsel %vm2677_vm6, %v1809_v53, %v1673_v50  ;;  %v1812_v57 = vpack.c.bf16 %v2003_v34, %v2003_v34  ;;  %v1456_v63 = vpop.f32.mrb[31].mxu0  ;;  %v1519_v11 = vpop.f32.mrb[29].mxu1 }
 0x334   :  { %1675 = vst [vmem:[%s2812_s3 + $0x50] sm:$0x1] %v1674_v29  ;;  %1671 = vst.msk [vmem:[%s2812_s3 + $0x48] sm:$0xf] %vm1637_vm7, %v1807_v58  ;;  %v1808_v41 = vpack.c.bf16 %v1456_v63, %v1456_v63  ;;  %v1810_v37 = vpack.c.bf16 %v1519_v11, %v1519_v11  ;;  %v2004_v38 = vpop.f32.mrb[30].mxu1 }
 0x335   :  { %v1679_v40 = vsel %vm2677_vm6, %v1812_v57, %v1678_v49  ;;  %v1522_v44 = vpop.f32.mrb[31].mxu1 }
 0x336   :  { %1680 = vst [vmem:[%s2812_s3 + $0x5c] sm:$0x1] %v1679_v40  ;;  %1672 = vst.msk [vmem:[%s2812_s3 + $0x4c] sm:$0xf] %vm1637_vm7, %v1808_v41  ;;  %v1811_v46 = vpack.c.bf16 %v1522_v44, %v1522_v44 }
 0x337   :  { %1676 = vst.msk [vmem:[%s2812_s3 + $0x54] sm:$0xf] %vm1637_vm7, %v1810_v37 }
 0x338   :  { %1677 = vst.msk [vmem:[%s2812_s3 + $0x58] sm:$0xf] %vm1637_vm7, %v1811_v46 }

// kernel: _lambda_.40
= control target key start
LH: loop header
LB: loop body
LE: loop exit
PB: predicated region body
PF: predicated region fallthrough
CT: control target
= control target key end

     0   :  { %vm22_vm0 = vcmask 261120   ;;  %v353_v0 = vmov 0.0   ;;  %vm354_vm1 = vmmov 0   ;;  %vm27_vm2 = vcmask 254976   ;;  %s453_s1 = inlined_call_operand.vmem [shape: bf16[128,32], index: 1, kind: input, shape index: {}]   ;;  %s454_s0 = inlined_call_operand.vmem [shape: bf16[34,128], index: 0, kind: input, shape index: {}]   ;;  %s455_s3 = inlined_call_operand.vmem [shape: bf16[34,32], index: 3, kind: input, shape index: {}]   ;;  %s456_s2 = inlined_call_operand.vmem [shape: f32[1,32], index: 2, kind: input, shape index: {}]   ;;  %s457_s4 = inlined_call_operand.vmem [shape: bf16[34,32], index: 4, kind: output, shape index: {}]  }
   0x1   :  { %324 = vmatprep.subr.bf16.mxu1 %v353_v0  ;;  %v342_v1 = vld [vmem:[%s453_s1] sm:$0xff]   ;;  %296 = vmatprep.subr.bf16.mxu0 %v353_v0  ;;  %25 = vst.msk [vmem:[#allocation2 + $0x10] sm:$0xff] %vm22_vm0, %v353_v0  ;;  %23 = vst.msk [vmem:[#allocation2] sm:$0xff] %vm22_vm0, %v353_v0  ;;  %v343_v2 = vld [vmem:[%s453_s1 + $0x8] sm:$0xff]   ;;  %vm243_vm3 = vcmask 257024   ;;  %vm248_vm4 = vcmask 253952  }
   0x2   :  { %24 = vst.msk [vmem:[#allocation2 + $0x8] sm:$0xff] %vm22_vm0, %v353_v0  ;;  %26 = vst.msk [vmem:[#allocation2 + $0x18] sm:$0xff] %vm22_vm0, %v353_v0  ;;  %316 = vmatprep.mubr.msk.bf16.mxu1 %vm354_vm1, %v353_v0  ;;  %312 = vmatprep.mubr.msk.bf16.mxu0 %vm354_vm1, %v353_v0  ;;  %v344_v3 = vld [vmem:[%s453_s1 + $0x10] sm:$0xff]   ;;  %v345_v4 = vld [vmem:[%s453_s1 + $0x18] sm:$0xff]  }
   0x3   :  { %332 = vmatpush3.bf16.msra.mxu1 %v342_v1  ;;  %297 = vmatpush3.bf16.msra.mxu0 %v342_v1  ;;  %v346_v5 = vld [vmem:[%s453_s1 + $0x20] sm:$0xff]   ;;  %v347_v6 = vld [vmem:[%s453_s1 + $0x28] sm:$0xff]   ;;  %v348_v7 = vld [vmem:[%s453_s1 + $0x30] sm:$0xff]   ;;  %28 = vst.msk [vmem:[#allocation2 + $0x20] sm:$0x3] %vm27_vm2, %v353_v0 }
   0x4   :  { %325 = vmatprep.subr.bf16.mxu1 %v353_v0  ;;  %298 = vmatprep.subr.bf16.mxu0 %v353_v0  ;;  %v349_v8 = vld [vmem:[%s453_s1 + $0x38] sm:$0xff]   ;;  %v350_v9 = vld [vmem:[%s454_s0 + $0x8] sm:$0xff]   ;;  %v351_v10 = vld [vmem:[%s454_s0] sm:$0xff]  }
   0x5   :  { %v352_v11 = vld [vmem:[%s454_s0 + $0x10] ss:$0 sps:$4 sm:$0x11]   ;;  %v284_v28 = vld [vmem:[%s455_s3 + $0x8] sm:$0xff]   ;;  %v277_v29 = vld [vmem:[%s455_s3] sm:$0xff]  }
   0x6   :  { %v265_v31 = vld [vmem:[%s456_s2] ss:$0 sm:$0xff]  ;;  %v282_v33 = vunpack.c.l.bf16 %v284_v28  ;;  %v278_v34 = vunpack.c.l.bf16 %v277_v29  ;;  %v283_v41 = vunpack.c.h.bf16 %v284_v28  ;;  %v279_v43 = vunpack.c.h.bf16 %v277_v29  ;;  %v211_v51 = vld [vmem:[%s455_s3 + $0x10] sm:$0x1] }
   0x7   :  { %333 = vmatpush3.bf16.msra.mxu1 %v343_v2  ;;  %299 = vmatpush3.bf16.msra.mxu0 %v343_v2  ;;  %v216_v58 = vunpack.c.l.bf16 %v211_v51 }
   0x8   :  { %326 = vmatprep.subr.bf16.mxu1 %v353_v0  ;;  %300 = vmatprep.subr.bf16.mxu0 %v353_v0  ;;  %v52_v12 = vld [vmem:[#allocation2 + $0x10] sm:$0xff]  ;;  %v50_v13 = vld [vmem:[#allocation2] sm:$0xff] }
   0x9   :  { %v53_v15 = vld [vmem:[#allocation2 + $0x18] sm:$0xff]  ;;  %v51_v17 = vld [vmem:[#allocation2 + $0x8] sm:$0xff] }
   0xa   :  { %v54_v30 = vld [vmem:[#allocation2 + $0x20] sm:$0x3] }
   0xb   :  { %334 = vmatpush3.bf16.msra.mxu1 %v344_v3  ;;  %301 = vmatpush3.bf16.msra.mxu0 %v344_v3 }
   0xc   :  { %327 = vmatprep.subr.bf16.mxu1 %v353_v0  ;;  %302 = vmatprep.subr.bf16.mxu0 %v353_v0 }
   0xf   :  { %335 = vmatpush3.bf16.msra.mxu1 %v345_v4  ;;  %303 = vmatpush3.bf16.msra.mxu0 %v345_v4 }
  0x10   :  { %328 = vmatprep.subr.bf16.mxu1 %v353_v0  ;;  %304 = vmatprep.subr.bf16.mxu0 %v353_v0 }
  0x13   :  { %336 = vmatpush3.bf16.msra.mxu1 %v346_v5  ;;  %305 = vmatpush3.bf16.msra.mxu0 %v346_v5 }
  0x14   :  { %329 = vmatprep.subr.bf16.mxu1 %v353_v0  ;;  %306 = vmatprep.subr.bf16.mxu0 %v353_v0 }
  0x17   :  { %337 = vmatpush3.bf16.msra.mxu1 %v347_v6  ;;  %307 = vmatpush3.bf16.msra.mxu0 %v347_v6 }
  0x18   :  { %330 = vmatprep.subr.bf16.mxu1 %v353_v0  ;;  %308 = vmatprep.subr.bf16.mxu0 %v353_v0 }
  0x1b   :  { %338 = vmatpush3.bf16.msra.mxu1 %v348_v7  ;;  %309 = vmatpush3.bf16.msra.mxu0 %v348_v7 }
  0x1c   :  { %331 = vmatprep.subr.bf16.mxu1 %v353_v0  ;;  %310 = vmatprep.subr.bf16.mxu0 %v353_v0 }
  0x1f   :  { %339 = vmatpush3.bf16.msra.mxu1 %v349_v8  ;;  %311 = vmatpush3.bf16.msra.mxu0 %v349_v8 }
  0x22   :  { %317 = vmatmul.mubr.bf16.vlgmr.msra.gmra.mrb[0].mxu1 %v350_v9  ;;  %313 = vmatmul.mubr.bf16.vlgmr.msra.gmra.mrb[0].mxu0 %v351_v10 }
  0x23   :  { %320 = vmatprep.mubr.msk.bf16.mxu1 %vm354_vm1, %v353_v0 }
  0x2a   :  { %321 = vmatmul.mubr.bf16.gmra.mrb[4].mxu1 %v352_v11 }
  0xf5   :  { %v161_v14 = vpop.f32.mrb[0].mxu1  ;;  %v153_v16 = vpop.f32.mrb[0].mxu0 }
  0xf6   :  { %v177_v18 = vadd.f32 %v161_v14, %v52_v12  ;;  %v318_v19 = vpop.f32.mrb[1].mxu1  ;;  %v175_v20 = vadd.f32 %v153_v16, %v50_v13  ;;  %v314_v21 = vpop.f32.mrb[1].mxu0 }
  0xf7   :  { %v164_v22 = vpop.f32.mrb[2].mxu1  ;;  %v156_v23 = vpop.f32.mrb[2].mxu0 }
  0xf8   :  { %183 = vst.msk [vmem:[#allocation2 + $0x10] sm:$0xff] %vm22_vm0, %v177_v18  ;;  %v178_v24 = vadd.f32 %v164_v22, %v53_v15  ;;  %181 = vst.msk [vmem:[#allocation2] sm:$0xff] %vm22_vm0, %v175_v20  ;;  %v319_v25 = vpop.f32.mrb[3].mxu1  ;;  %v176_v26 = vadd.f32 %v156_v23, %v51_v17  ;;  %v315_v27 = vpop.f32.mrb[3].mxu0 }
  0xfa   :  { %184 = vst.msk [vmem:[#allocation2 + $0x18] sm:$0xff] %vm22_vm0, %v178_v24  ;;  %182 = vst.msk [vmem:[#allocation2 + $0x8] sm:$0xff] %vm22_vm0, %v176_v26 }
  0xfd   :  { %v169_v32 = vpop.f32.mrb[4].mxu1 }
  0xfe   :  { %v179_v35 = vadd.f32 %v169_v32, %v54_v30  ;;  %v322_v36 = vpop.f32.mrb[5].mxu1 }
  0xff   :  { %v192_v37 = vld [vmem:[#allocation2 + $0x10] sm:$0xff]  ;;  %v190_v38 = vld [vmem:[#allocation2] sm:$0xff]  ;;  %v172_v39 = vpop.f32.mrb[6].mxu1 }
 0x100   :  { %v204_v40 = vadd.f32 %v265_v31, %v192_v37  ;;  %v202_v42 = vadd.f32 %v265_v31, %v190_v38  ;;  %186 = vst.msk [vmem:[#allocation2 + $0x20] sm:$0x3] %vm27_vm2, %v179_v35  ;;  %v323_v44 = vpop.f32.mrb[7].mxu1 }
 0x101   :  { %v193_v45 = vld [vmem:[#allocation2 + $0x18] sm:$0xff]  ;;  %v191_v46 = vld [vmem:[#allocation2 + $0x8] sm:$0xff] }
 0x102   :  { %v219_v47 = vadd.f32 %v282_v33, %v204_v40  ;;  %v205_v48 = vadd.f32 %v265_v31, %v193_v45  ;;  %v217_v49 = vadd.f32 %v278_v34, %v202_v42  ;;  %v203_v50 = vadd.f32 %v265_v31, %v191_v46 }
 0x104   :  { %v273_v52 = vpack.c.bf16 %v219_v47, %v219_v47  ;;  %v220_v53 = vadd.f32 %v283_v41, %v205_v48  ;;  %v271_v54 = vpack.c.bf16 %v217_v49, %v217_v49  ;;  %v218_v55 = vadd.f32 %v279_v43, %v203_v50 }
 0x106   :  { %246 = vst.msk [vmem:[%s457_s4 + $0x8] sm:$0xf] %vm243_vm3, %v273_v52  ;;  %v274_v56 = vpack.c.bf16 %v220_v53, %v220_v53  ;;  %244 = vst.msk [vmem:[%s457_s4] sm:$0xf] %vm243_vm3, %v271_v54  ;;  %v272_v57 = vpack.c.bf16 %v218_v55, %v218_v55 }
 0x107   :  { %v194_v59 = vld [vmem:[#allocation2 + $0x20] sm:$0x3] }
 0x108   :  { %247 = vst.msk [vmem:[%s457_s4 + $0xc] sm:$0xf] %vm243_vm3, %v274_v56  ;;  %245 = vst.msk [vmem:[%s457_s4 + $0x4] sm:$0xf] %vm243_vm3, %v272_v57  ;;  %v206_v60 = vadd.f32 %v265_v31, %v194_v59 }
 0x10a   :  { %v221_v61 = vadd.f32 %v216_v58, %v206_v60 }
 0x10c   :  { %v275_v62 = vpack.c.bf16 %v221_v61, %v221_v61 }
 0x10e   :  { %249 = vst.msk [vmem:[%s457_s4 + $0x10] sm:$0x1] %vm248_vm4, %v275_v62 }

// kernel: _lambda_.46
= control target key start
LH: loop header
LB: loop body
LE: loop exit
PB: predicated region body
PF: predicated region fallthrough
CT: control target
= control target key end

     0   :  { %vm42_vm0 = vcmask 261120   ;;  %vm55_vm1 = vcmask 254976   ;;  %v320_v39 = vmov 0.0   ;;  %vm321_vm2 = vmmov 0   ;;  %s459_s0 = inlined_call_operand.vmem [shape: bf16[34,32], index: 0, kind: input, shape index: {}]   ;;  %s460_s1 = inlined_call_operand.vmem [shape: bf16[32,64], index: 1, kind: input, shape index: {}]   ;;  %s461_s2 = inlined_call_operand.vmem [shape: f32[1,32], index: 2, kind: input, shape index: {}]   ;;  %s462_s3 = inlined_call_operand.vmem [shape: f32[1,32], index: 3, kind: input, shape index: {}]   ;;  %s463_s4 = inlined_call_operand.vmem [shape: f32[1,64], index: 4, kind: input, shape index: {}]   ;;  %s464_s5 = inlined_call_operand.vmem [shape: f32[34,64], index: 5, kind: output, shape index: {}]  }
   0x1   :  { %v280_v0 = vld [vmem:[%s459_s0 + $0x8] sm:$0xff]   ;;  %v273_v1 = vld [vmem:[%s459_s0] sm:$0xff]   ;;  %v36_v5 = vld [vmem:[%s459_s0 + $0x10] sm:$0x1]  ;;  %302 = vmatprep.subr.bf16.mxu1 %v320_v39  ;;  %286 = vmatprep.subr.bf16.mxu0 %v320_v39  ;;  %vm25_vm3 = vcmask 523264   ;;  %vm30_vm4 = vcmask 517120  }
   0x2   :  { %v278_v2 = vunpack.c.l.bf16 %v280_v0  ;;  %v279_v3 = vunpack.c.h.bf16 %v280_v0  ;;  %v274_v4 = vunpack.c.l.bf16 %v273_v1  ;;  %v275_v6 = vunpack.c.h.bf16 %v273_v1  ;;  %v308_v38 = vld [vmem:[%s460_s1] sm:$0xff]   ;;  %v309_v40 = vld [vmem:[%s460_s1 + $0x8] sm:$0xff]   ;;  %294 = vmatprep.mubr.msk.bf16.mxu1 %vm321_vm2, %v320_v39  ;;  %290 = vmatprep.mubr.msk.bf16.mxu0 %vm321_vm2, %v320_v39  ;;  %28 = vst.msk [vmem:[#allocation2 + $0x10] sm:$0xff] %vm25_vm3, %v320_v39  ;;  %26 = vst.msk [vmem:[#allocation2] sm:$0xff] %vm25_vm3, %v320_v39 }
   0x3   :  { %v41_v10 = vunpack.c.l.bf16 %v36_v5  ;;  %304 = vmatpush3.bf16.msra.mxu1 %v308_v38  ;;  %287 = vmatpush3.bf16.msra.mxu0 %v308_v38  ;;  %27 = vst.msk [vmem:[#allocation2 + $0x8] sm:$0xff] %vm25_vm3, %v320_v39  ;;  %29 = vst.msk [vmem:[#allocation2 + $0x18] sm:$0xff] %vm25_vm3, %v320_v39  ;;  %v264_v58 = vld [vmem:[%s461_s2] ss:$0 sm:$0xff] }
   0x4   :  { %v49_v7 = vsel %vm42_vm0, %v278_v2, 0.0  ;;  %v43_v8 = vsel %vm42_vm0, %v274_v4, 0.0  ;;  %v52_v9 = vsel %vm42_vm0, %v279_v3, 0.0  ;;  %v46_v11 = vsel %vm42_vm0, %v275_v6, 0.0  ;;  %303 = vmatprep.subr.bf16.mxu1 %v320_v39  ;;  %288 = vmatprep.subr.bf16.mxu0 %v320_v39  ;;  %v265_v0 = vld [vmem:[%s462_s3] ss:$0 sm:$0xff] }
   0x5   :  { %50 = vadd.xlane.f32.xlu0 %v49_v7  ;;  %44 = vadd.xlane.f32.xlu1 %v43_v8  ;;  %v56_v12 = vsel %vm55_vm1, %v41_v10, 0.0  ;;  %31 = vst.msk [vmem:[#allocation2 + $0x20] sm:$0x3] %vm30_vm4, %v320_v39 }
   0x7   :  { %305 = vmatpush3.bf16.msra.mxu1 %v309_v40  ;;  %289 = vmatpush3.bf16.msra.mxu0 %v309_v40 }
   0x9   :  { %53 = vadd.xlane.f32.xlu0 %v52_v9  ;;  %47 = vadd.xlane.f32.xlu1 %v46_v11 }
   0xd   :  { %57 = vadd.xlane.f32.xlu0 %v56_v12 }
  0x92   :  { %v51_v13 = vpop.xlane.xlu0 %50  ;;  %v45_v14 = vpop.xlane.xlu1 %44 }
  0x93   :  { %v62_v15 = vmul.f32 0.03125, %v51_v13  ;;  %v60_v16 = vmul.f32 0.03125, %v45_v14 }
  0x95   :  { %v366_v17 = vsub.f32 %v278_v2, %v62_v15  ;;  %v368_v18 = vsub.f32 %v274_v4, %v60_v16 }
  0x96   :  { %v54_v19 = vpop.xlane.xlu0 %53  ;;  %v48_v20 = vpop.xlane.xlu1 %47 }
  0x97   :  { %v63_v21 = vmul.f32 0.03125, %v54_v19  ;;  %v72_v22 = vmul.f32 %v366_v17, %v366_v17  ;;  %v61_v23 = vmul.f32 0.03125, %v48_v20  ;;  %v70_v24 = vmul.f32 %v368_v18, %v368_v18  ;;  %v144_v19 = vld [vmem:[#allocation2 + $0x18] sm:$0xff] }
  0x99   :  { %v374_v25 = vsub.f32 %v279_v3, %v63_v21  ;;  %v81_v26 = vsel %vm42_vm0, %v72_v22, 0.0  ;;  %v377_v27 = vsub.f32 %v275_v6, %v61_v23  ;;  %v75_v31 = vsel %vm42_vm0, %v70_v24, 0.0  ;;  %v141_v23 = vld [vmem:[#allocation2] sm:$0xff] }
  0x9a   :  { %v58_v28 = vpop.xlane.xlu0 %57  ;;  %82 = vadd.xlane.f32.xlu1 %v81_v26 }
  0x9b   :  { %v64_v29 = vmul.f32 0.03125, %v58_v28  ;;  %v73_v30 = vmul.f32 %v374_v25, %v374_v25  ;;  %v71_v32 = vmul.f32 %v377_v27, %v377_v27 }
  0x9d   :  { %v384_v33 = vsub.f32 %v41_v10, %v64_v29  ;;  %v84_v34 = vsel %vm42_vm0, %v73_v30, 0.0  ;;  %v78_v36 = vsel %vm42_vm0, %v71_v32, 0.0 }
  0x9e   :  { %85 = vadd.xlane.f32.xlu0 %v84_v34  ;;  %76 = vadd.xlane.f32.xlu1 %v75_v31  ;;  %v145_v31 = vld [vmem:[#allocation2 + $0x20] sm:$0x3] }
  0x9f   :  { %v74_v35 = vmul.f32 %v384_v33, %v384_v33 }
  0xa1   :  { %v87_v37 = vsel %vm55_vm1, %v74_v35, 0.0  ;;  %v271_v35 = vld [vmem:[%s463_s4] ss:$0 sm:$0xff] }
  0xa2   :  { %88 = vadd.xlane.f32.xlu1 %v87_v37  ;;  %79 = vadd.xlane.f32.xlu0 %v78_v36 }
 0x127   :  { %v83_v41 = vpop.xlane.xlu1 %82 }
 0x128   :  { %v92_v42 = vmul.f32 0.03125, %v83_v41 }
 0x12a   :  { %v97_v43 = vadd.f32 1e-05, %v92_v42 }
 0x12b   :  { %v86_v44 = vpop.xlane.xlu0 %85  ;;  %v77_v45 = vpop.xlane.xlu1 %76 }
 0x12c   :  { %310 = vrsqrt.f32 %v97_v43  ;;  %v93_v46 = vmul.f32 0.03125, %v86_v44  ;;  %v90_v47 = vmul.f32 0.03125, %v77_v45 }
 0x12e   :  { %v98_v48 = vadd.f32 1e-05, %v93_v46  ;;  %v95_v49 = vadd.f32 1e-05, %v90_v47 }
 0x12f   :  { %v80_v50 = vpop.xlane.xlu0 %79  ;;  %v89_v51 = vpop.xlane.xlu1 %88 }
 0x130   :  { %312 = vrsqrt.f32 %v98_v48  ;;  %v91_v52 = vmul.f32 0.03125, %v80_v50  ;;  %v94_v53 = vmul.f32 0.03125, %v89_v51 }
 0x131   :  { %314 = vrsqrt.f32 %v95_v49 }
 0x132   :  { %v96_v54 = vadd.f32 1e-05, %v91_v52  ;;  %v99_v55 = vadd.f32 1e-05, %v94_v53 }
 0x134   :  { %316 = vrsqrt.f32 %v96_v54 }
 0x135   :  { %318 = vrsqrt.f32 %v99_v55 }
 0x136   :  { %v311_v56 = vpop.eup %310 }
 0x137   :  { %v107_v57 = vmul.f32 %v311_v56, %v366_v17  ;;  %v143_v17 = vld [vmem:[#allocation2 + $0x10] sm:$0xff] }
 0x139   :  { %v119_v62 = vmul.f32 %v264_v58, %v107_v57 }
 0x13a   :  { %v313_v59 = vpop.eup %312 }
 0x13b   :  { %v315_v60 = vpop.eup %314  ;;  %v108_v61 = vmul.f32 %v313_v59, %v374_v25  ;;  %v131_v5 = vadd.f32 %v265_v0, %v119_v62 }
 0x13c   :  { %v105_v63 = vmul.f32 %v315_v60, %v368_v18 }
 0x13d   :  { %v120_v1 = vmul.f32 %v264_v58, %v108_v61 }
 0x13e   :  { %v317_v2 = vpop.eup %316  ;;  %v117_v7 = vmul.f32 %v264_v58, %v105_v63 }
 0x13f   :  { %v319_v3 = vpop.eup %318  ;;  %v106_v4 = vmul.f32 %v317_v2, %v377_v27  ;;  %v132_v6 = vadd.f32 %v265_v0, %v120_v1  ;;  %v142_v27 = vld [vmem:[#allocation2 + $0x8] sm:$0xff] }
 0x140   :  { %v109_v8 = vmul.f32 %v319_v3, %v384_v33  ;;  %v129_v12 = vadd.f32 %v265_v0, %v117_v7 }
 0x141   :  { %v135_v9 = vpack.c.bf16 %v132_v6, %v131_v5  ;;  %v118_v10 = vmul.f32 %v264_v58, %v106_v4 }
 0x142   :  { %v121_v11 = vmul.f32 %v264_v58, %v109_v8 }
 0x143   :  { %295 = vmatmul.mubr.msk.bf16.vlgmr.msra.gmra.mrb[0].mxu1 %vm42_vm0, %v135_v9  ;;  %v130_v13 = vadd.f32 %v265_v0, %v118_v10 }
 0x144   :  { %298 = vmatprep.mubr.msk.bf16.mxu1 %vm321_vm2, %v320_v39  ;;  %v133_v15 = vadd.f32 %v265_v0, %v121_v11 }
 0x145   :  { %v134_v14 = vpack.c.bf16 %v130_v13, %v129_v12 }
 0x146   :  { %v136_v16 = vpack.c.bf16 %v133_v15, %v133_v15 }
 0x147   :  { %291 = vmatmul.mubr.msk.bf16.vlgmr.msra.gmra.mrb[0].mxu0 %vm42_vm0, %v134_v14 }
 0x14b   :  { %299 = vmatmul.mubr.msk.bf16.gmra.mrb[4].mxu1 %vm42_vm0, %v136_v16 }
 0x216   :  { %v209_v18 = vpop.f32.mrb[0].mxu1 }
 0x217   :  { %v225_v20 = vadd.f32 %v209_v18, %v143_v17  ;;  %v296_v21 = vpop.f32.mrb[1].mxu1 }
 0x218   :  { %v212_v22 = vpop.f32.mrb[2].mxu1 }
 0x219   :  { %231 = vst.msk [vmem:[#allocation2 + $0x10] sm:$0xff] %vm25_vm3, %v225_v20  ;;  %v226_v24 = vadd.f32 %v212_v22, %v144_v19  ;;  %v297_v25 = vpop.f32.mrb[3].mxu1 }
 0x21a   :  { %v201_v26 = vpop.f32.mrb[0].mxu0 }
 0x21b   :  { %232 = vst.msk [vmem:[#allocation2 + $0x18] sm:$0xff] %vm25_vm3, %v226_v24  ;;  %v223_v28 = vadd.f32 %v201_v26, %v141_v23  ;;  %v292_v29 = vpop.f32.mrb[1].mxu0 }
 0x21c   :  { %v204_v30 = vpop.f32.mrb[2].mxu0 }
 0x21d   :  { %229 = vst.msk [vmem:[#allocation2] sm:$0xff] %vm25_vm3, %v223_v28  ;;  %v224_v32 = vadd.f32 %v204_v30, %v142_v27  ;;  %v293_v33 = vpop.f32.mrb[3].mxu0 }
 0x21e   :  { %v217_v34 = vpop.f32.mrb[4].mxu1 }
 0x21f   :  { %230 = vst.msk [vmem:[#allocation2 + $0x8] sm:$0xff] %vm25_vm3, %v224_v32  ;;  %v227_v36 = vadd.f32 %v217_v34, %v145_v31  ;;  %v300_v37 = vpop.f32.mrb[5].mxu1 }
 0x220   :  { %v240_v38 = vld [vmem:[#allocation2 + $0x10] sm:$0xff]  ;;  %v220_v39 = vpop.f32.mrb[6].mxu1 }
 0x221   :  { %234 = vst.msk [vmem:[#allocation2 + $0x20] sm:$0x3] %vm30_vm4, %v227_v36  ;;  %v252_v40 = vadd.f32 %v271_v35, %v240_v38  ;;  %v301_v41 = vpop.f32.mrb[7].mxu1 }
 0x222   :  { %v241_v42 = vld [vmem:[#allocation2 + $0x18] sm:$0xff] }
 0x223   :  { %v253_v43 = vadd.f32 %v271_v35, %v241_v42  ;;  %257 = vst.msk [vmem:[%s464_s5 + $0x10] sm:$0xff] %vm25_vm3, %v252_v40 }
 0x224   :  { %v238_v44 = vld [vmem:[#allocation2] sm:$0xff] }
 0x225   :  { %v250_v45 = vadd.f32 %v271_v35, %v238_v44  ;;  %258 = vst.msk [vmem:[%s464_s5 + $0x18] sm:$0xff] %vm25_vm3, %v253_v43 }
 0x226   :  { %v239_v46 = vld [vmem:[#allocation2 + $0x8] sm:$0xff] }
 0x227   :  { %v251_v47 = vadd.f32 %v271_v35, %v239_v46  ;;  %255 = vst.msk [vmem:[%s464_s5] sm:$0xff] %vm25_vm3, %v250_v45 }
 0x228   :  { %v242_v48 = vld [vmem:[#allocation2 + $0x20] sm:$0x3] }
 0x229   :  { %v254_v49 = vadd.f32 %v271_v35, %v242_v48  ;;  %256 = vst.msk [vmem:[%s464_s5 + $0x8] sm:$0xff] %vm25_vm3, %v251_v47 }
 0x22b   :  { %259 = vst.msk [vmem:[%s464_s5 + $0x20] sm:$0x3] %vm30_vm4, %v254_v49 }

// kernel: _lambda_.47
= control target key start
LH: loop header
LB: loop body
LE: loop exit
PB: predicated region body
PF: predicated region fallthrough
CT: control target
= control target key end

     0   :  { %vm38_vm0 = vcmask 523264   ;;  %s235_s0 = inlined_call_operand.vmem [shape: f32[32,64], index: 0, kind: input, shape index: {}]   ;;  %s236_s1 = inlined_call_operand.vmem [shape: f32[32,64], index: 1, kind: input, shape index: {}]   ;;  %s237_s2 = inlined_call_operand.vmem [shape: f32[32,1], index: 2, kind: input, shape index: {}]   ;;  %s238_s3 = inlined_call_operand.hbm [shape: f32[1,1], index: 3, kind: output, shape index: {}]  }
   0x1   :  { %v22_v0 = vld [vmem:[%s235_s0] sm:$0xff]  ;;  %v24_v2 = vld [vmem:[%s235_s0 + $0x10] sm:$0xff]  ;;  %v23_v5 = vld [vmem:[%s235_s0 + $0x8] sm:$0xff] }
   0x2   :  { %v26_v1 = vld [vmem:[%s236_s1] sm:$0xff]  ;;  %v28_v4 = vld [vmem:[%s236_s1 + $0x10] sm:$0xff]  ;;  %v27_v6 = vld [vmem:[%s236_s1 + $0x8] sm:$0xff] }
   0x3   :  { %v30_v3 = vsub.f32 %v22_v0, %v26_v1  ;;  %v32_v7 = vsub.f32 %v24_v2, %v28_v4  ;;  %v31_v8 = vsub.f32 %v23_v5, %v27_v6  ;;  %v25_v9 = vld [vmem:[%s235_s0 + $0x18] sm:$0xff] }
   0x4   :  { %v29_v10 = vld [vmem:[%s236_s1 + $0x18] sm:$0xff] }
   0x5   :  { %v34_v11 = vmul.f32 %v30_v3, %v30_v3  ;;  %v33_v12 = vsub.f32 %v25_v9, %v29_v10 }
   0x6   :  { %8 = vsyncpa [#allocation5], 0  ;;  %v36_v13 = vmul.f32 %v32_v7, %v32_v7  ;;  %v35_v14 = vmul.f32 %v31_v8, %v31_v8  ;;  %v56_v20 = vld [vmem:[%s237_s2] sm:$0xff]  ;;  %vm65_vm1 = vcmask 7168   ;;  %v57_v22 = vld [vmem:[%s237_s2 + $0x8] sm:$0xff]  ;;  %vm19_vm2 = vcmask 0  }
   0x7   :  { %v39_v15 = vsel %vm38_vm0, %v34_v11, 0.0  ;;  %v37_v16 = vmul.f32 %v33_v12, %v33_v12  ;;  %v83_v21 = vsel %vm65_vm1, %v56_v20, 0.0  ;;  %v84_v23 = vsel %vm65_vm1, %v57_v22, 0.0  ;;  %v58_v24 = vld [vmem:[%s237_s2 + $0x10] sm:$0xff]  ;;  %v59_v27 = vld [vmem:[%s237_s2 + $0x18] sm:$0xff]  ;;  %s149_s2 = smov [#allocation4]  }
   0x8   :  { %40 = vadd.xlane.f32.xlu0 %v39_v15  ;;  %v45_v17 = vsel %vm38_vm0, %v36_v13, 0.0  ;;  %v42_v18 = vsel %vm38_vm0, %v35_v14, 0.0  ;;  %v85_v25 = vadd.f32 %v84_v23, %v83_v21  ;;  %v86_v26 = vsel %vm65_vm1, %v58_v24, 0.0  ;;  %s112_s7 = sshll.u32 %s149_s2, 4  ;;  %s113_s7 = int_to_ptr.vmem [resolvable:$true] %s112_s7 }
   0x9   :  { %46 = vadd.xlane.f32.xlu1 %v45_v17  ;;  %v48_v19 = vsel %vm38_vm0, %v37_v16, 0.0  ;;  %v88_v29 = vsel %vm65_vm1, %v59_v27, 0.0  ;;  %v148_v34 = vmov 0.0   ;;  %s124_s8 = scalar_lea.vmem %s113_s7, 16  ;;  %s128_s9 = scalar_lea.vmem %s113_s7, 32 }
   0xa   :  { %v87_v28 = vadd.f32 %v86_v26, %v85_v25  ;;  %20 = vst.msk [vmem:[#allocation2] sm:$0x1] %vm19_vm2, %v148_v34  ;;  %21 = vst.msk [vmem:[#allocation3] sm:$0x1] %vm19_vm2, %v148_v34  ;;  %p125_p0 = scmp.ne.s32.totalorder %s113_s7, %s124_s8  ;;  %p129_p1 = scmp.lt.s32.totalorder %s113_s7, %s113_s7 }
   0xb   :  { %p130_p2 = scmp.lt.s32.totalorder %s128_s9, %s124_s8 }
   0xc   :  { %43 = vadd.xlane.f32.xlu0 %v42_v18  ;;  %v89_v30 = vadd.f32 %v88_v29, %v87_v28 }
   0xd   :  { %49 = vadd.xlane.f32.xlu1 %v48_v19  ;;  %p131_p3 = por %p130_p2, %p129_p1 }
   0xe   :  { %v90_v31 = vrot.slane %v89_v30, 4 }
   0xf   :  { %p132_p4 = pnand %p131_p3, %p125_p0 }
  0x10   :  { %v91_v32 = vadd.f32 %v90_v31, %v89_v30 }
  0x11   :  { %v82_v38 = vld [vmem:[#allocation3] sm:$0x1]  ;;  %v60_v1 = vld [vmem:[#allocation2] sm:$0x1] }
  0x12   :  { %v92_v33 = vrot.slane %v91_v32, 2 }
  0x14   :  { %v93_v35 = vadd.f32 %v92_v33, %v91_v32 }
  0x16   :  { %v94_v36 = vrot.slane %v93_v35, 1 }
  0x18   :  { %v95_v37 = vadd.f32 %v94_v36, %v93_v35 }
  0x1a   :  { %v96_v39 = vadd.f32 %v95_v37, %v82_v38 }
  0x1c   :  { %97 = vst.msk [vmem:[#allocation3] sm:$0x1] %vm19_vm2, %v96_v39 }
  0x23   :  { %v102_v63 = vld [vmem:[#allocation3] sm:$0x1] }
  0x24   :  { %122 = vrcp.f32 %v102_v63 }
  0x2e   :  { %v123_v4 = vpop.eup %122 }
  0x95   :  { %v41_v40 = vpop.xlane.xlu0 %40 }
  0x96   :  { %v52_v41 = vmul.f32 0.015625, %v41_v40  ;;  %v47_v42 = vpop.xlane.xlu1 %46 }
  0x97   :  { %v54_v43 = vmul.f32 0.015625, %v47_v42 }
  0x98   :  { %v61_v45 = vmul.f32 %v56_v20, %v52_v41 }
  0x99   :  { %v44_v44 = vpop.xlane.xlu0 %43  ;;  %v63_v49 = vmul.f32 %v58_v24, %v54_v43 }
  0x9a   :  { %v53_v46 = vmul.f32 0.015625, %v44_v44  ;;  %v50_v47 = vpop.xlane.xlu1 %49  ;;  %v66_v52 = vsel %vm65_vm1, %v61_v45, 0.0 }
  0x9b   :  { %v55_v48 = vmul.f32 0.015625, %v50_v47  ;;  %v69_v55 = vsel %vm65_vm1, %v63_v49, 0.0 }
  0x9c   :  { %v62_v50 = vmul.f32 %v57_v22, %v53_v46 }
  0x9d   :  { %v64_v51 = vmul.f32 %v59_v27, %v55_v48 }
  0x9e   :  { %v67_v53 = vsel %vm65_vm1, %v62_v50, 0.0 }
  0x9f   :  { %v68_v54 = vadd.f32 %v67_v53, %v66_v52  ;;  %v71_v56 = vsel %vm65_vm1, %v64_v51, 0.0 }
  0xa1   :  { %v70_v57 = vadd.f32 %v69_v55, %v68_v54 }
  0xa3   :  { %v72_v58 = vadd.f32 %v71_v56, %v70_v57 }
  0xa5   :  { %v73_v59 = vrot.slane %v72_v58, 4 }
  0xa7   :  { %v74_v60 = vadd.f32 %v73_v59, %v72_v58 }
  0xa9   :  { %v75_v61 = vrot.slane %v74_v60, 2 }
  0xab   :  { %v76_v62 = vadd.f32 %v75_v61, %v74_v60 }
  0xad   :  { %v77_v0 = vrot.slane %v76_v62, 1 }
  0xaf   :  { %v78_v2 = vadd.f32 %v77_v0, %v76_v62 }
  0xb1   :  { %v79_v3 = vadd.f32 %v78_v2, %v60_v1 }
  0xb3   :  { %81 = vst.msk [vmem:[#allocation2] sm:$0x1] %vm19_vm2, %v79_v3 }
  0xba   :  { %v101_v5 = vld [vmem:[#allocation2] sm:$0x1] }
  0xbb   :  { %v104_v6 = vmul.f32 %v123_v4, %v101_v5 }
  0xbd   :  { %105 = vst.msk [vmem:[#allocation4] sm:$0x1] %vm19_vm2, %v104_v6 }
  0xbe   :  { %135 = shalt.err (!%p132_p4)
}
  0xbf   :  { %s136_s12 = scalar_lea.hbm %s238_s3, 16 }
  0xc0   :  { %p137_p5 = scmp.ne.s32.totalorder %s238_s3, %s136_s12  ;;  %p140_p6 = scmp.lt.u32.totalorder %s136_s12, %s238_s3 }
  0xc2   :  { %p142_p7 = pnand %p140_p6, %p137_p5 }
  0xc4   :  { %145 = shalt.err (!%p142_p7)
}
  0xc5   :  { %115 = dma.vmem_to_hbm [thread:$0]  %s113_s7, 16, %s238_s3, [#allocation5]  }
  0xc6   :  { %146 = dma.done.wait [#allocation5], 16  }
  0xc7   :  { %147 = vsyncadd [#allocation5], 4294967280 }
  0xc8   :  { %119 = vsyncpa [#allocation5], 1 }

</bundles_post_ra>
